<compile_context>
chip_gen: v5e
topology: v5e:2x2
jax: 0.10.0
libtpu: 0.0.40
codegen_flags: <defaults>
</compile_context>

<pallas_src>
import math
import numpy as np
import jax
import jax.numpy as jnp
from jax.experimental import pallas as pl
from jax.experimental.pallas import tpu as pltpu

MID_CHANNELS = 8
HIGH = jax.lax.Precision.HIGHEST   # used by the pure-JAX reference only


# ----------------------- bicubic matrices (PyTorch semantics) -----------------------
def _cubic1(x, A=-0.75):
    return ((A + 2.0) * x - (A + 3.0)) * x * x + 1.0


def _cubic2(x, A=-0.75):
    return ((A * x - 5.0 * A) * x + 8.0 * A) * x - 4.0 * A


def bicubic_matrix(in_size, out_size):
    """Dense (out_size, in_size) matrix matching F.interpolate(mode='bicubic',
    align_corners=False) with A=-0.75 and border-replicate index clamping."""
    scale = in_size / out_size
    W = np.zeros((out_size, in_size), dtype=np.float64)
    for i in range(out_size):
        real = (i + 0.5) * scale - 0.5
        idx = math.floor(real)
        t = real - idx
        coeffs = (_cubic2(t + 1.0), _cubic1(t), _cubic1(1.0 - t), _cubic2(2.0 - t))
        for k in range(4):
            src = min(max(idx - 1 + k, 0), in_size - 1)
            W[i, src] += coeffs[k]
    return W.astype(np.float32)


# ------------------------------- Pallas kernels --------------------------------------
def _conv_mat_kernel(p_ref, w_ref, b_ref, o_ref):
    # p: (K, TM) bf16   w: (Cout, K) bf16   b: (Cout, 1) f32   o: (Cout, TM) f32
    y = jnp.dot(w_ref[...], p_ref[...], preferred_element_type=jnp.float32)
    o_ref[...] = jnp.maximum(y + b_ref[...], 0.0)


def _bicubic_dual_kernel(x_ref, w_ref, k2_ref, k4_ref, b2_ref, b4_ref,
                         o2_ref, o4_ref):
    # Fused:  o2 = relu(conv1to2(bicubic2(x)));  o4 = relu(conv1to4(bicubic4(x)))
    # x: (C, N, HW) bf16   w: (2C, C) bf16 (stacked 1x1 weights)
    # k2: (HW, 4HW) bf16   k4: (HW, 16HW) bf16   b*: (C, 1) f32
    # o2: (C, N*4HW) f32   o4: (C, N*16HW) f32
    x = x_ref[...]
    w = w_ref[...]
    k2 = k2_ref[...]
    k4 = k4_ref[...]
    b2 = b2_ref[...]
    b4 = b4_ref[...]
    C = b2_ref.shape[0]
    N = x_ref.shape[1]
    s2 = k2_ref.shape[1]
    s4 = k4_ref.shape[1]
    for n in range(N):                                    # N = 2, unrolled
        a = jnp.dot(w, x[:, n, :], preferred_element_type=jnp.float32)  # (2C, HW)
        y2 = jnp.dot(a[:C].astype(jnp.bfloat16), k2,
                     preferred_element_type=jnp.float32)                # (C, s2)
        y4 = jnp.dot(a[C:].astype(jnp.bfloat16), k4,
                     preferred_element_type=jnp.float32)                # (C, s4)
        o2_ref[:, n * s2:(n + 1) * s2] = jnp.maximum(y2 + b2, 0.0)
        o4_ref[:, n * s4:(n + 1) * s4] = jnp.maximum(y4 + b4, 0.0)


def _bicubic_single_kernel(x_ref, w_ref, k_ref, b_ref, o_ref):
    # o = relu(conv1x1(bicubic(x)))
    x = x_ref[...]
    w = w_ref[...]
    k = k_ref[...]
    b = b_ref[...]
    N = x_ref.shape[1]
    s = k_ref.shape[1]
    for n in range(N):
        a = jnp.dot(w, x[:, n, :], preferred_element_type=jnp.float32)   # (C, HW)
        y = jnp.dot(a.astype(jnp.bfloat16), k,
                    preferred_element_type=jnp.float32)                  # (C, s)
        o_ref[:, n * s:(n + 1) * s] = jnp.maximum(y + b, 0.0)


# ------------------------------ wrappers (glue) ---------------------------------------
def conv3x3_relu(x_cnhw, wmat, b, stride=1):
    """3x3 conv (pad=1) + bias + ReLU on a CNHW tensor.
    wmat: (Cout, 9*Cin) bf16 with k = (kh*3+kw)*Cin + cin;  b: (Cout,) f32."""
    C, N, H, W = x_cnhw.shape
    cout = wmat.shape[0]
    xp = jnp.pad(x_cnhw.astype(jnp.bfloat16), ((0, 0), (0, 0), (1, 1), (1, 1)))
    Ho = (H + 2 - 3) // stride + 1
    Wo = (W + 2 - 3) // stride + 1
    M = N * Ho * Wo
    cols = []
    for kh in range(3):
        for kw in range(3):
            sl = xp[:, :, kh:kh + stride * (Ho - 1) + 1:stride,
                          kw:kw + stride * (Wo - 1) + 1:stride]
            cols.append(sl.reshape(C, M))
    patches = jnp.concatenate(cols, axis=0)                       # (9C, M) bf16
    K = 9 * C

    # Two lane-dense column tiles when possible (keeps both v7x TCs busy on the
    # big merge convs); otherwise a single whole-array step.
    n_tiles = 2 if (M % 256 == 0) else 1
    tm = M // n_tiles

    out = pl.pallas_call(
        _conv_mat_kernel,
        out_shape=jax.ShapeDtypeStruct((cout, M), jnp.float32),
        grid=(n_tiles,),
        in_specs=[pl.BlockSpec((K, tm), lambda j: (0, j)),
                  pl.BlockSpec((cout, K), lambda j: (0, 0)),
                  pl.BlockSpec((cout, 1), lambda j: (0, 0))],
        out_specs=pl.BlockSpec((cout, tm), lambda j: (0, j)),
        compiler_params=pltpu.CompilerParams(dimension_semantics=("parallel",)),
    )(patches, wmat, b.reshape(cout, 1))
    return out.reshape(cout, N, Ho, Wo)


def bicubic_conv1x1_dual(x_cnhw, w12, b12, w14, b14):
    """Fused x1 -> (x12, x14): bicubic x2 / x4 upsample + 1x1 conv + ReLU,
    sharing one read of x1 and one stacked first dot.
    w12/w14: (Cout, Cin) bf16;  b12/b14: (Cout,) f32."""
    C, N, H, W = x_cnhw.shape
    HW = H * W
    k2 = jnp.asarray(np.kron(bicubic_matrix(H, 2 * H),
                             bicubic_matrix(W, 2 * W)).T, jnp.bfloat16)   # (HW, 4HW)
    k4 = jnp.asarray(np.kron(bicubic_matrix(H, 4 * H),
                             bicubic_matrix(W, 4 * W)).T, jnp.bfloat16)   # (HW, 16HW)
    w = jnp.concatenate([w12, w14], axis=0)                               # (2C, C) bf16
    x_flat = x_cnhw.reshape(C, N, HW).astype(jnp.bfloat16)
    s2, s4 = 4 * HW, 16 * HW
    o12, o14 = pl.pallas_call(
        _bicubic_dual_kernel,
        out_shape=(jax.ShapeDtypeStruct((C, N * s2), jnp.float32),
                   jax.ShapeDtypeStruct((C, N * s4), jnp.float32)),
        grid=(1,),
        in_specs=[pl.BlockSpec((C, N, HW), lambda j: (0, 0, 0)),
                  pl.BlockSpec((2 * C, C), lambda j: (0, 0)),
                  pl.BlockSpec((HW, s2), lambda j: (0, 0)),
                  pl.BlockSpec((HW, s4), lambda j: (0, 0)),
                  pl.BlockSpec((C, 1), lambda j: (0, 0)),
                  pl.BlockSpec((C, 1), lambda j: (0, 0))],
        out_specs=(pl.BlockSpec((C, N * s2), lambda j: (0, 0)),
                   pl.BlockSpec((C, N * s4), lambda j: (0, 0))),
        compiler_params=pltpu.CompilerParams(dimension_semantics=("arbitrary",)),
    )(x_flat, w, k2, k4, b12.reshape(C, 1), b14.reshape(C, 1))
    return (o12.reshape(C, N, 2 * H, 2 * W),
            o14.reshape(C, N, 4 * H, 4 * W))


def bicubic_conv1x1_single(x_cnhw, scale, w, b):
    """relu(conv1x1(bicubic(x, scale))) fused in one kernel.
    w: (Cout, Cin) bf16;  b: (Cout,) f32."""
    C, N, H, W = x_cnhw.shape
    HW = H * W
    k = jnp.asarray(np.kron(bicubic_matrix(H, scale * H),
                            bicubic_matrix(W, scale * W)).T, jnp.bfloat16)
    s = scale * scale * HW
    x_flat = x_cnhw.reshape(C, N, HW).astype(jnp.bfloat16)
    out = pl.pallas_call(
        _bicubic_single_kernel,
        out_shape=jax.ShapeDtypeStruct((C, N * s), jnp.float32),
        grid=(1,),
        in_specs=[pl.BlockSpec((C, N, HW), lambda j: (0, 0, 0)),
                  pl.BlockSpec((C, C), lambda j: (0, 0)),
                  pl.BlockSpec((HW, s), lambda j: (0, 0)),
                  pl.BlockSpec((C, 1), lambda j: (0, 0))],
        out_specs=pl.BlockSpec((C, N * s), lambda j: (0, 0)),
        compiler_params=pltpu.CompilerParams(dimension_semantics=("arbitrary",)),
    )(x_flat, w, k, b.reshape(C, 1))
    return out.reshape(C, N, scale * H, scale * W)


# -------------------------- weight packing (outside jit) ------------------------------
def pack_params(params):
    """Pre-pack weights once: HWIO 3x3 -> (Cout, 9Cin) bf16, 1x1 (Cin,Cout) ->
    (Cout, Cin) bf16, and concatenate the branch-fused weights."""
    def w3(p):
        w, b = p
        cout = w.shape[-1]
        return (jnp.transpose(w, (3, 0, 1, 2)).reshape(cout, -1).astype(jnp.bfloat16),
                b.astype(jnp.float32))

    def w1(p):
        w, b = p
        return (w.T.astype(jnp.bfloat16), b.astype(jnp.float32))

    pk = {}
    for name in ["conv2to1", "conv4to1_2", "conv_merge1", "conv_merge2",
                 "conv_merge4"]:
        pk[name] = w3(params[name])
    # conv4to1_1 + conv4to2 share x4's stride-2 im2col -> one matmul, Cout=16
    w41, b41 = w3(params["conv4to1_1"])
    w42, b42 = w3(params["conv4to2"])
    pk["conv4_comb"] = (jnp.concatenate([w41, w42], axis=0),
                        jnp.concatenate([b41, b42]))
    pk["conv1to2"] = w1(params["conv1to2"])
    pk["conv1to4"] = w1(params["conv1to4"])
    pk["conv2to4"] = w1(params["conv2to4"])
    return pk


# ---------------------------------- CSFI3 forward -------------------------------------
def csfi3_forward(pk, x1, x2, x4):
    """Inputs/outputs are NCHW (PyTorch convention); internals are CNHW so the
    batch folds into the matmul lane axis."""
    t1 = jnp.transpose(x1, (1, 0, 2, 3))
    t2 = jnp.transpose(x2, (1, 0, 2, 3))
    t4 = jnp.transpose(x4, (1, 0, 2, 3))
    c = t1.shape[0]

    # up-sampling branches (bicubic + 1x1 conv + relu, fused; x1's two branches
    # share one kernel / one HBM read of x1)
    x12, x14 = bicubic_conv1x1_dual(t1, *pk["conv1to2"], *pk["conv1to4"])
    x24 = bicubic_conv1x1_single(t2, 2, *pk["conv2to4"])

    # down-sampling branches (stride-2 3x3 convs)
    x21 = conv3x3_relu(t2, *pk["conv2to1"], stride=2)
    comb = conv3x3_relu(t4, *pk["conv4_comb"], stride=2)     # conv4to1_1 | conv4to2
    x41, x42 = comb[:c], comb[c:]
    x41 = conv3x3_relu(x41, *pk["conv4to1_2"], stride=2)

    # merges (3x3 stride-1 on channel-concatenated features)
    o1 = conv3x3_relu(jnp.concatenate((t1, x21, x41), axis=0),
                      *pk["conv_merge1"], stride=1)
    o2 = conv3x3_relu(jnp.concatenate((t2, x12, x42), axis=0),
                      *pk["conv_merge2"], stride=1)
    o4 = conv3x3_relu(jnp.concatenate((t4, x14, x24), axis=0),
                      *pk["conv_merge4"], stride=1)

    return (jnp.transpose(o1, (1, 0, 2, 3)),
            jnp.transpose(o2, (1, 0, 2, 3)),
            jnp.transpose(o4, (1, 0, 2, 3)))


# ------------------------------ pure-JAX reference ------------------------------------
def _ref_conv_relu(x_nchw, w_hwio, b, stride, pad):
    y = jax.lax.conv_general_dilated(
        x_nchw, w_hwio, (stride, stride), ((pad, pad), (pad, pad)),
        dimension_numbers=("NCHW", "HWIO", "NCHW"), precision=HIGH)
    return jax.nn.relu(y + b[None, :, None, None])


def _ref_bicubic(x_nchw, scale):
    N, C, H, W = x_nchw.shape
    Wh = jnp.asarray(bicubic_matrix(H, H * scale))
    Ww = jnp.asarray(bicubic_matrix(W, W * scale))
    t = jnp.einsum("oh,nchw->ncow", Wh, x_nchw, precision=HIGH)
    return jnp.einsum("pw,ncow->ncop", Ww, t, precision=HIGH)


def csfi3_reference(params, x1, x2, x4):
    def c1(x, p):
        w, b = p
        return _ref_conv_relu(x, w.reshape(1, 1, *w.shape), b, 1, 0)

    def c3(x, p, stride):
        w, b = p
        return _ref_conv_relu(x, w, b, stride, 1)

    x12 = c1(_ref_bicubic(x1, 2), params["conv1to2"])
    x14 = c1(_ref_bicubic(x1, 4), params["conv1to4"])
    x24 = c1(_ref_bicubic(x2, 2), params["conv2to4"])
    x21 = c3(x2, params["conv2to1"], 2)
    x41 = c3(x4, params["conv4to1_1"], 2)
    x41 = c3(x41, params["conv4to1_2"], 2)
    x42 = c3(x4, params["conv4to2"], 2)

    o1 = c3(jnp.concatenate((x1, x21, x41), axis=1), params["conv_merge1"], 1)
    o2 = c3(jnp.concatenate((x2, x12, x42), axis=1), params["conv_merge2"], 1)
    o4 = c3(jnp.concatenate((x4, x14, x24), axis=1), params["conv_merge4"], 1)
    return o1, o2, o4


# ---------------------------------- params --------------------------------------------
def init_params(key, c):
    names_1x1 = ["conv1to2", "conv1to4", "conv2to4"]
    names_3x3 = [("conv2to1", c), ("conv4to1_1", c), ("conv4to1_2", c),
                 ("conv4to2", c), ("conv_merge1", 3 * c), ("conv_merge2", 3 * c),
                 ("conv_merge4", 3 * c)]
    keys = jax.random.split(key, 2 * (len(names_1x1) + len(names_3x3)))
    params = {}
    ki = 0
    for name in names_1x1:
        w = jax.random.normal(keys[ki], (c, c), jnp.float32) * 0.1
        b = jax.random.normal(keys[ki + 1], (c,), jnp.float32) * 0.02
        params[name] = (w, b)
        ki += 2
    for name, cin in names_3x3:
        w = jax.random.normal(keys[ki], (3, 3, cin, c), jnp.float32) * 0.05
        b = jax.random.normal(keys[ki + 1], (c,), jnp.float32) * 0.02
        params[name] = (w, b)
        ki += 2
    return params


# ------------------------------------ main ---------------------------------------------
if __name__ == "__main__":
    n, c, h, w = 2, MID_CHANNELS, 8, 8
    key = jax.random.PRNGKey(0)
    k1, k2, k4, kp = jax.random.split(key, 4)
    x1 = jax.random.normal(k1, (n, c, h, w), jnp.float32)
    x2 = jax.random.normal(k2, (n, c, 2 * h, 2 * w), jnp.float32)
    x4 = jax.random.normal(k4, (n, c, 4 * h, 4 * w), jnp.float32)
    params = init_params(kp, c)
    packed = pack_params(params)        # weight packing hoisted out of jit

    fwd = jax.jit(csfi3_forward)
    o1, o2, o4 = fwd(packed, x1, x2, x4)
    jax.block_until_ready((o1, o2, o4))

    assert o1.shape == (n, c, h, w)
    assert o2.shape == (n, c, 2 * h, 2 * w)
    assert o4.shape == (n, c, 4 * h, 4 * w)

    r1, r2, r4 = jax.jit(csfi3_reference)(params, x1, x2, x4)
    # Pallas path uses bf16 MXU operands with f32 accumulation; reference is
    # f32 HIGHEST, so the comparison tolerance reflects bf16 quantization.
    np.testing.assert_allclose(np.asarray(o1), np.asarray(r1), rtol=5e-2, atol=5e-2)
    np.testing.assert_allclose(np.asarray(o2), np.asarray(r2), rtol=5e-2, atol=5e-2)
    np.testing.assert_allclose(np.asarray(o4), np.asarray(r4), rtol=5e-2, atol=5e-2)

    print("KERNEL_OK")
</pallas_src>

<mosaic_0001>
module attributes {stable_mosaic.version = 11 : i64} {
  func.func @_bicubic_single_kernel(%arg0: i32, %arg1: memref<8x2x256xbf16, #tpu.memory_space<vmem>>, %arg2: memref<8x8xbf16, #tpu.memory_space<vmem>>, %arg3: memref<256x1024xbf16, #tpu.memory_space<vmem>>, %arg4: memref<8x1xf32, #tpu.memory_space<vmem>>, %arg5: memref<8x2048xf32, #tpu.memory_space<vmem>>) attributes {dimension_semantics = [#tpu.dimension_semantics<arbitrary>], iteration_bounds = array<i64: 1>, scalar_prefetch = 0 : i64, scratch_operands = 0 : i64, tpu.core_type = #tpu.core_type<tc>, window_params = [{pipeline_mode = #tpu.pipeline_mode<synchronous>, transform_indices = @transform_0, window_bounds = array<i64: 8, 2, 256>}, {pipeline_mode = #tpu.pipeline_mode<synchronous>, transform_indices = @transform_1, window_bounds = array<i64: 8, 8>}, {pipeline_mode = #tpu.pipeline_mode<synchronous>, transform_indices = @transform_2, window_bounds = array<i64: 256, 1024>}, {pipeline_mode = #tpu.pipeline_mode<synchronous>, transform_indices = @transform_3, window_bounds = array<i64: 8, 1>}, {pipeline_mode = #tpu.pipeline_mode<synchronous>, transform_indices = @transform_4, window_bounds = array<i64: 8, 2048>}]} {
    %c0 = arith.constant 0 : index
    %c0_0 = arith.constant 0 : index
    %c0_1 = arith.constant 0 : index
    %0 = vector.load %arg1[%c0, %c0_0, %c0_1] : memref<8x2x256xbf16, #tpu.memory_space<vmem>>, vector<8x2x256xbf16>
    %c0_2 = arith.constant 0 : index
    %c0_3 = arith.constant 0 : index
    %1 = vector.load %arg2[%c0_2, %c0_3] : memref<8x8xbf16, #tpu.memory_space<vmem>>, vector<8x8xbf16>
    %c0_4 = arith.constant 0 : index
    %c0_5 = arith.constant 0 : index
    %2 = vector.load %arg3[%c0_4, %c0_5] : memref<256x1024xbf16, #tpu.memory_space<vmem>>, vector<256x1024xbf16>
    %c0_6 = arith.constant 0 : index
    %c0_7 = arith.constant 0 : index
    %3 = vector.load %arg4[%c0_6, %c0_7] : memref<8x1xf32, #tpu.memory_space<vmem>>, vector<8x1xf32>
    %4 = vector.extract_strided_slice %0 {offsets = [0, 0, 0], sizes = [8, 1, 256], strides = [1, 1, 1]} : vector<8x2x256xbf16> to vector<8x1x256xbf16>
    %5 = vector.shape_cast %4 : vector<8x1x256xbf16> to vector<8x256xbf16>
    %cst = arith.constant dense<0.000000e+00> : vector<8x256xf32>
    %6 = tpu.matmul %1, %5, %cst {dimension_numbers = #tpu.dot_dimension_numbers<[1], [0], [0], [1], [0, 0, 1, 1], [], []>} : vector<8x8xbf16>, vector<8x256xbf16>, vector<8x256xf32> -> vector<8x256xf32>
    %7 = arith.truncf %6 : vector<8x256xf32> to vector<8x256xbf16>
    %cst_8 = arith.constant dense<0.000000e+00> : vector<8x1024xf32>
    %8 = tpu.matmul %7, %2, %cst_8 {dimension_numbers = #tpu.dot_dimension_numbers<[1], [0], [0], [1], [0, 0, 1, 1], [], []>} : vector<8x256xbf16>, vector<256x1024xbf16>, vector<8x1024xf32> -> vector<8x1024xf32>
    %9 = vector.broadcast %3 : vector<8x1xf32> to vector<8x1024xf32>
    %10 = arith.addf %8, %9 : vector<8x1024xf32>
    %cst_9 = arith.constant 0.000000e+00 : f32
    %11 = vector.broadcast %cst_9 : f32 to vector<8x1024xf32>
    %12 = arith.maximumf %10, %11 : vector<8x1024xf32>
    %c0_10 = arith.constant 0 : index
    %c0_11 = arith.constant 0 : index
    %13 = vector.load %arg5[%c0_10, %c0_11] : memref<8x2048xf32, #tpu.memory_space<vmem>>, vector<8x1024xf32>
    tpu.vector_store %arg5[%c0_10, %c0_11], %12 {strides = array<i32>} : memref<8x2048xf32, #tpu.memory_space<vmem>>, vector<8x1024xf32>,
    %14 = vector.extract_strided_slice %0 {offsets = [0, 1, 0], sizes = [8, 1, 256], strides = [1, 1, 1]} : vector<8x2x256xbf16> to vector<8x1x256xbf16>
    %15 = vector.shape_cast %14 : vector<8x1x256xbf16> to vector<8x256xbf16>
    %cst_12 = arith.constant dense<0.000000e+00> : vector<8x256xf32>
    %16 = tpu.matmul %1, %15, %cst_12 {dimension_numbers = #tpu.dot_dimension_numbers<[1], [0], [0], [1], [0, 0, 1, 1], [], []>} : vector<8x8xbf16>, vector<8x256xbf16>, vector<8x256xf32> -> vector<8x256xf32>
    %17 = arith.truncf %16 : vector<8x256xf32> to vector<8x256xbf16>
    %cst_13 = arith.constant dense<0.000000e+00> : vector<8x1024xf32>
    %18 = tpu.matmul %17, %2, %cst_13 {dimension_numbers = #tpu.dot_dimension_numbers<[1], [0], [0], [1], [0, 0, 1, 1], [], []>} : vector<8x256xbf16>, vector<256x1024xbf16>, vector<8x1024xf32> -> vector<8x1024xf32>
    %19 = vector.broadcast %3 : vector<8x1xf32> to vector<8x1024xf32>
    %20 = arith.addf %18, %19 : vector<8x1024xf32>
    %cst_14 = arith.constant 0.000000e+00 : f32
    %21 = vector.broadcast %cst_14 : f32 to vector<8x1024xf32>
    %22 = arith.maximumf %20, %21 : vector<8x1024xf32>
    %c0_15 = arith.constant 0 : index
    %c1024 = arith.constant 1024 : index
    %23 = vector.load %arg5[%c0_15, %c1024] : memref<8x2048xf32, #tpu.memory_space<vmem>>, vector<8x1024xf32>
    tpu.vector_store %arg5[%c0_15, %c1024], %22 {strides = array<i32>} : memref<8x2048xf32, #tpu.memory_space<vmem>>, vector<8x1024xf32>,
    return
  }
  func.func @transform_0(%arg0: i32) -> (i32, i32, i32) {
    %c0_i32 = arith.constant 0 : i32
    %c0_i32_0 = arith.constant 0 : i32
    %c0_i32_1 = arith.constant 0 : i32
    %c0_i32_2 = arith.constant 0 : i32
    return %c0_i32, %c0_i32_0, %c0_i32_1 : i32, i32, i32
  }
  func.func @transform_1(%arg0: i32) -> (i32, i32) {
    %c0_i32 = arith.constant 0 : i32
    %c0_i32_0 = arith.constant 0 : i32
    %c0_i32_1 = arith.constant 0 : i32
    return %c0_i32, %c0_i32_0 : i32, i32
  }
  func.func @transform_2(%arg0: i32) -> (i32, i32) {
    %c0_i32 = arith.constant 0 : i32
    %c0_i32_0 = arith.constant 0 : i32
    %c0_i32_1 = arith.constant 0 : i32
    return %c0_i32, %c0_i32_0 : i32, i32
  }
  func.func @transform_3(%arg0: i32) -> (i32, i32) {
    %c0_i32 = arith.constant 0 : i32
    %c0_i32_0 = arith.constant 0 : i32
    %c0_i32_1 = arith.constant 0 : i32
    return %c0_i32, %c0_i32_0 : i32, i32
  }
  func.func @transform_4(%arg0: i32) -> (i32, i32) {
    %c0_i32 = arith.constant 0 : i32
    %c0_i32_0 = arith.constant 0 : i32
    %c0_i32_1 = arith.constant 0 : i32
    return %c0_i32, %c0_i32_0 : i32, i32
  }
}

module attributes {stable_mosaic.version = 11 : i64} {
  func.func @_bicubic_dual_kernel(%arg0: i32, %arg1: memref<8x2x64xbf16, #tpu.memory_space<vmem>>, %arg2: memref<16x8xbf16, #tpu.memory_space<vmem>>, %arg3: memref<64x256xbf16, #tpu.memory_space<vmem>>, %arg4: memref<64x1024xbf16, #tpu.memory_space<vmem>>, %arg5: memref<8x1xf32, #tpu.memory_space<vmem>>, %arg6: memref<8x1xf32, #tpu.memory_space<vmem>>, %arg7: memref<8x512xf32, #tpu.memory_space<vmem>>, %arg8: memref<8x2048xf32, #tpu.memory_space<vmem>>) attributes {dimension_semantics = [#tpu.dimension_semantics<arbitrary>], iteration_bounds = array<i64: 1>, scalar_prefetch = 0 : i64, scratch_operands = 0 : i64, tpu.core_type = #tpu.core_type<tc>, window_params = [{pipeline_mode = #tpu.pipeline_mode<synchronous>, transform_indices = @transform_0, window_bounds = array<i64: 8, 2, 64>}, {pipeline_mode = #tpu.pipeline_mode<synchronous>, transform_indices = @transform_1, window_bounds = array<i64: 16, 8>}, {pipeline_mode = #tpu.pipeline_mode<synchronous>, transform_indices = @transform_2, window_bounds = array<i64: 64, 256>}, {pipeline_mode = #tpu.pipeline_mode<synchronous>, transform_indices = @transform_3, window_bounds = array<i64: 64, 1024>}, {pipeline_mode = #tpu.pipeline_mode<synchronous>, transform_indices = @transform_4, window_bounds = array<i64: 8, 1>}, {pipeline_mode = #tpu.pipeline_mode<synchronous>, transform_indices = @transform_5, window_bounds = array<i64: 8, 1>}, {pipeline_mode = #tpu.pipeline_mode<synchronous>, transform_indices = @transform_6, window_bounds = array<i64: 8, 512>}, {pipeline_mode = #tpu.pipeline_mode<synchronous>, transform_indices = @transform_7, window_bounds = array<i64: 8, 2048>}]} {
    %c0 = arith.constant 0 : index
    %c0_0 = arith.constant 0 : index
    %c0_1 = arith.constant 0 : index
    %0 = vector.load %arg1[%c0, %c0_0, %c0_1] : memref<8x2x64xbf16, #tpu.memory_space<vmem>>, vector<8x2x64xbf16>
    %c0_2 = arith.constant 0 : index
    %c0_3 = arith.constant 0 : index
    %1 = vector.load %arg2[%c0_2, %c0_3] : memref<16x8xbf16, #tpu.memory_space<vmem>>, vector<16x8xbf16>
    %c0_4 = arith.constant 0 : index
    %c0_5 = arith.constant 0 : index
    %2 = vector.load %arg3[%c0_4, %c0_5] : memref<64x256xbf16, #tpu.memory_space<vmem>>, vector<64x256xbf16>
    %c0_6 = arith.constant 0 : index
    %c0_7 = arith.constant 0 : index
    %3 = vector.load %arg4[%c0_6, %c0_7] : memref<64x1024xbf16, #tpu.memory_space<vmem>>, vector<64x1024xbf16>
    %c0_8 = arith.constant 0 : index
    %c0_9 = arith.constant 0 : index
    %4 = vector.load %arg5[%c0_8, %c0_9] : memref<8x1xf32, #tpu.memory_space<vmem>>, vector<8x1xf32>
    %c0_10 = arith.constant 0 : index
    %c0_11 = arith.constant 0 : index
    %5 = vector.load %arg6[%c0_10, %c0_11] : memref<8x1xf32, #tpu.memory_space<vmem>>, vector<8x1xf32>
    %6 = vector.extract_strided_slice %0 {offsets = [0, 0, 0], sizes = [8, 1, 64], strides = [1, 1, 1]} : vector<8x2x64xbf16> to vector<8x1x64xbf16>
    %7 = vector.shape_cast %6 : vector<8x1x64xbf16> to vector<8x64xbf16>
    %cst = arith.constant dense<0.000000e+00> : vector<16x64xf32>
    %8 = tpu.matmul %1, %7, %cst {dimension_numbers = #tpu.dot_dimension_numbers<[1], [0], [0], [1], [0, 0, 1, 1], [], []>} : vector<16x8xbf16>, vector<8x64xbf16>, vector<16x64xf32> -> vector<16x64xf32>
    %9 = vector.extract_strided_slice %8 {offsets = [0, 0], sizes = [8, 64], strides = [1, 1]} : vector<16x64xf32> to vector<8x64xf32>
    %10 = arith.truncf %9 : vector<8x64xf32> to vector<8x64xbf16>
    %cst_12 = arith.constant dense<0.000000e+00> : vector<8x256xf32>
    %11 = tpu.matmul %10, %2, %cst_12 {dimension_numbers = #tpu.dot_dimension_numbers<[1], [0], [0], [1], [0, 0, 1, 1], [], []>} : vector<8x64xbf16>, vector<64x256xbf16>, vector<8x256xf32> -> vector<8x256xf32>
    %12 = vector.extract_strided_slice %8 {offsets = [8, 0], sizes = [8, 64], strides = [1, 1]} : vector<16x64xf32> to vector<8x64xf32>
    %13 = arith.truncf %12 : vector<8x64xf32> to vector<8x64xbf16>
    %cst_13 = arith.constant dense<0.000000e+00> : vector<8x1024xf32>
    %14 = tpu.matmul %13, %3, %cst_13 {dimension_numbers = #tpu.dot_dimension_numbers<[1], [0], [0], [1], [0, 0, 1, 1], [], []>} : vector<8x64xbf16>, vector<64x1024xbf16>, vector<8x1024xf32> -> vector<8x1024xf32>
    %15 = vector.broadcast %4 : vector<8x1xf32> to vector<8x256xf32>
    %16 = arith.addf %11, %15 : vector<8x256xf32>
    %cst_14 = arith.constant 0.000000e+00 : f32
    %17 = vector.broadcast %cst_14 : f32 to vector<8x256xf32>
    %18 = arith.maximumf %16, %17 : vector<8x256xf32>
    %c0_15 = arith.constant 0 : index
    %c0_16 = arith.constant 0 : index
    %19 = vector.load %arg7[%c0_15, %c0_16] : memref<8x512xf32, #tpu.memory_space<vmem>>, vector<8x256xf32>
    tpu.vector_store %arg7[%c0_15, %c0_16], %18 {strides = array<i32>} : memref<8x512xf32, #tpu.memory_space<vmem>>, vector<8x256xf32>,
    %20 = vector.broadcast %5 : vector<8x1xf32> to vector<8x1024xf32>
    %21 = arith.addf %14, %20 : vector<8x1024xf32>
    %cst_17 = arith.constant 0.000000e+00 : f32
    %22 = vector.broadcast %cst_17 : f32 to vector<8x1024xf32>
    %23 = arith.maximumf %21, %22 : vector<8x1024xf32>
    %c0_18 = arith.constant 0 : index
    %c0_19 = arith.constant 0 : index
    %24 = vector.load %arg8[%c0_18, %c0_19] : memref<8x2048xf32, #tpu.memory_space<vmem>>, vector<8x1024xf32>
    tpu.vector_store %arg8[%c0_18, %c0_19], %23 {strides = array<i32>} : memref<8x2048xf32, #tpu.memory_space<vmem>>, vector<8x1024xf32>,
    %25 = vector.extract_strided_slice %0 {offsets = [0, 1, 0], sizes = [8, 1, 64], strides = [1, 1, 1]} : vector<8x2x64xbf16> to vector<8x1x64xbf16>
    %26 = vector.shape_cast %25 : vector<8x1x64xbf16> to vector<8x64xbf16>
    %cst_20 = arith.constant dense<0.000000e+00> : vector<16x64xf32>
    %27 = tpu.matmul %1, %26, %cst_20 {dimension_numbers = #tpu.dot_dimension_numbers<[1], [0], [0], [1], [0, 0, 1, 1], [], []>} : vector<16x8xbf16>, vector<8x64xbf16>, vector<16x64xf32> -> vector<16x64xf32>
    %28 = vector.extract_strided_slice %27 {offsets = [0, 0], sizes = [8, 64], strides = [1, 1]} : vector<16x64xf32> to vector<8x64xf32>
    %29 = arith.truncf %28 : vector<8x64xf32> to vector<8x64xbf16>
    %cst_21 = arith.constant dense<0.000000e+00> : vector<8x256xf32>
    %30 = tpu.matmul %29, %2, %cst_21 {dimension_numbers = #tpu.dot_dimension_numbers<[1], [0], [0], [1], [0, 0, 1, 1], [], []>} : vector<8x64xbf16>, vector<64x256xbf16>, vector<8x256xf32> -> vector<8x256xf32>
    %31 = vector.extract_strided_slice %27 {offsets = [8, 0], sizes = [8, 64], strides = [1, 1]} : vector<16x64xf32> to vector<8x64xf32>
    %32 = arith.truncf %31 : vector<8x64xf32> to vector<8x64xbf16>
    %cst_22 = arith.constant dense<0.000000e+00> : vector<8x1024xf32>
    %33 = tpu.matmul %32, %3, %cst_22 {dimension_numbers = #tpu.dot_dimension_numbers<[1], [0], [0], [1], [0, 0, 1, 1], [], []>} : vector<8x64xbf16>, vector<64x1024xbf16>, vector<8x1024xf32> -> vector<8x1024xf32>
    %34 = vector.broadcast %4 : vector<8x1xf32> to vector<8x256xf32>
    %35 = arith.addf %30, %34 : vector<8x256xf32>
    %cst_23 = arith.constant 0.000000e+00 : f32
    %36 = vector.broadcast %cst_23 : f32 to vector<8x256xf32>
    %37 = arith.maximumf %35, %36 : vector<8x256xf32>
    %c0_24 = arith.constant 0 : index
    %c256 = arith.constant 256 : index
    %38 = vector.load %arg7[%c0_24, %c256] : memref<8x512xf32, #tpu.memory_space<vmem>>, vector<8x256xf32>
    tpu.vector_store %arg7[%c0_24, %c256], %37 {strides = array<i32>} : memref<8x512xf32, #tpu.memory_space<vmem>>, vector<8x256xf32>,
    %39 = vector.broadcast %5 : vector<8x1xf32> to vector<8x1024xf32>
    %40 = arith.addf %33, %39 : vector<8x1024xf32>
    %cst_25 = arith.constant 0.000000e+00 : f32
    %41 = vector.broadcast %cst_25 : f32 to vector<8x1024xf32>
    %42 = arith.maximumf %40, %41 : vector<8x1024xf32>
    %c0_26 = arith.constant 0 : index
    %c1024 = arith.constant 1024 : index
    %43 = vector.load %arg8[%c0_26, %c1024] : memref<8x2048xf32, #tpu.memory_space<vmem>>, vector<8x1024xf32>
    tpu.vector_store %arg8[%c0_26, %c1024], %42 {strides = array<i32>} : memref<8x2048xf32, #tpu.memory_space<vmem>>, vector<8x1024xf32>,
    return
  }
  func.func @transform_0(%arg0: i32) -> (i32, i32, i32) {
    %c0_i32 = arith.constant 0 : i32
    %c0_i32_0 = arith.constant 0 : i32
    %c0_i32_1 = arith.constant 0 : i32
    %c0_i32_2 = arith.constant 0 : i32
    return %c0_i32, %c0_i32_0, %c0_i32_1 : i32, i32, i32
  }
  func.func @transform_1(%arg0: i32) -> (i32, i32) {
    %c0_i32 = arith.constant 0 : i32
    %c0_i32_0 = arith.constant 0 : i32
    %c0_i32_1 = arith.constant 0 : i32
    return %c0_i32, %c0_i32_0 : i32, i32
  }
  func.func @transform_2(%arg0: i32) -> (i32, i32) {
    %c0_i32 = arith.constant 0 : i32
    %c0_i32_0 = arith.constant 0 : i32
    %c0_i32_1 = arith.constant 0 : i32
    return %c0_i32, %c0_i32_0 : i32, i32
  }
  func.func @transform_3(%arg0: i32) -> (i32, i32) {
    %c0_i32 = arith.constant 0 : i32
    %c0_i32_0 = arith.constant 0 : i32
    %c0_i32_1 = arith.constant 0 : i32
    return %c0_i32, %c0_i32_0 : i32, i32
  }
  func.func @transform_4(%arg0: i32) -> (i32, i32) {
    %c0_i32 = arith.constant 0 : i32
    %c0_i32_0 = arith.constant 0 : i32
    %c0_i32_1 = arith.constant 0 : i32
    return %c0_i32, %c0_i32_0 : i32, i32
  }
  func.func @transform_5(%arg0: i32) -> (i32, i32) {
    %c0_i32 = arith.constant 0 : i32
    %c0_i32_0 = arith.constant 0 : i32
    %c0_i32_1 = arith.constant 0 : i32
    return %c0_i32, %c0_i32_0 : i32, i32
  }
  func.func @transform_6(%arg0: i32) -> (i32, i32) {
    %c0_i32 = arith.constant 0 : i32
    %c0_i32_0 = arith.constant 0 : i32
    %c0_i32_1 = arith.constant 0 : i32
    return %c0_i32, %c0_i32_0 : i32, i32
  }
  func.func @transform_7(%arg0: i32) -> (i32, i32) {
    %c0_i32 = arith.constant 0 : i32
    %c0_i32_0 = arith.constant 0 : i32
    %c0_i32_1 = arith.constant 0 : i32
    return %c0_i32, %c0_i32_0 : i32, i32
  }
}

module attributes {stable_mosaic.version = 11 : i64} {
  func.func @_conv_mat_kernel(%arg0: i32, %arg1: memref<72x128xbf16, #tpu.memory_space<vmem>>, %arg2: memref<8x72xbf16, #tpu.memory_space<vmem>>, %arg3: memref<8x1xf32, #tpu.memory_space<vmem>>, %arg4: memref<8x128xf32, #tpu.memory_space<vmem>>) attributes {dimension_semantics = [#tpu.dimension_semantics<parallel>], iteration_bounds = array<i64: 1>, scalar_prefetch = 0 : i64, scratch_operands = 0 : i64, tpu.core_type = #tpu.core_type<tc>, window_params = [{transform_indices = @transform_0, window_bounds = array<i64: 72, 128>}, {pipeline_mode = #tpu.pipeline_mode<synchronous>, transform_indices = @transform_1, window_bounds = array<i64: 8, 72>}, {pipeline_mode = #tpu.pipeline_mode<synchronous>, transform_indices = @transform_2, window_bounds = array<i64: 8, 1>}, {transform_indices = @transform_3, window_bounds = array<i64: 8, 128>}]} {
    %c0 = arith.constant 0 : index
    %c0_0 = arith.constant 0 : index
    %0 = vector.load %arg2[%c0, %c0_0] : memref<8x72xbf16, #tpu.memory_space<vmem>>, vector<8x72xbf16>
    %c0_1 = arith.constant 0 : index
    %c0_2 = arith.constant 0 : index
    %1 = vector.load %arg1[%c0_1, %c0_2] : memref<72x128xbf16, #tpu.memory_space<vmem>>, vector<72x128xbf16>
    %cst = arith.constant dense<0.000000e+00> : vector<8x128xf32>
    %2 = tpu.matmul %0, %1, %cst {dimension_numbers = #tpu.dot_dimension_numbers<[1], [0], [0], [1], [0, 0, 1, 1], [], []>} : vector<8x72xbf16>, vector<72x128xbf16>, vector<8x128xf32> -> vector<8x128xf32>
    %c0_3 = arith.constant 0 : index
    %c0_4 = arith.constant 0 : index
    %3 = vector.load %arg3[%c0_3, %c0_4] : memref<8x1xf32, #tpu.memory_space<vmem>>, vector<8x1xf32>
    %4 = vector.broadcast %3 : vector<8x1xf32> to vector<8x128xf32>
    %5 = arith.addf %2, %4 : vector<8x128xf32>
    %cst_5 = arith.constant 0.000000e+00 : f32
    %6 = vector.broadcast %cst_5 : f32 to vector<8x128xf32>
    %7 = arith.maximumf %5, %6 : vector<8x128xf32>
    %c0_6 = arith.constant 0 : index
    %c0_7 = arith.constant 0 : index
    %8 = vector.load %arg4[%c0_6, %c0_7] : memref<8x128xf32, #tpu.memory_space<vmem>>, vector<8x128xf32>
    tpu.vector_store %arg4[%c0_6, %c0_7], %7 {strides = array<i32>} : memref<8x128xf32, #tpu.memory_space<vmem>>, vector<8x128xf32>,
    return
  }
  func.func @transform_0(%arg0: i32) -> (i32, i32) {
    %c0_i32 = arith.constant 0 : i32
    %c0_i32_0 = arith.constant 0 : i32
    return %c0_i32, %arg0 : i32, i32
  }
  func.func @transform_1(%arg0: i32) -> (i32, i32) {
    %c0_i32 = arith.constant 0 : i32
    %c0_i32_0 = arith.constant 0 : i32
    %c0_i32_1 = arith.constant 0 : i32
    return %c0_i32, %c0_i32_0 : i32, i32
  }
  func.func @transform_2(%arg0: i32) -> (i32, i32) {
    %c0_i32 = arith.constant 0 : i32
    %c0_i32_0 = arith.constant 0 : i32
    %c0_i32_1 = arith.constant 0 : i32
    return %c0_i32, %c0_i32_0 : i32, i32
  }
  func.func @transform_3(%arg0: i32) -> (i32, i32) {
    %c0_i32 = arith.constant 0 : i32
    %c0_i32_0 = arith.constant 0 : i32
    return %c0_i32, %arg0 : i32, i32
  }
}

module attributes {stable_mosaic.version = 11 : i64} {
  func.func @_conv_mat_kernel(%arg0: i32, %arg1: memref<72x256xbf16, #tpu.memory_space<vmem>>, %arg2: memref<16x72xbf16, #tpu.memory_space<vmem>>, %arg3: memref<16x1xf32, #tpu.memory_space<vmem>>, %arg4: memref<16x256xf32, #tpu.memory_space<vmem>>) attributes {dimension_semantics = [#tpu.dimension_semantics<parallel>], iteration_bounds = array<i64: 2>, scalar_prefetch = 0 : i64, scratch_operands = 0 : i64, tpu.core_type = #tpu.core_type<tc>, window_params = [{transform_indices = @transform_0, window_bounds = array<i64: 72, 256>}, {pipeline_mode = #tpu.pipeline_mode<synchronous>, transform_indices = @transform_1, window_bounds = array<i64: 16, 72>}, {pipeline_mode = #tpu.pipeline_mode<synchronous>, transform_indices = @transform_2, window_bounds = array<i64: 16, 1>}, {transform_indices = @transform_3, window_bounds = array<i64: 16, 256>}]} {
    %c0 = arith.constant 0 : index
    %c0_0 = arith.constant 0 : index
    %0 = vector.load %arg2[%c0, %c0_0] : memref<16x72xbf16, #tpu.memory_space<vmem>>, vector<16x72xbf16>
    %c0_1 = arith.constant 0 : index
    %c0_2 = arith.constant 0 : index
    %1 = vector.load %arg1[%c0_1, %c0_2] : memref<72x256xbf16, #tpu.memory_space<vmem>>, vector<72x256xbf16>
    %cst = arith.constant dense<0.000000e+00> : vector<16x256xf32>
    %2 = tpu.matmul %0, %1, %cst {dimension_numbers = #tpu.dot_dimension_numbers<[1], [0], [0], [1], [0, 0, 1, 1], [], []>} : vector<16x72xbf16>, vector<72x256xbf16>, vector<16x256xf32> -> vector<16x256xf32>
    %c0_3 = arith.constant 0 : index
    %c0_4 = arith.constant 0 : index
    %3 = vector.load %arg3[%c0_3, %c0_4] : memref<16x1xf32, #tpu.memory_space<vmem>>, vector<16x1xf32>
    %4 = vector.broadcast %3 : vector<16x1xf32> to vector<16x256xf32>
    %5 = arith.addf %2, %4 : vector<16x256xf32>
    %cst_5 = arith.constant 0.000000e+00 : f32
    %6 = vector.broadcast %cst_5 : f32 to vector<16x256xf32>
    %7 = arith.maximumf %5, %6 : vector<16x256xf32>
    %c0_6 = arith.constant 0 : index
    %c0_7 = arith.constant 0 : index
    %8 = vector.load %arg4[%c0_6, %c0_7] : memref<16x256xf32, #tpu.memory_space<vmem>>, vector<16x256xf32>
    tpu.vector_store %arg4[%c0_6, %c0_7], %7 {strides = array<i32>} : memref<16x256xf32, #tpu.memory_space<vmem>>, vector<16x256xf32>,
    return
  }
  func.func @transform_0(%arg0: i32) -> (i32, i32) {
    %c0_i32 = arith.constant 0 : i32
    %c0_i32_0 = arith.constant 0 : i32
    return %c0_i32, %arg0 : i32, i32
  }
  func.func @transform_1(%arg0: i32) -> (i32, i32) {
    %c0_i32 = arith.constant 0 : i32
    %c0_i32_0 = arith.constant 0 : i32
    %c0_i32_1 = arith.constant 0 : i32
    return %c0_i32, %c0_i32_0 : i32, i32
  }
  func.func @transform_2(%arg0: i32) -> (i32, i32) {
    %c0_i32 = arith.constant 0 : i32
    %c0_i32_0 = arith.constant 0 : i32
    %c0_i32_1 = arith.constant 0 : i32
    return %c0_i32, %c0_i32_0 : i32, i32
  }
  func.func @transform_3(%arg0: i32) -> (i32, i32) {
    %c0_i32 = arith.constant 0 : i32
    %c0_i32_0 = arith.constant 0 : i32
    return %c0_i32, %arg0 : i32, i32
  }
}

module attributes {stable_mosaic.version = 11 : i64} {
  func.func @_conv_mat_kernel(%arg0: i32, %arg1: memref<216x128xbf16, #tpu.memory_space<vmem>>, %arg2: memref<8x216xbf16, #tpu.memory_space<vmem>>, %arg3: memref<8x1xf32, #tpu.memory_space<vmem>>, %arg4: memref<8x128xf32, #tpu.memory_space<vmem>>) attributes {dimension_semantics = [#tpu.dimension_semantics<parallel>], iteration_bounds = array<i64: 1>, scalar_prefetch = 0 : i64, scratch_operands = 0 : i64, tpu.core_type = #tpu.core_type<tc>, window_params = [{transform_indices = @transform_0, window_bounds = array<i64: 216, 128>}, {pipeline_mode = #tpu.pipeline_mode<synchronous>, transform_indices = @transform_1, window_bounds = array<i64: 8, 216>}, {pipeline_mode = #tpu.pipeline_mode<synchronous>, transform_indices = @transform_2, window_bounds = array<i64: 8, 1>}, {transform_indices = @transform_3, window_bounds = array<i64: 8, 128>}]} {
    %c0 = arith.constant 0 : index
    %c0_0 = arith.constant 0 : index
    %0 = vector.load %arg2[%c0, %c0_0] : memref<8x216xbf16, #tpu.memory_space<vmem>>, vector<8x216xbf16>
    %c0_1 = arith.constant 0 : index
    %c0_2 = arith.constant 0 : index
    %1 = vector.load %arg1[%c0_1, %c0_2] : memref<216x128xbf16, #tpu.memory_space<vmem>>, vector<216x128xbf16>
    %cst = arith.constant dense<0.000000e+00> : vector<8x128xf32>
    %2 = tpu.matmul %0, %1, %cst {dimension_numbers = #tpu.dot_dimension_numbers<[1], [0], [0], [1], [0, 0, 1, 1], [], []>} : vector<8x216xbf16>, vector<216x128xbf16>, vector<8x128xf32> -> vector<8x128xf32>
    %c0_3 = arith.constant 0 : index
    %c0_4 = arith.constant 0 : index
    %3 = vector.load %arg3[%c0_3, %c0_4] : memref<8x1xf32, #tpu.memory_space<vmem>>, vector<8x1xf32>
    %4 = vector.broadcast %3 : vector<8x1xf32> to vector<8x128xf32>
    %5 = arith.addf %2, %4 : vector<8x128xf32>
    %cst_5 = arith.constant 0.000000e+00 : f32
    %6 = vector.broadcast %cst_5 : f32 to vector<8x128xf32>
    %7 = arith.maximumf %5, %6 : vector<8x128xf32>
    %c0_6 = arith.constant 0 : index
    %c0_7 = arith.constant 0 : index
    %8 = vector.load %arg4[%c0_6, %c0_7] : memref<8x128xf32, #tpu.memory_space<vmem>>, vector<8x128xf32>
    tpu.vector_store %arg4[%c0_6, %c0_7], %7 {strides = array<i32>} : memref<8x128xf32, #tpu.memory_space<vmem>>, vector<8x128xf32>,
    return
  }
  func.func @transform_0(%arg0: i32) -> (i32, i32) {
    %c0_i32 = arith.constant 0 : i32
    %c0_i32_0 = arith.constant 0 : i32
    return %c0_i32, %arg0 : i32, i32
  }
  func.func @transform_1(%arg0: i32) -> (i32, i32) {
    %c0_i32 = arith.constant 0 : i32
    %c0_i32_0 = arith.constant 0 : i32
    %c0_i32_1 = arith.constant 0 : i32
    return %c0_i32, %c0_i32_0 : i32, i32
  }
  func.func @transform_2(%arg0: i32) -> (i32, i32) {
    %c0_i32 = arith.constant 0 : i32
    %c0_i32_0 = arith.constant 0 : i32
    %c0_i32_1 = arith.constant 0 : i32
    return %c0_i32, %c0_i32_0 : i32, i32
  }
  func.func @transform_3(%arg0: i32) -> (i32, i32) {
    %c0_i32 = arith.constant 0 : i32
    %c0_i32_0 = arith.constant 0 : i32
    return %c0_i32, %arg0 : i32, i32
  }
}

module attributes {stable_mosaic.version = 11 : i64} {
  func.func @_conv_mat_kernel(%arg0: i32, %arg1: memref<216x256xbf16, #tpu.memory_space<vmem>>, %arg2: memref<8x216xbf16, #tpu.memory_space<vmem>>, %arg3: memref<8x1xf32, #tpu.memory_space<vmem>>, %arg4: memref<8x256xf32, #tpu.memory_space<vmem>>) attributes {dimension_semantics = [#tpu.dimension_semantics<parallel>], iteration_bounds = array<i64: 2>, scalar_prefetch = 0 : i64, scratch_operands = 0 : i64, tpu.core_type = #tpu.core_type<tc>, window_params = [{transform_indices = @transform_0, window_bounds = array<i64: 216, 256>}, {pipeline_mode = #tpu.pipeline_mode<synchronous>, transform_indices = @transform_1, window_bounds = array<i64: 8, 216>}, {pipeline_mode = #tpu.pipeline_mode<synchronous>, transform_indices = @transform_2, window_bounds = array<i64: 8, 1>}, {transform_indices = @transform_3, window_bounds = array<i64: 8, 256>}]} {
    %c0 = arith.constant 0 : index
    %c0_0 = arith.constant 0 : index
    %0 = vector.load %arg2[%c0, %c0_0] : memref<8x216xbf16, #tpu.memory_space<vmem>>, vector<8x216xbf16>
    %c0_1 = arith.constant 0 : index
    %c0_2 = arith.constant 0 : index
    %1 = vector.load %arg1[%c0_1, %c0_2] : memref<216x256xbf16, #tpu.memory_space<vmem>>, vector<216x256xbf16>
    %cst = arith.constant dense<0.000000e+00> : vector<8x256xf32>
    %2 = tpu.matmul %0, %1, %cst {dimension_numbers = #tpu.dot_dimension_numbers<[1], [0], [0], [1], [0, 0, 1, 1], [], []>} : vector<8x216xbf16>, vector<216x256xbf16>, vector<8x256xf32> -> vector<8x256xf32>
    %c0_3 = arith.constant 0 : index
    %c0_4 = arith.constant 0 : index
    %3 = vector.load %arg3[%c0_3, %c0_4] : memref<8x1xf32, #tpu.memory_space<vmem>>, vector<8x1xf32>
    %4 = vector.broadcast %3 : vector<8x1xf32> to vector<8x256xf32>
    %5 = arith.addf %2, %4 : vector<8x256xf32>
    %cst_5 = arith.constant 0.000000e+00 : f32
    %6 = vector.broadcast %cst_5 : f32 to vector<8x256xf32>
    %7 = arith.maximumf %5, %6 : vector<8x256xf32>
    %c0_6 = arith.constant 0 : index
    %c0_7 = arith.constant 0 : index
    %8 = vector.load %arg4[%c0_6, %c0_7] : memref<8x256xf32, #tpu.memory_space<vmem>>, vector<8x256xf32>
    tpu.vector_store %arg4[%c0_6, %c0_7], %7 {strides = array<i32>} : memref<8x256xf32, #tpu.memory_space<vmem>>, vector<8x256xf32>,
    return
  }
  func.func @transform_0(%arg0: i32) -> (i32, i32) {
    %c0_i32 = arith.constant 0 : i32
    %c0_i32_0 = arith.constant 0 : i32
    return %c0_i32, %arg0 : i32, i32
  }
  func.func @transform_1(%arg0: i32) -> (i32, i32) {
    %c0_i32 = arith.constant 0 : i32
    %c0_i32_0 = arith.constant 0 : i32
    %c0_i32_1 = arith.constant 0 : i32
    return %c0_i32, %c0_i32_0 : i32, i32
  }
  func.func @transform_2(%arg0: i32) -> (i32, i32) {
    %c0_i32 = arith.constant 0 : i32
    %c0_i32_0 = arith.constant 0 : i32
    %c0_i32_1 = arith.constant 0 : i32
    return %c0_i32, %c0_i32_0 : i32, i32
  }
  func.func @transform_3(%arg0: i32) -> (i32, i32) {
    %c0_i32 = arith.constant 0 : i32
    %c0_i32_0 = arith.constant 0 : i32
    return %c0_i32, %arg0 : i32, i32
  }
}

module attributes {stable_mosaic.version = 11 : i64} {
  func.func @_conv_mat_kernel(%arg0: i32, %arg1: memref<216x1024xbf16, #tpu.memory_space<vmem>>, %arg2: memref<8x216xbf16, #tpu.memory_space<vmem>>, %arg3: memref<8x1xf32, #tpu.memory_space<vmem>>, %arg4: memref<8x1024xf32, #tpu.memory_space<vmem>>) attributes {dimension_semantics = [#tpu.dimension_semantics<parallel>], iteration_bounds = array<i64: 2>, scalar_prefetch = 0 : i64, scratch_operands = 0 : i64, tpu.core_type = #tpu.core_type<tc>, window_params = [{transform_indices = @transform_0, window_bounds = array<i64: 216, 1024>}, {pipeline_mode = #tpu.pipeline_mode<synchronous>, transform_indices = @transform_1, window_bounds = array<i64: 8, 216>}, {pipeline_mode = #tpu.pipeline_mode<synchronous>, transform_indices = @transform_2, window_bounds = array<i64: 8, 1>}, {transform_indices = @transform_3, window_bounds = array<i64: 8, 1024>}]} {
    %c0 = arith.constant 0 : index
    %c0_0 = arith.constant 0 : index
    %0 = vector.load %arg2[%c0, %c0_0] : memref<8x216xbf16, #tpu.memory_space<vmem>>, vector<8x216xbf16>
    %c0_1 = arith.constant 0 : index
    %c0_2 = arith.constant 0 : index
    %1 = vector.load %arg1[%c0_1, %c0_2] : memref<216x1024xbf16, #tpu.memory_space<vmem>>, vector<216x1024xbf16>
    %cst = arith.constant dense<0.000000e+00> : vector<8x1024xf32>
    %2 = tpu.matmul %0, %1, %cst {dimension_numbers = #tpu.dot_dimension_numbers<[1], [0], [0], [1], [0, 0, 1, 1], [], []>} : vector<8x216xbf16>, vector<216x1024xbf16>, vector<8x1024xf32> -> vector<8x1024xf32>
    %c0_3 = arith.constant 0 : index
    %c0_4 = arith.constant 0 : index
    %3 = vector.load %arg3[%c0_3, %c0_4] : memref<8x1xf32, #tpu.memory_space<vmem>>, vector<8x1xf32>
    %4 = vector.broadcast %3 : vector<8x1xf32> to vector<8x1024xf32>
    %5 = arith.addf %2, %4 : vector<8x1024xf32>
    %cst_5 = arith.constant 0.000000e+00 : f32
    %6 = vector.broadcast %cst_5 : f32 to vector<8x1024xf32>
    %7 = arith.maximumf %5, %6 : vector<8x1024xf32>
    %c0_6 = arith.constant 0 : index
    %c0_7 = arith.constant 0 : index
    %8 = vector.load %arg4[%c0_6, %c0_7] : memref<8x1024xf32, #tpu.memory_space<vmem>>, vector<8x1024xf32>
    tpu.vector_store %arg4[%c0_6, %c0_7], %7 {strides = array<i32>} : memref<8x1024xf32, #tpu.memory_space<vmem>>, vector<8x1024xf32>,
    return
  }
  func.func @transform_0(%arg0: i32) -> (i32, i32) {
    %c0_i32 = arith.constant 0 : i32
    %c0_i32_0 = arith.constant 0 : i32
    return %c0_i32, %arg0 : i32, i32
  }
  func.func @transform_1(%arg0: i32) -> (i32, i32) {
    %c0_i32 = arith.constant 0 : i32
    %c0_i32_0 = arith.constant 0 : i32
    %c0_i32_1 = arith.constant 0 : i32
    return %c0_i32, %c0_i32_0 : i32, i32
  }
  func.func @transform_2(%arg0: i32) -> (i32, i32) {
    %c0_i32 = arith.constant 0 : i32
    %c0_i32_0 = arith.constant 0 : i32
    %c0_i32_1 = arith.constant 0 : i32
    return %c0_i32, %c0_i32_0 : i32, i32
  }
  func.func @transform_3(%arg0: i32) -> (i32, i32) {
    %c0_i32 = arith.constant 0 : i32
    %c0_i32_0 = arith.constant 0 : i32
    return %c0_i32, %arg0 : i32, i32
  }
}

</mosaic_0001>

<bundles_post_ra>
// kernel: csfi3_forward.8
= control target key start
LH: loop header
LB: loop body
LE: loop exit
PB: predicated region body
PF: predicated region fallthrough
CT: control target
= control target key end

     0   :  { %13 = vsyncpa [#allocation3], 0  ;;  %s1041_s27 = smov [#allocation2]   ;;  %s1042_s29 = smov 128   ;;  %s1614_s0 = inlined_call_operand.vmem [shape: bf16[8,2,64], index: 0, kind: input, shape index: {}]   ;;  %s1615_s1 = inlined_call_operand.vmem [shape: bf16[16,8], index: 1, kind: input, shape index: {}]   ;;  %s1616_s2 = inlined_call_operand.hbm [shape: bf16[64,256], index: 2, kind: input, shape index: {}]   ;;  %s1617_s3 = inlined_call_operand.vmem [shape: bf16[64,1024], index: 3, kind: input, shape index: {}]   ;;  %s1618_s4 = inlined_call_operand.vmem [shape: f32[8,1], index: 4, kind: input, shape index: {}]   ;;  %s1619_s5 = inlined_call_operand.vmem [shape: f32[8,1], index: 5, kind: input, shape index: {}]   ;;  %s1620_s6 = inlined_call_operand.vmem [shape: f32[8,512], index: 6, kind: output, shape index: {0}]   ;;  %s1621_s7 = inlined_call_operand.vmem [shape: f32[8,2048], index: 7, kind: output, shape index: {1}]  }
   0x1   :  { %s22_s26 = sshll.u32 %s1616_s2, 4  ;;  %s24_s28 = sshll.u32 %s1041_s27, 4  ;;  %s23_s26 = int_to_ptr.hbm [resolvable:$true] %s22_s26  ;;  %s25_s28 = int_to_ptr.vmem [resolvable:$true] %s24_s28 }
   0x2   :  { %s1043_s30 = smov 8  }
   0x3   :  { %30 = dma.hbm_to_vmem [thread:$0]  %s23_s26, 1024, %s25_s28, [#allocation3], %s1042_s29, %s1042_s29, %s1043_s30  }
   0x4   :  { %1039 = dma.done.wait [#allocation3], 1024  }
   0x5   :  { %1040 = vsyncadd [#allocation3], 4294966272  ;;  %v42_v0 = vld [vmem:[%s1614_s0] sm:$0x1]  ;;  %v43_v1 = vld [vmem:[%s1614_s0 + $0x1] sm:$0x1] }
   0x6   :  { %100 = vst [vmem:[#allocation1] ss:$9 sm:$0xff] %v42_v0  ;;  %v44_v3 = vld [vmem:[%s1614_s0 + $0x2] sm:$0x1]  ;;  %v45_v5 = vld [vmem:[%s1614_s0 + $0x3] sm:$0x1] }
   0x7   :  { %v46_v7 = vld [vmem:[%s1614_s0 + $0x4] sm:$0x1]  ;;  %v1106_v9 = vld [vmem:[%s1614_s0 + $0x5] sm:$0x1]  ;;  %v1112_v12 = vld [vmem:[%s1614_s0 + $0x6] sm:$0x1] }
   0x8   :  { %vm140_vm0 = vcmask 1041409   ;;  %vm143_vm1 = vcmask 1042434   ;;  %v1119_v22 = vld [vmem:[%s1614_s0 + $0x7] sm:$0x1]  ;;  %vm146_vm2 = vcmask 1043459   ;;  %vm149_vm3 = vcmask 1044484  }
   0x9   :  { %vm152_vm4 = vcmask 1045509   ;;  %vm155_vm5 = vcmask 1046534   ;;  %vm158_vm6 = vcmask 1047559   ;;  %vm165_vm7 = vcmask 1043456   ;;  %v1132_v41 = vld [vmem:[%s1615_s1] sm:$0xff] }
   0xa   :  { %vm161_vm8 = vcmask 64512   ;;  %v814_v56 = vld [vmem:[#allocation2 + $0x30] sm:$0xf]  ;;  %v977_v57 = vld [vmem:[#allocation2 + $0x34] sm:$0xf0]  ;;  %vm230_vm9 = vcmask 523264  }
   0xb   :  { %v1140_v59 = vor.u32 %v977_v57, %v814_v56  ;;  %v976_v60 = vld [vmem:[#allocation2 + $0x34] sm:$0xf]  ;;  %v816_v61 = vld [vmem:[#allocation2 + $0x38] sm:$0xf0]  ;;  %v806_v63 = vld [vmem:[#allocation2 + $0x20] sm:$0xf] }
   0xc   :  { %v1142_v62 = vor.u32 %v976_v60, %v816_v61  ;;  %v982_v60 = vld [vmem:[%s1617_s3 + $0x1c] sm:$0xf0]  ;;  %v978_v61 = vld [vmem:[%s1617_s3 + $0x4] sm:$0xf] }
   0xd   :  { %v101_v2 = vld [vmem:[#allocation1] sm:$0xf]  ;;  %238 = vmatpush.bf16.msra.mxu1 %v1140_v59 }
   0xe   :  { %104 = vst [vmem:[#allocation1] ss:$9 sm:$0xff] %v43_v1  ;;  %v131_v14 = vunpack.c.l.b16 %v101_v2  ;;  %251 = vmatpush.bf16.msra.mxu2 %v1142_v62 }
  0x15   :  { %v105_v4 = vld [vmem:[#allocation1] sm:$0xf] }
  0x16   :  { %108 = vst [vmem:[#allocation1] ss:$9 sm:$0xff] %v44_v3  ;;  %v132_v11 = vunpack.c.l.b16 %v105_v4  ;;  %v808_v4 = vld [vmem:[#allocation2 + $0x28] sm:$0xf0] }
  0x18   :  { %v139_v15 = vrot.slane %v132_v11, 7  ;;  %v920_v11 = vld [vmem:[%s1617_s3 + $0xc0] sm:$0xf] }
  0x1a   :  { %v141_v19 = vsel %vm140_vm0, %v139_v15, %v131_v14  ;;  %v1002_v14 = vld [vmem:[%s1617_s3 + $0xc4] sm:$0xf] }
  0x1d   :  { %v109_v6 = vld [vmem:[#allocation1] sm:$0xf] }
  0x1e   :  { %112 = vst [vmem:[#allocation1] ss:$9 sm:$0xff] %v45_v5  ;;  %v133_v13 = vunpack.c.l.b16 %v109_v6 }
  0x20   :  { %v142_v18 = vrot.slane %v133_v13, 6  ;;  %v1006_v13 = vld [vmem:[%s1617_s3 + $0xdc] sm:$0xf0] }
  0x21   :  { %v1160_v15 = vor.u32 %v1006_v13, %v920_v11  ;;  %v1008_v11 = vld [vmem:[%s1617_s3 + $0xec] sm:$0xf0]  ;;  %v864_v13 = vld [vmem:[%s1617_s3 + $0x48] sm:$0xf] }
  0x22   :  { %v144_v23 = vsel %vm143_vm1, %v142_v18, %v141_v19 }
  0x23   :  { %436 = vmatpush.bf16.msra.mxu3 %v1160_v15 }
  0x25   :  { %v113_v8 = vld [vmem:[#allocation1] sm:$0xf] }
  0x26   :  { %116 = vst [vmem:[#allocation1] ss:$9 sm:$0xff] %v46_v7  ;;  %v134_v17 = vunpack.c.l.b16 %v113_v8  ;;  %v972_v8 = vld [vmem:[#allocation2 + $0x14] sm:$0xf] }
  0x28   :  { %v145_v21 = vrot.slane %v134_v17, 5 }
  0x2a   :  { %v147_v27 = vsel %vm146_vm2, %v145_v21, %v144_v23 }
  0x2d   :  { %v117_v10 = vld [vmem:[#allocation1] sm:$0xf] }
  0x2e   :  { %120 = vst [vmem:[#allocation1] ss:$9 sm:$0xff] %v1106_v9  ;;  %v135_v20 = vunpack.c.l.b16 %v117_v10 }
  0x30   :  { %v148_v26 = vrot.slane %v135_v20, 4 }
  0x32   :  { %v150_v30 = vsel %vm149_vm3, %v148_v26, %v147_v27 }
  0x35   :  { %v121_v16 = vld [vmem:[#allocation1] sm:$0xf] }
  0x36   :  { %124 = vst [vmem:[#allocation1] ss:$9 sm:$0xff] %v1112_v12  ;;  %v136_v24 = vunpack.c.l.b16 %v121_v16  ;;  %v922_v16 = vld [vmem:[%s1617_s3 + $0xe0] sm:$0xf0] }
  0x37   :  { %v1168_v18 = vor.u32 %v1002_v14, %v922_v16  ;;  %v991_v16 = vld [vmem:[%s1617_s3 + $0x64] sm:$0xf0] }
  0x38   :  { %v151_v29 = vrot.slane %v136_v24, 3 }
  0x3a   :  { %v153_v32 = vsel %vm152_vm4, %v151_v29, %v150_v30 }
  0x3d   :  { %v125_v25 = vld [vmem:[#allocation1] sm:$0xf] }
  0x3e   :  { %128 = vst [vmem:[#allocation1] ss:$9 sm:$0xff] %v1119_v22  ;;  %v137_v28 = vunpack.c.l.b16 %v125_v25 }
  0x40   :  { %v154_v31 = vrot.slane %v137_v28, 2 }
  0x42   :  { %v156_v35 = vsel %vm155_vm5, %v154_v31, %v153_v32 }
  0x45   :  { %v129_v33 = vld [vmem:[#allocation1] sm:$0xf] }
  0x46   :  { %v138_v34 = vunpack.c.l.b16 %v129_v33  ;;  %552 = vst [vmem:[#allocation1] ss:$9 sm:$0xff] %v42_v0  ;;  %v975_v0 = vld [vmem:[#allocation2 + $0x24] sm:$0xf0] }
  0x48   :  { %v157_v36 = vrot.slane %v138_v34, 1  ;;  %v790_v34 = vld [vmem:[#allocation2] sm:$0xf] }
  0x4a   :  { %v159_v37 = vsel %vm158_vm6, %v157_v36, %v156_v35  ;;  %v971_v35 = vld [vmem:[#allocation2 + $0x4] sm:$0xf0]  ;;  %v970_v36 = vld [vmem:[#allocation2 + $0x4] sm:$0xf] }
  0x4b   :  { %v160_v38 = vpack.c.b16 %v159_v37, %v159_v37  ;;  %v1185_v37 = vor.u32 %v971_v35, %v790_v34  ;;  %v983_v34 = vld [vmem:[%s1617_s3 + $0x24] sm:$0xf0]  ;;  %v979_v35 = vld [vmem:[%s1617_s3 + $0xc] sm:$0xf] }
  0x4d   :  { %v167_v39 = vsel %vm165_vm7, %v160_v38, 0  ;;  %v553_v40 = vld [vmem:[#allocation1] sm:$0xf]  ;;  %v792_v38 = vld [vmem:[#allocation2 + $0x8] sm:$0xf0] }
  0x4e   :  { %176 = vmatpush.bf16.msra.mxu0 %v167_v39  ;;  %555 = vst [vmem:[#allocation1] ss:$9 sm:$0xff] %v43_v1  ;;  %v576_v45 = vunpack.c.l.b16 %v553_v40  ;;  %v974_v1 = vld [vmem:[#allocation2 + $0x24] sm:$0xf]  ;;  %v998_v39 = vld [vmem:[%s1617_s3 + $0x9c] sm:$0xf0]  ;;  %v1193_v40 = vor.u32 %v970_v36, %v792_v38 }
  0x4f   :  { %v1148_v6 = vor.u32 %v974_v1, %v808_v4  ;;  %v896_v1 = vld [vmem:[%s1617_s3 + $0x88] sm:$0xf]  ;;  %v834_v36 = vld [vmem:[%s1617_s3 + $0x28] sm:$0xf0] }
  0x50   :  { %v584_v49 = vrot.slane %v576_v45, 1 }
  0x51   :  { %787 = vmatmul.msk.bf16.vlgmr.msra.gmra.mxu0 %vm161_vm8, %v1132_v41  ;;  %252 = vmatpush.bf16.msra.mxu2 %v1148_v6 }
  0x52   :  { %449 = vmatpush.bf16.msrb.mxu0 %v1168_v18 }
  0x55   :  { %v556_v42 = vld [vmem:[#allocation1] sm:$0xf] }
  0x56   :  { %558 = vst [vmem:[#allocation1] ss:$9 sm:$0xff] %v44_v3  ;;  %v577_v46 = vunpack.c.l.b16 %v556_v42  ;;  %v1145_v3 = vor.u32 %v975_v0, %v806_v63  ;;  %v826_v0 = vld [vmem:[%s1617_s3 + $0x20] sm:$0xf0] }
  0x57   :  { %v1265_v4 = vor.u32 %v978_v61, %v826_v0  ;;  %v842_v0 = vld [vmem:[%s1617_s3 + $0x30] sm:$0xf0] }
  0x58   :  { %v585_v52 = vsel %vm140_vm0, %v577_v46, %v584_v49  ;;  %239 = vmatpush.bf16.msra.mxu1 %v1145_v3  ;;  %v856_v46 = vld [vmem:[%s1617_s3 + $0x40] sm:$0xf]  ;;  %v986_v49 = vld [vmem:[%s1617_s3 + $0x44] sm:$0xf] }
  0x5d   :  { %v559_v43 = vld [vmem:[#allocation1] sm:$0xf] }
  0x5e   :  { %561 = vst [vmem:[#allocation1] ss:$9 sm:$0xff] %v45_v5  ;;  %v578_v47 = vunpack.c.l.b16 %v559_v43  ;;  %v798_v5 = vld [vmem:[#allocation2 + $0x10] sm:$0xf]  ;;  %v994_v43 = vld [vmem:[%s1617_s3 + $0x84] sm:$0xf] }
  0x60   :  { %v586_v50 = vrot.slane %v578_v47, 7  ;;  %v990_v47 = vld [vmem:[%s1617_s3 + $0x5c] sm:$0xf0] }
  0x62   :  { %v587_v53 = vsel %vm143_vm1, %v586_v50, %v585_v52  ;;  %v858_v50 = vld [vmem:[%s1617_s3 + $0x60] sm:$0xf0] }
  0x63   :  { %v1226_v52 = vor.u32 %v986_v49, %v858_v50  ;;  %v988_v49 = vld [vmem:[%s1617_s3 + $0x54] sm:$0xf] }
  0x65   :  { %v562_v44 = vld [vmem:[#allocation1] sm:$0xf] }
  0x66   :  { %564 = vst [vmem:[#allocation1] ss:$9 sm:$0xff] %v46_v7  ;;  %v579_v48 = vunpack.c.l.b16 %v562_v44  ;;  %v973_v7 = vld [vmem:[#allocation2 + $0x14] sm:$0xf0]  ;;  %v890_v44 = vld [vmem:[%s1617_s3 + $0xa0] sm:$0xf0] }
  0x67   :  { %v1166_v17 = vor.u32 %v973_v7, %v798_v5  ;;  %v1204_v45 = vor.u32 %v994_v43, %v890_v44  ;;  %v995_v7 = vld [vmem:[%s1617_s3 + $0x8c] sm:$0xf]  ;;  %v1348_v43 = vor.u32 %v979_v35, %v834_v36  ;;  %v882_v35 = vld [vmem:[%s1617_s3 + $0x78] sm:$0xf0] }
  0x68   :  { %v588_v51 = vrot.slane %v579_v48, 6  ;;  %v1215_v48 = vor.u32 %v990_v47, %v856_v46  ;;  %v872_v46 = vld [vmem:[%s1617_s3 + $0x50] sm:$0xf] }
  0x69   :  { %240 = vmatpush.bf16.msra.mxu1 %v1166_v17  ;;  %450 = vmatpush.bf16.msrb.mxu0 %v1204_v45  ;;  %v992_v47 = vld [vmem:[%s1617_s3 + $0x6c] sm:$0xf0] }
  0x6a   :  { %v589_v54 = vsel %vm146_vm2, %v588_v51, %v587_v53  ;;  %v928_v51 = vld [vmem:[%s1617_s3 + $0xc8] sm:$0xf]  ;;  %v1364_v50 = vor.u32 %v992_v47, %v872_v46  ;;  %v848_v47 = vld [vmem:[%s1617_s3 + $0x18] sm:$0xf] }
  0x6b   :  { %v1007_v53 = vld [vmem:[%s1617_s3 + $0xe4] sm:$0xf0] }
  0x6c   :  { %v1237_v56 = vor.u32 %v1007_v53, %v928_v51  ;;  %v874_v51 = vld [vmem:[%s1617_s3 + $0x70] sm:$0xf0] }
  0x6d   :  { %v565_v55 = vld [vmem:[#allocation1] sm:$0xf]  ;;  %241 = vmatpush.bf16.msra.mxu1 %v1185_v37  ;;  %451 = vmatpush.bf16.msrb.mxu0 %v1226_v52  ;;  %v1370_v53 = vor.u32 %v988_v49, %v874_v51  ;;  %v985_v49 = vld [vmem:[%s1617_s3 + $0x34] sm:$0xf0]  ;;  %v981_v51 = vld [vmem:[%s1617_s3 + $0x1c] sm:$0xf] }
  0x6e   :  { %567 = vst [vmem:[#allocation1] ss:$9 sm:$0xff] %v1106_v9  ;;  %v580_v58 = vunpack.c.l.b16 %v565_v55  ;;  %v800_v9 = vld [vmem:[#allocation2 + $0x18] sm:$0xf0]  ;;  %v930_v55 = vld [vmem:[%s1617_s3 + $0xe8] sm:$0xf0] }
  0x6f   :  { %v1171_v20 = vor.u32 %v972_v8, %v800_v9  ;;  %v898_v8 = vld [vmem:[%s1617_s3 + $0xa8] sm:$0xf0] }
  0x70   :  { %v590_v2 = vrot.slane %v580_v58, 5  ;;  %v824_v58 = vld [vmem:[%s1617_s3] sm:$0xf]  ;;  %v1275_v9 = vor.u32 %v995_v7, %v898_v8  ;;  %v1009_v7 = vld [vmem:[%s1617_s3 + $0xf4] sm:$0xf0] }
  0x71   :  { %253 = vmatpush.bf16.msra.mxu2 %v1171_v20  ;;  %462 = vmatpush.bf16.msrb.mxu1 %v1237_v56  ;;  %v1253_v63 = vor.u32 %v982_v60, %v824_v58  ;;  %v984_v58 = vld [vmem:[%s1617_s3 + $0x2c] sm:$0xf0]  ;;  %v980_v60 = vld [vmem:[%s1617_s3 + $0x14] sm:$0xf]  ;;  %v1005_v8 = vld [vmem:[%s1617_s3 + $0xdc] sm:$0xf] }
  0x72   :  { %v591_v10 = vsel %vm149_vm3, %v590_v2, %v589_v54  ;;  %v1003_v54 = vld [vmem:[%s1617_s3 + $0xcc] sm:$0xf]  ;;  %v999_v2 = vld [vmem:[%s1617_s3 + $0xa4] sm:$0xf0]  ;;  %452 = vmatpush.bf16.msrb.mxu0 %v1265_v4 }
  0x73   :  { %v1239_v57 = vor.u32 %v1003_v54, %v930_v55  ;;  %v1267_v5 = vor.u32 %v999_v2, %v896_v1  ;;  %v93_v54 = vld [vmem:[%s1619_s5] sm:$0xff]  ;;  %v840_v55 = vld [vmem:[%s1617_s3 + $0x10] sm:$0xf]  ;;  %v1391_v1 = vor.u32 %v980_v60, %v842_v0  ;;  %v944_v2 = vld [vmem:[%s1617_s3 + $0xd8] sm:$0xf] }
  0x74   :  { %v1385_v61 = vor.u32 %v984_v58, %v840_v55  ;;  %v1465_v55 = vor.u32 %v985_v49, %v848_v47 }
  0x75   :  { %v568_v19 = vld [vmem:[#allocation1] sm:$0xf]  ;;  %254 = vmatpush.bf16.msra.mxu2 %v1193_v40  ;;  %463 = vmatpush.bf16.msrb.mxu1 %v1267_v5 }
  0x76   :  { %570 = vst [vmem:[#allocation1] ss:$9 sm:$0xff] %v1112_v12  ;;  %v581_v21 = vunpack.c.l.b16 %v568_v19  ;;  %v987_v19 = vld [vmem:[%s1617_s3 + $0x4c] sm:$0xf] }
  0x78   :  { %v592_v23 = vrot.slane %v581_v21, 4  ;;  %v866_v21 = vld [vmem:[%s1617_s3 + $0x68] sm:$0xf0] }
  0x79   :  { %475 = vmatpush.bf16.msrb.mxu2 %v1239_v57 }
  0x7a   :  { %v593_v24 = vsel %vm152_vm4, %v592_v23, %v591_v10  ;;  %v936_v10 = vld [vmem:[%s1617_s3 + $0xd0] sm:$0xf]  ;;  %v1301_v23 = vor.u32 %v991_v16, %v864_v13  ;;  %v1407_v13 = vor.u32 %v1009_v7, %v944_v2 }
  0x7b   :  { %v1289_v14 = vor.u32 %v1008_v11, %v936_v10  ;;  %v946_v10 = vld [vmem:[%s1617_s3 + $0xf8] sm:$0xf0] }
  0x7c   :  { %464 = vmatpush.bf16.msrb.mxu1 %v1301_v23  ;;  %v1409_v16 = vor.u32 %v1005_v8, %v946_v10 }
  0x7d   :  { %v571_v25 = vld [vmem:[#allocation1] sm:$0xf]  ;;  %476 = vmatpush.bf16.msrb.mxu2 %v1275_v9 }
  0x7e   :  { %573 = vst [vmem:[#allocation1] ss:$9 sm:$0xff] %v1119_v22  ;;  %v582_v26 = vunpack.c.l.b16 %v571_v25  ;;  %v888_v22 = vld [vmem:[%s1617_s3 + $0x80] sm:$0xf]  ;;  %v1004_v25 = vld [vmem:[%s1617_s3 + $0xd4] sm:$0xf] }
  0x7f   :  { %v1195_v42 = vor.u32 %v998_v39, %v888_v22  ;;  %v996_v22 = vld [vmem:[%s1617_s3 + $0x94] sm:$0xf] }
  0x80   :  { %v594_v27 = vrot.slane %v582_v26, 3  ;;  %v938_v26 = vld [vmem:[%s1617_s3 + $0xf0] sm:$0xf0] }
  0x81   :  { %437 = vmatpush.bf16.msra.mxu3 %v1195_v42  ;;  %v906_v39 = vld [vmem:[%s1617_s3 + $0xb0] sm:$0xf0] }
  0x82   :  { %v595_v28 = vsel %vm155_vm5, %v594_v27, %v593_v24  ;;  %v1303_v24 = vor.u32 %v987_v19, %v866_v21  ;;  %v92_v27 = vld [vmem:[%s1618_s4] sm:$0xff]  ;;  %v1350_v44 = vor.u32 %v996_v22, %v906_v39  ;;  %v912_v19 = vld [vmem:[%s1617_s3 + $0x98] sm:$0xf] }
  0x84   :  { %477 = vmatpush.bf16.msrb.mxu2 %v1303_v24 }
  0x85   :  { %v574_v29 = vld [vmem:[#allocation1] sm:$0xf]  ;;  %438 = vmatpush.bf16.msra.mxu3 %v1215_v48 }
  0x86   :  { %v583_v30 = vunpack.c.l.b16 %v574_v29  ;;  %v1044_v29 = vmov 0  }
  0x87   :  { %1014 = vset.pattern.permute.xlu0 %v1044_v29 }
  0x88   :  { %v596_v12 = vrot.slane %v583_v30, 2  ;;  %v904_v30 = vld [vmem:[%s1617_s3 + $0x90] sm:$0xf]  ;;  %187 = vperm.xlu0 %1014, %v92_v27   ;;  %478 = vmatpush.bf16.msrb.mxu2 %v1348_v43  ;;  %v914_v27 = vld [vmem:[%s1617_s3 + $0xb8] sm:$0xf0] }
  0x89   :  { %439 = vmatpush.bf16.msra.mxu3 %v1253_v63 }
  0x8a   :  { %v597_v31 = vsel %vm158_vm6, %v596_v12, %v595_v28  ;;  %v1315_v28 = vor.u32 %v1004_v25, %v938_v26  ;;  %v1000_v12 = vld [vmem:[%s1617_s3 + $0xac] sm:$0xf0]  ;;  %v1001_v25 = vld [vmem:[%s1617_s3 + $0xb4] sm:$0xf0]  ;;  %v997_v26 = vld [vmem:[%s1617_s3 + $0x9c] sm:$0xf] }
  0x8b   :  { %v598_v32 = vpack.c.b16 %v597_v31, %v597_v31  ;;  %v832_v31 = vld [vmem:[%s1617_s3 + $0x8] sm:$0xf]  ;;  %v1427_v29 = vor.u32 %v1001_v25, %v912_v19 }
  0x8c   :  { %501 = vmatpush.bf16.msra.mxu0 %v1315_v28  ;;  %v1339_v38 = vor.u32 %v983_v34, %v832_v31  ;;  %v993_v31 = vld [vmem:[%s1617_s3 + $0x74] sm:$0xf0]  ;;  %v989_v34 = vld [vmem:[%s1617_s3 + $0x5c] sm:$0xf] }
  0x8d   :  { %v1183_v33 = vsel %vm165_vm7, %v598_v32, 0  ;;  %488 = vmatpush.bf16.msrb.mxu3 %v1289_v14  ;;  %v1326_v32 = vor.u32 %v1000_v12, %v904_v30  ;;  %v1429_v30 = vor.u32 %v997_v26, %v914_v27  ;;  %v880_v12 = vld [vmem:[%s1617_s3 + $0x58] sm:$0xf]  ;;  %v1447_v46 = vor.u32 %v989_v34, %v882_v35 }
  0x8e   :  { %465 = vmatpush.bf16.msrb.mxu1 %v1339_v38  ;;  %v1445_v22 = vor.u32 %v993_v31, %v880_v12 }
  0x90   :  { %502 = vmatpush.bf16.msra.mxu0 %v1350_v44  ;;  %266 = vperm.xlu0 %1014, %v93_v54   ;;  %v850_v54 = vld [vmem:[%s1617_s3 + $0x38] sm:$0xf0] }
  0x91   :  { %489 = vmatpush.bf16.msrb.mxu3 %v1326_v32  ;;  %v1468_v58 = vor.u32 %v981_v51, %v850_v54 }
  0x94   :  { %503 = vmatpush.bf16.msra.mxu0 %v1370_v53 }
  0x95   :  { %490 = vmatpush.bf16.msrb.mxu3 %v1364_v50 }
  0x98   :  { %504 = vmatpush.bf16.msra.mxu0 %v1391_v1 }
  0x99   :  { %491 = vmatpush.bf16.msrb.mxu3 %v1385_v61 }
  0xce   :  { %v178_v11 = vpop.f32.mrf.mxu0 }
  0xcf   :  { %v183_v21 = vpack.c.bf16 %v178_v11, %v178_v11 }
  0xd1   :  { %820 = vmatmul.msk.bf16.vlgmr.msra.gmra.mxu1 %vm230_vm9, %v183_v21  ;;  %821 = vmatmul.msk.bf16.vlgmr.msra.gmra.mxu2 %vm230_vm9, %v183_v21 }
  0xd2   :  { %514 = vmatpush.bf16.msra.mxu1 %v1407_v13  ;;  %527 = vmatpush.bf16.msra.mxu2 %v1409_v16 }
  0xd6   :  { %v180_v36 = vpop.f32.mrf.mxu0  ;;  %515 = vmatpush.bf16.msra.mxu1 %v1427_v29  ;;  %528 = vmatpush.bf16.msra.mxu2 %v1429_v30 }
  0xd7   :  { %v184_v39 = vpack.c.bf16 %v180_v36, %v180_v36 }
  0xd9   :  { %950 = vmatmul.msk.bf16.vlgmr.msra.gmra.mxu3 %vm230_vm9, %v184_v39  ;;  %951 = vmatmul.msk.bf16.vlgmr.msrb.gmra.mxu0 %vm230_vm9, %v184_v39 }
  0xda   :  { %609 = vmatpush.bf16.msra.mxu3 %v1183_v33  ;;  %516 = vmatpush.bf16.msra.mxu1 %v1445_v22 }
  0xdb   :  { %529 = vmatpush.bf16.msra.mxu2 %v1447_v46  ;;  %625 = vmatpush.bf16.msrb.mxu0 %v1140_v59 }
  0xde   :  { %517 = vmatpush.bf16.msra.mxu1 %v1465_v55 }
  0xdf   :  { %530 = vmatpush.bf16.msra.mxu2 %v1468_v58  ;;  %626 = vmatpush.bf16.msrb.mxu0 %v1145_v3 }
  0xe1   :  { %952 = vmatmul.msk.bf16.vlgmr.msrb.gmra.mxu1 %vm230_vm9, %v184_v39  ;;  %953 = vmatmul.msk.bf16.vlgmr.msrb.gmra.mxu2 %vm230_vm9, %v184_v39 }
  0xe2   :  { %638 = vmatpush.bf16.msrb.mxu1 %v1142_v62 }
  0xe3   :  { %658 = vmatpush.bf16.msrb.mxu2 %v1160_v15  ;;  %627 = vmatpush.bf16.msrb.mxu0 %v1166_v17 }
  0xe6   :  { %639 = vmatpush.bf16.msrb.mxu1 %v1148_v6 }
  0xe7   :  { %659 = vmatpush.bf16.msrb.mxu2 %v1195_v42  ;;  %628 = vmatpush.bf16.msrb.mxu0 %v1185_v37 }
  0xe9   :  { %954 = vmatmul.msk.bf16.vlgmr.msrb.gmra.mxu3 %vm230_vm9, %v184_v39  ;;  %955 = vmatmul.msk.bf16.vlgmr.msra.gmra.mxu0 %vm230_vm9, %v184_v39 }
  0xea   :  { %640 = vmatpush.bf16.msrb.mxu1 %v1171_v20  ;;  %671 = vmatpush.bf16.msrb.mxu3 %v1168_v18 }
  0xeb   :  { %684 = vmatpush.bf16.msra.mxu0 %v1237_v56  ;;  %660 = vmatpush.bf16.msrb.mxu2 %v1215_v48 }
  0xee   :  { %641 = vmatpush.bf16.msrb.mxu1 %v1193_v40  ;;  %672 = vmatpush.bf16.msrb.mxu3 %v1204_v45 }
  0xef   :  { %685 = vmatpush.bf16.msra.mxu0 %v1267_v5  ;;  %661 = vmatpush.bf16.msrb.mxu2 %v1253_v63 }
  0xf1   :  { %956 = vmatmul.msk.bf16.vlgmr.msra.gmra.mxu1 %vm230_vm9, %v184_v39  ;;  %957 = vmatmul.msk.bf16.vlgmr.msra.gmra.mxu2 %vm230_vm9, %v184_v39 }
  0xf2   :  { %697 = vmatpush.bf16.msra.mxu1 %v1239_v57  ;;  %673 = vmatpush.bf16.msrb.mxu3 %v1226_v52 }
  0xf3   :  { %686 = vmatpush.bf16.msra.mxu0 %v1301_v23  ;;  %710 = vmatpush.bf16.msra.mxu2 %v1289_v14 }
  0xf6   :  { %698 = vmatpush.bf16.msra.mxu1 %v1275_v9  ;;  %674 = vmatpush.bf16.msrb.mxu3 %v1265_v4 }
  0xf7   :  { %687 = vmatpush.bf16.msra.mxu0 %v1339_v38  ;;  %711 = vmatpush.bf16.msra.mxu2 %v1326_v32 }
  0xf9   :  { %958 = vmatmul.msk.bf16.vlgmr.msra.gmra.mxu3 %vm161_vm8, %v1132_v41 }
  0xfa   :  { %699 = vmatpush.bf16.msra.mxu1 %v1303_v24  ;;  %723 = vmatpush.bf16.msra.mxu3 %v1315_v28  ;;  %v1512_v59 = vpop.permute.xlu0 %187 }
  0xfb   :  { %712 = vmatpush.bf16.msra.mxu2 %v1364_v50 }
  0xfe   :  { %700 = vmatpush.bf16.msra.mxu1 %v1348_v43  ;;  %724 = vmatpush.bf16.msra.mxu3 %v1350_v44 }
  0xff   :  { %713 = vmatpush.bf16.msra.mxu2 %v1385_v61 }
 0x102   :  { %725 = vmatpush.bf16.msra.mxu3 %v1370_v53  ;;  %v1518_v15 = vpop.permute.xlu0 %266 }
 0x106   :  { %726 = vmatpush.bf16.msra.mxu3 %v1391_v1 }
 0x14e   :  { %v243_v62 = vpop.f32.mrf.mxu1 }
 0x14f   :  { %v244_v41 = vadd.f32 %v243_v62, %v1512_v59 }
 0x151   :  { %v260_v3 = vmax.f32 %v244_v41, 0.0 }
 0x153   :  { %262 = vst [vmem:[%s1620_s6] sm:$0xff] %v260_v3 }
 0x154   :  { %v256_v6 = vpop.f32.mrf.mxu2 }
 0x155   :  { %v257_v17 = vadd.f32 %v256_v6, %v1512_v59 }
 0x156   :  { %v245_v18 = vpop.f32.mrf.mxu1  ;;  %v454_v20 = vpop.f32.mrf.mxu0 }
 0x157   :  { %v261_v33 = vmax.f32 %v257_v17, 0.0  ;;  %v455_v37 = vadd.f32 %v454_v20, %v1518_v15 }
 0x159   :  { %263 = vst [vmem:[%s1620_s6 + $0x8] sm:$0xff] %v261_v33  ;;  %v537_v40 = vmax.f32 %v455_v37, 0.0 }
 0x15b   :  { %545 = vst [vmem:[%s1621_s7 + $0x8] sm:$0xff] %v537_v40 }
 0x15c   :  { %v258_v42 = vpop.f32.mrf.mxu2  ;;  %v441_v45 = vpop.f32.mrf.mxu3 }
 0x15d   :  { %v442_v48 = vadd.f32 %v441_v45, %v1518_v15 }
 0x15e   :  { %v456_v52 = vpop.f32.mrf.mxu0  ;;  %v467_v56 = vpop.f32.mrf.mxu1 }
 0x15f   :  { %v536_v57 = vmax.f32 %v442_v48, 0.0  ;;  %v468_v63 = vadd.f32 %v467_v56, %v1518_v15 }
 0x161   :  { %544 = vst [vmem:[%s1621_s7] sm:$0xff] %v536_v57  ;;  %v538_v4 = vmax.f32 %v468_v63, 0.0 }
 0x163   :  { %546 = vst [vmem:[%s1621_s7 + $0x10] sm:$0xff] %v538_v4 }
 0x164   :  { %v443_v5 = vpop.f32.mrf.mxu3  ;;  %v480_v9 = vpop.f32.mrf.mxu2 }
 0x165   :  { %v481_v14 = vadd.f32 %v480_v9, %v1518_v15 }
 0x166   :  { %v469_v23 = vpop.f32.mrf.mxu1  ;;  %v506_v24 = vpop.f32.mrf.mxu0 }
 0x167   :  { %v539_v28 = vmax.f32 %v481_v14, 0.0  ;;  %v507_v32 = vadd.f32 %v506_v24, %v1518_v15 }
 0x169   :  { %547 = vst [vmem:[%s1621_s7 + $0x18] sm:$0xff] %v539_v28  ;;  %v541_v38 = vmax.f32 %v507_v32, 0.0 }
 0x16b   :  { %549 = vst [vmem:[%s1621_s7 + $0x28] sm:$0xff] %v541_v38 }
 0x16c   :  { %v482_v43 = vpop.f32.mrf.mxu2  ;;  %v493_v44 = vpop.f32.mrf.mxu3 }
 0x16d   :  { %v494_v50 = vadd.f32 %v493_v44, %v1518_v15 }
 0x16e   :  { %v508_v53 = vpop.f32.mrf.mxu0  ;;  %v519_v60 = vpop.f32.mrf.mxu1 }
 0x16f   :  { %v540_v61 = vmax.f32 %v494_v50, 0.0  ;;  %v520_v0 = vadd.f32 %v519_v60, %v1518_v15 }
 0x171   :  { %548 = vst [vmem:[%s1621_s7 + $0x20] sm:$0xff] %v540_v61  ;;  %v542_v1 = vmax.f32 %v520_v0, 0.0 }
 0x173   :  { %550 = vst [vmem:[%s1621_s7 + $0x30] sm:$0xff] %v542_v1 }
 0x174   :  { %v495_v2 = vpop.f32.mrf.mxu3  ;;  %v532_v7 = vpop.f32.mrf.mxu2 }
 0x175   :  { %v533_v8 = vadd.f32 %v532_v7, %v1518_v15 }
 0x176   :  { %v521_v10 = vpop.f32.mrf.mxu1 }
 0x177   :  { %v543_v11 = vmax.f32 %v533_v8, 0.0 }
 0x179   :  { %551 = vst [vmem:[%s1621_s7 + $0x38] sm:$0xff] %v543_v11 }
 0x17c   :  { %v534_v19 = vpop.f32.mrf.mxu2  ;;  %v611_v21 = vpop.f32.mrf.mxu3 }
 0x17d   :  { %v616_v25 = vpack.c.bf16 %v611_v21, %v611_v21 }
 0x17f   :  { %959 = vmatmul.msk.bf16.vlgmr.msrb.gmra.mxu0 %vm230_vm9, %v616_v25  ;;  %960 = vmatmul.msk.bf16.vlgmr.msrb.gmra.mxu1 %vm230_vm9, %v616_v25 }
 0x180   :  { %736 = vmatpush.bf16.msrb.mxu0 %v1407_v13  ;;  %749 = vmatpush.bf16.msrb.mxu1 %v1409_v16 }
 0x184   :  { %v613_v26 = vpop.f32.mrf.mxu3  ;;  %737 = vmatpush.bf16.msrb.mxu0 %v1427_v29  ;;  %750 = vmatpush.bf16.msrb.mxu1 %v1429_v30 }
 0x185   :  { %v617_v27 = vpack.c.bf16 %v613_v26, %v613_v26 }
 0x187   :  { %961 = vmatmul.msk.bf16.vlgmr.msrb.gmra.mxu2 %vm230_vm9, %v617_v27  ;;  %962 = vmatmul.msk.bf16.vlgmr.msrb.gmra.mxu3 %vm230_vm9, %v617_v27 }
 0x188   :  { %738 = vmatpush.bf16.msrb.mxu0 %v1445_v22  ;;  %751 = vmatpush.bf16.msrb.mxu1 %v1447_v46 }
 0x18c   :  { %739 = vmatpush.bf16.msrb.mxu0 %v1465_v55  ;;  %752 = vmatpush.bf16.msrb.mxu1 %v1468_v58 }
 0x18f   :  { %963 = vmatmul.msk.bf16.vlgmr.msra.gmra.mxu0 %vm230_vm9, %v617_v27  ;;  %964 = vmatmul.msk.bf16.vlgmr.msra.gmra.mxu1 %vm230_vm9, %v617_v27 }
 0x197   :  { %965 = vmatmul.msk.bf16.vlgmr.msra.gmra.mxu2 %vm230_vm9, %v617_v27  ;;  %966 = vmatmul.msk.bf16.vlgmr.msra.gmra.mxu3 %vm230_vm9, %v617_v27 }
 0x19f   :  { %967 = vmatmul.msk.bf16.vlgmr.msrb.gmra.mxu0 %vm230_vm9, %v617_v27  ;;  %968 = vmatmul.msk.bf16.vlgmr.msrb.gmra.mxu1 %vm230_vm9, %v617_v27 }
 0x1fc   :  { %v630_v13 = vpop.f32.mrf.mxu0  ;;  %v643_v16 = vpop.f32.mrf.mxu1 }
 0x1fd   :  { %v631_v29 = vadd.f32 %v630_v13, %v1512_v59  ;;  %v644_v30 = vadd.f32 %v643_v16, %v1512_v59 }
 0x1ff   :  { %v647_v12 = vmax.f32 %v631_v29, 0.0  ;;  %v648_v31 = vmax.f32 %v644_v30, 0.0 }
 0x201   :  { %649 = vst [vmem:[%s1620_s6 + $0x10] sm:$0xff] %v647_v12 }
 0x202   :  { %650 = vst [vmem:[%s1620_s6 + $0x18] sm:$0xff] %v648_v31 }
 0x204   :  { %v632_v34 = vpop.f32.mrf.mxu0  ;;  %v645_v35 = vpop.f32.mrf.mxu1 }
 0x20a   :  { %v663_v36 = vpop.f32.mrf.mxu2  ;;  %v676_v22 = vpop.f32.mrf.mxu3 }
 0x20b   :  { %v664_v39 = vadd.f32 %v663_v36, %v1518_v15  ;;  %v677_v46 = vadd.f32 %v676_v22, %v1518_v15 }
 0x20c   :  { %v689_v47 = vpop.f32.mrf.mxu0  ;;  %v702_v49 = vpop.f32.mrf.mxu1 }
 0x20d   :  { %v758_v51 = vmax.f32 %v664_v39, 0.0  ;;  %v759_v54 = vmax.f32 %v677_v46, 0.0  ;;  %v690_v55 = vadd.f32 %v689_v47, %v1518_v15  ;;  %v703_v58 = vadd.f32 %v702_v49, %v1518_v15 }
 0x20f   :  { %766 = vst [vmem:[%s1621_s7 + $0x40] sm:$0xff] %v758_v51  ;;  %v760_v59 = vmax.f32 %v690_v55, 0.0  ;;  %v761_v62 = vmax.f32 %v703_v58, 0.0 }
 0x210   :  { %767 = vst [vmem:[%s1621_s7 + $0x48] sm:$0xff] %v759_v54 }
 0x211   :  { %768 = vst [vmem:[%s1621_s7 + $0x50] sm:$0xff] %v760_v59 }
 0x212   :  { %769 = vst [vmem:[%s1621_s7 + $0x58] sm:$0xff] %v761_v62  ;;  %v665_v41 = vpop.f32.mrf.mxu2  ;;  %v678_v3 = vpop.f32.mrf.mxu3 }
 0x214   :  { %v691_v6 = vpop.f32.mrf.mxu0  ;;  %v704_v17 = vpop.f32.mrf.mxu1 }
 0x21a   :  { %v715_v18 = vpop.f32.mrf.mxu2  ;;  %v728_v20 = vpop.f32.mrf.mxu3 }
 0x21b   :  { %v716_v33 = vadd.f32 %v715_v18, %v1518_v15  ;;  %v729_v37 = vadd.f32 %v728_v20, %v1518_v15 }
 0x21c   :  { %v741_v40 = vpop.f32.mrf.mxu0  ;;  %v754_v42 = vpop.f32.mrf.mxu1 }
 0x21d   :  { %v762_v45 = vmax.f32 %v716_v33, 0.0  ;;  %v763_v48 = vmax.f32 %v729_v37, 0.0  ;;  %v742_v52 = vadd.f32 %v741_v40, %v1518_v15  ;;  %v755_v56 = vadd.f32 %v754_v42, %v1518_v15 }
 0x21f   :  { %770 = vst [vmem:[%s1621_s7 + $0x60] sm:$0xff] %v762_v45  ;;  %v764_v57 = vmax.f32 %v742_v52, 0.0  ;;  %v765_v63 = vmax.f32 %v755_v56, 0.0 }
 0x220   :  { %771 = vst [vmem:[%s1621_s7 + $0x68] sm:$0xff] %v763_v48 }
 0x221   :  { %772 = vst [vmem:[%s1621_s7 + $0x70] sm:$0xff] %v764_v57 }
 0x222   :  { %773 = vst [vmem:[%s1621_s7 + $0x78] sm:$0xff] %v765_v63  ;;  %v717_v4 = vpop.f32.mrf.mxu2  ;;  %v730_v15 = vpop.f32.mrf.mxu3 }
 0x224   :  { %v743_v5 = vpop.f32.mrf.mxu0  ;;  %v756_v9 = vpop.f32.mrf.mxu1 }
 0x225   :  { %782 = vsyncpa [#allocation3], 1 }

// kernel: csfi3_forward.9
= control target key start
LH: loop header
LB: loop body
LE: loop exit
PB: predicated region body
PF: predicated region fallthrough
CT: control target
= control target key end

     0   :  { %vm221_vm0 = vcmask 1041409   ;;  %vm224_vm1 = vcmask 1042434   ;;  %vm227_vm2 = vcmask 1043459   ;;  %vm230_vm3 = vcmask 1044484   ;;  %s3709_s0 = inlined_call_operand.vmem [shape: bf16[8,2,256], index: 0, kind: input, shape index: {}]   ;;  %s3710_s2 = inlined_call_operand.vmem [shape: bf16[256,1024], index: 2, kind: input, shape index: {}]   ;;  %s3711_s1 = inlined_call_operand.vmem [shape: bf16[8,8], index: 1, kind: input, shape index: {}]   ;;  %s3712_s3 = inlined_call_operand.vmem [shape: f32[8,1], index: 3, kind: input, shape index: {}]   ;;  %s3713_s4 = inlined_call_operand.vmem [shape: f32[8,2048], index: 4, kind: output, shape index: {}]  }
   0x1   :  { %v2189_v0 = vld [vmem:[%s3709_s0] sm:$0x3]  ;;  %v2195_v1 = vld [vmem:[%s3709_s0 + $0x2] sm:$0x3]  ;;  %v2201_v4 = vld [vmem:[%s3709_s0 + $0x4] sm:$0x3] }
   0x2   :  { %157 = vst [vmem:[#allocation1] ss:$9 sm:$0xff] %v2189_v0  ;;  %v2207_v7 = vld [vmem:[%s3709_s0 + $0x6] sm:$0x3]  ;;  %v2213_v10 = vld [vmem:[%s3709_s0 + $0x8] sm:$0x3] }
   0x3   :  { %v2219_v13 = vld [vmem:[%s3709_s0 + $0xa] sm:$0x3]  ;;  %v1741_v18 = vld [vmem:[%s3710_s2 + $0x1c0] sm:$0xf]  ;;  %v2234_v21 = vld [vmem:[%s3709_s0 + $0xc] sm:$0x3] }
   0x4   :  { %v2089_v19 = vld [vmem:[%s3710_s2 + $0x1dc] sm:$0xf0]  ;;  %v2282_v52 = vld [vmem:[%s3709_s0 + $0xe] sm:$0x3]  ;;  %vm233_vm4 = vcmask 1045509   ;;  %vm236_vm5 = vcmask 1046534  }
   0x5   :  { %v1997_v20 = vld [vmem:[%s3710_s2 + $0x3c0] sm:$0xf]  ;;  %v2236_v25 = vor.u32 %v2089_v19, %v1741_v18  ;;  %vm239_vm6 = vcmask 1047559   ;;  %vm261_vm7 = vcmask 1043456   ;;  %vm257_vm8 = vcmask 64512  }
   0x6   :  { %v2153_v26 = vld [vmem:[%s3710_s2 + $0x3dc] sm:$0xf0] }
   0x7   :  { %v2241_v29 = vor.u32 %v2153_v26, %v1997_v20  ;;  %v1709_v30 = vld [vmem:[%s3710_s2 + $0x180] sm:$0xf]  ;;  %941 = vmatpush.bf16.msra.mxu2 %v2236_v25 }
   0x8   :  { %v2081_v32 = vld [vmem:[%s3710_s2 + $0x19c] sm:$0xf0] }
   0x9   :  { %v158_v2 = vld [vmem:[#allocation1] sm:$0xf]  ;;  %v160_v3 = vld [vmem:[#allocation1 + $0x9] sm:$0xf]  ;;  %954 = vmatpush.bf16.msra.mxu3 %v2241_v29  ;;  %v2257_v37 = vor.u32 %v2081_v32, %v1709_v30 }
   0xa   :  { %163 = vst [vmem:[#allocation1] ss:$9 sm:$0xff] %v2195_v1  ;;  %v204_v22 = vunpack.c.l.b16 %v158_v2  ;;  %v205_v31 = vunpack.c.l.b16 %v160_v3  ;;  %v1965_v33 = vld [vmem:[%s3710_s2 + $0x380] sm:$0xf] }
   0xb   :  { %v2145_v34 = vld [vmem:[%s3710_s2 + $0x39c] sm:$0xf0]  ;;  %942 = vmatpush.bf16.msra.mxu2 %v2257_v37 }
   0xc   :  { %v2259_v38 = vor.u32 %v2145_v34, %v1965_v33  ;;  %v1677_v45 = vld [vmem:[%s3710_s2 + $0x140] sm:$0xf] }
   0xd   :  { %v2073_v46 = vld [vmem:[%s3710_s2 + $0x15c] sm:$0xf0] }
   0xe   :  { %v2271_v49 = vor.u32 %v2073_v46, %v1677_v45  ;;  %v1933_v50 = vld [vmem:[%s3710_s2 + $0x340] sm:$0xf]  ;;  %955 = vmatpush.bf16.msra.mxu3 %v2259_v38 }
   0xf   :  { %v2137_v51 = vld [vmem:[%s3710_s2 + $0x35c] sm:$0xf0] }
  0x10   :  { %v2285_v53 = vor.u32 %v2137_v51, %v1933_v50  ;;  %v1645_v56 = vld [vmem:[%s3710_s2 + $0x100] sm:$0xf]  ;;  %943 = vmatpush.bf16.msra.mxu2 %v2271_v49 }
  0x11   :  { %v164_v5 = vld [vmem:[#allocation1] sm:$0xf]  ;;  %v166_v6 = vld [vmem:[#allocation1 + $0x9] sm:$0xf] }
  0x12   :  { %169 = vst [vmem:[#allocation1] ss:$9 sm:$0xff] %v2201_v4  ;;  %v206_v16 = vunpack.c.l.b16 %v164_v5  ;;  %v207_v17 = vunpack.c.l.b16 %v166_v6  ;;  %v2065_v57 = vld [vmem:[%s3710_s2 + $0x11c] sm:$0xf0]  ;;  %956 = vmatpush.bf16.msra.mxu3 %v2285_v53 }
  0x13   :  { %v1901_v61 = vld [vmem:[%s3710_s2 + $0x300] sm:$0xf]  ;;  %v2302_v5 = vor.u32 %v2065_v57, %v1645_v56  ;;  %v2149_v57 = vld [vmem:[%s3710_s2 + $0x3c4] sm:$0xf] }
  0x14   :  { %v220_v27 = vrot.slane %v206_v16, 7  ;;  %v241_v28 = vrot.slane %v207_v17, 7  ;;  %v2129_v62 = vld [vmem:[%s3710_s2 + $0x31c] sm:$0xf0] }
  0x15   :  { %v1869_v16 = vld [vmem:[%s3710_s2 + $0x2c0] sm:$0xf]  ;;  %944 = vmatpush.bf16.msra.mxu2 %v2302_v5 }
  0x16   :  { %v222_v42 = vsel %vm221_vm0, %v220_v27, %v204_v22  ;;  %v242_v48 = vsel %vm221_vm0, %v241_v28, %v205_v31  ;;  %v2121_v19 = vld [vmem:[%s3710_s2 + $0x2dc] sm:$0xf0] }
  0x17   :  { %v2328_v27 = vor.u32 %v2121_v19, %v1869_v16  ;;  %v1581_v28 = vld [vmem:[%s3710_s2 + $0x80] sm:$0xf]  ;;  %v1967_v19 = vld [vmem:[%s3710_s2 + $0x3a0] sm:$0xf0] }
  0x18   :  { %v2049_v30 = vld [vmem:[%s3710_s2 + $0x9c] sm:$0xf0] }
  0x19   :  { %v170_v8 = vld [vmem:[#allocation1] sm:$0xf]  ;;  %v172_v9 = vld [vmem:[#allocation1 + $0x9] sm:$0xf] }
  0x1a   :  { %175 = vst [vmem:[#allocation1] ss:$9 sm:$0xff] %v2207_v7  ;;  %v208_v23 = vunpack.c.l.b16 %v170_v8  ;;  %v209_v24 = vunpack.c.l.b16 %v172_v9  ;;  %v2305_v9 = vor.u32 %v2129_v62, %v1901_v61  ;;  %v1837_v31 = vld [vmem:[%s3710_s2 + $0x280] sm:$0xf] }
  0x1b   :  { %v2113_v32 = vld [vmem:[%s3710_s2 + $0x29c] sm:$0xf0] }
  0x1c   :  { %v223_v43 = vrot.slane %v208_v23, 6  ;;  %v243_v44 = vrot.slane %v209_v24, 6  ;;  %957 = vmatpush.bf16.msra.mxu3 %v2305_v9  ;;  %v1517_v61 = vld [vmem:[%s3710_s2] sm:$0xf] }
  0x1d   :  { %v2033_v62 = vld [vmem:[%s3710_s2 + $0x1c] sm:$0xf0] }
  0x1e   :  { %v225_v58 = vsel %vm224_vm1, %v223_v43, %v222_v42  ;;  %v244_v60 = vsel %vm224_vm1, %v243_v44, %v242_v48  ;;  %v2351_v43 = vor.u32 %v2113_v32, %v1837_v31  ;;  %v2041_v44 = vld [vmem:[%s3710_s2 + $0x5c] sm:$0xf0] }
  0x1f   :  { %v2105_v48 = vld [vmem:[%s3710_s2 + $0x25c] sm:$0xf0] }
  0x20   :  { %958 = vmatpush.bf16.msra.mxu3 %v2328_v27  ;;  %v2097_v16 = vld [vmem:[%s3710_s2 + $0x21c] sm:$0xf0] }
  0x21   :  { %v176_v11 = vld [vmem:[#allocation1] sm:$0xf]  ;;  %v178_v12 = vld [vmem:[#allocation1 + $0x9] sm:$0xf] }
  0x22   :  { %181 = vst [vmem:[#allocation1] ss:$9 sm:$0xff] %v2213_v10  ;;  %v210_v39 = vunpack.c.l.b16 %v176_v11  ;;  %v211_v40 = vunpack.c.l.b16 %v178_v12  ;;  %v1613_v11 = vld [vmem:[%s3710_s2 + $0xc0] sm:$0xf] }
  0x23   :  { %v26_v31 = vld [vmem:[%s3711_s1] sm:$0xf] }
  0x24   :  { %v226_v54 = vrot.slane %v210_v39, 5  ;;  %v245_v55 = vrot.slane %v211_v40, 5  ;;  %v2345_v39 = vor.u32 %v2049_v30, %v1581_v28  ;;  %v1549_v40 = vld [vmem:[%s3710_s2 + $0x40] sm:$0xf]  ;;  %959 = vmatpush.bf16.msra.mxu3 %v2351_v43  ;;  %v2005_v28 = vld [vmem:[%s3710_s2 + $0x3c8] sm:$0xf] }
  0x25   :  { %v2154_v30 = vld [vmem:[%s3710_s2 + $0x3e4] sm:$0xf0] }
  0x26   :  { %v228_v12 = vsel %vm227_vm2, %v226_v54, %v225_v58  ;;  %v2085_v54 = vld [vmem:[%s3710_s2 + $0x1c4] sm:$0xf] }
  0x27   :  { %v1999_v58 = vld [vmem:[%s3710_s2 + $0x3e0] sm:$0xf0] }
  0x29   :  { %v182_v14 = vld [vmem:[#allocation1] sm:$0xf]  ;;  %v184_v15 = vld [vmem:[#allocation1 + $0x9] sm:$0xf] }
  0x2a   :  { %187 = vst [vmem:[#allocation1] ss:$9 sm:$0xff] %v2219_v13  ;;  %v212_v41 = vunpack.c.l.b16 %v182_v14  ;;  %v213_v47 = vunpack.c.l.b16 %v184_v15  ;;  %v246_v14 = vsel %vm227_vm2, %v245_v55, %v244_v60  ;;  %v2057_v15 = vld [vmem:[%s3710_s2 + $0xdc] sm:$0xf0] }
  0x2b   :  { %v2323_v23 = vor.u32 %v2057_v15, %v1613_v11  ;;  %v1773_v15 = vld [vmem:[%s3710_s2 + $0x200] sm:$0xf] }
  0x2c   :  { %v229_v59 = vrot.slane %v212_v41, 4  ;;  %v247_v3 = vrot.slane %v213_v47, 4  ;;  %v1805_v47 = vld [vmem:[%s3710_s2 + $0x240] sm:$0xf]  ;;  %v2434_v32 = vor.u32 %v2097_v16, %v1773_v15  ;;  %v1653_v15 = vld [vmem:[%s3710_s2 + $0x108] sm:$0xf] }
  0x2d   :  { %945 = vmatpush.bf16.msra.mxu2 %v2323_v23  ;;  %v2381_v60 = vor.u32 %v2105_v48, %v1805_v47  ;;  %v1973_v47 = vld [vmem:[%s3710_s2 + $0x388] sm:$0xf] }
  0x2e   :  { %v231_v24 = vsel %vm230_vm3, %v229_v59, %v228_v12  ;;  %v248_v26 = vsel %vm230_vm3, %v247_v3, %v246_v14  ;;  %v2378_v59 = vor.u32 %v2041_v44, %v1549_v40  ;;  %v2077_v3 = vld [vmem:[%s3710_s2 + $0x184] sm:$0xf]  ;;  %v2399_v14 = vor.u32 %v2149_v57, %v1999_v58  ;;  %3796 = vst [vmem:[#allocation5_spill] sm:$0xff] %v2434_v32  ;;  %v1717_v40 = vld [vmem:[%s3710_s2 + $0x188] sm:$0xf] }
  0x2f   :  { %3794 = vst [vmem:[#allocation3_spill] sm:$0xff] %v2381_v60  ;;  %960 = vmatpush.bf16.msra.mxu3 %v2381_v60  ;;  %v2133_v44 = vld [vmem:[%s3710_s2 + $0x344] sm:$0xf]  ;;  %v2146_v48 = vld [vmem:[%s3710_s2 + $0x3a4] sm:$0xf0] }
  0x30   :  { %3793 = vst [vmem:[#allocation2_spill] sm:$0xff] %v2378_v59  ;;  %v1647_v57 = vld [vmem:[%s3710_s2 + $0x120] sm:$0xf0]  ;;  %v2066_v16 = vld [vmem:[%s3710_s2 + $0x124] sm:$0xf0] }
  0x31   :  { %v188_v35 = vld [vmem:[#allocation1] sm:$0xf]  ;;  %v190_v36 = vld [vmem:[#allocation1 + $0x9] sm:$0xf]  ;;  %946 = vmatpush.bf16.msra.mxu2 %v2345_v39  ;;  %v2125_v58 = vld [vmem:[%s3710_s2 + $0x304] sm:$0xf] }
  0x32   :  { %193 = vst [vmem:[#allocation1] ss:$9 sm:$0xff] %v2234_v21  ;;  %v214_v63 = vunpack.c.l.b16 %v188_v35  ;;  %v215_v2 = vunpack.c.l.b16 %v190_v36 }
  0x33   :  { %961 = vmatpush.bf16.msra.mxu3 %v2434_v32  ;;  %v2152_v32 = vld [vmem:[%s3710_s2 + $0x3dc] sm:$0xf] }
  0x34   :  { %v232_v20 = vrot.slane %v214_v63, 3  ;;  %v249_v22 = vrot.slane %v215_v2, 3 }
  0x35   :  { %947 = vmatpush.bf16.msra.mxu2 %v2378_v59 }
  0x36   :  { %v234_v35 = vsel %vm233_vm4, %v232_v20, %v231_v24  ;;  %v250_v36 = vsel %vm233_vm4, %v249_v22, %v248_v26  ;;  %v2417_v20 = vor.u32 %v2033_v62, %v1517_v61  ;;  %v2090_v22 = vld [vmem:[%s3710_s2 + $0x1e4] sm:$0xf0]  ;;  %v1903_v61 = vld [vmem:[%s3710_s2 + $0x320] sm:$0xf0]  ;;  %v2502_v62 = vor.u32 %v2146_v48, %v1973_v47 }
  0x37   :  { %v1877_v48 = vld [vmem:[%s3710_s2 + $0x2c8] sm:$0xf] }
  0x38   :  { %3795 = vst [vmem:[#allocation4_spill] sm:$0xff] %v2417_v20 }
  0x39   :  { %v194_v6 = vld [vmem:[#allocation1] sm:$0xf]  ;;  %v196_v8 = vld [vmem:[#allocation1 + $0x9] sm:$0xf]  ;;  %948 = vmatpush.bf16.msra.mxu2 %v2417_v20  ;;  %3800 = vst [vmem:[#allocation9_spill] sm:$0xff] %v2502_v62 }
  0x3a   :  { %199 = vst [vmem:[#allocation1] ss:$9 sm:$0xff] %v2282_v52  ;;  %v216_v17 = vunpack.c.l.b16 %v194_v6  ;;  %v217_v18 = vunpack.c.l.b16 %v196_v8  ;;  %v1711_v6 = vld [vmem:[%s3710_s2 + $0x1a0] sm:$0xf0]  ;;  %v2023_v20 = vld [vmem:[%s3710_s2 + $0x3f8] sm:$0xf0] }
  0x3c   :  { %v235_v33 = vrot.slane %v216_v17, 2  ;;  %v251_v34 = vrot.slane %v217_v18, 2  ;;  %v1749_v17 = vld [vmem:[%s3710_s2 + $0x1c8] sm:$0xf]  ;;  %v2141_v18 = vld [vmem:[%s3710_s2 + $0x384] sm:$0xf] }
  0x3e   :  { %v237_v50 = vsel %vm236_vm5, %v235_v33, %v234_v35  ;;  %v252_v51 = vsel %vm236_vm5, %v251_v34, %v250_v36  ;;  %v2436_v33 = vor.u32 %v2090_v22, %v1749_v17  ;;  %v2440_v34 = vor.u32 %v2077_v3, %v1711_v6  ;;  %v2069_v36 = vld [vmem:[%s3710_s2 + $0x144] sm:$0xf] }
  0x3f   :  { %v2442_v35 = vor.u32 %v2141_v18, %v1967_v19  ;;  %v1615_v17 = vld [vmem:[%s3710_s2 + $0xe0] sm:$0xf0] }
  0x40   :  { %3797 = vst [vmem:[#allocation6_spill] sm:$0xff] %v2436_v33  ;;  %993 = vmatpush.bf16.msrb.mxu2 %v2436_v33  ;;  %v2117_v18 = vld [vmem:[%s3710_s2 + $0x2c4] sm:$0xf]  ;;  %v1789_v33 = vld [vmem:[%s3710_s2 + $0x210] sm:$0xf] }
  0x41   :  { %v200_v41 = vld [vmem:[#allocation1] sm:$0xf]  ;;  %v202_v42 = vld [vmem:[#allocation1 + $0x9] sm:$0xf]  ;;  %v1871_v19 = vld [vmem:[%s3710_s2 + $0x2e0] sm:$0xf0] }
  0x42   :  { %v218_v45 = vunpack.c.l.b16 %v200_v41  ;;  %v219_v46 = vunpack.c.l.b16 %v202_v42  ;;  %1165 = vst [vmem:[#allocation1] ss:$9 sm:$0xff] %v2189_v0  ;;  %v1743_v0 = vld [vmem:[%s3710_s2 + $0x1e0] sm:$0xf0]  ;;  %v2082_v41 = vld [vmem:[%s3710_s2 + $0x1a4] sm:$0xf0] }
  0x43   :  { %v2397_v12 = vor.u32 %v2085_v54, %v1743_v0  ;;  %v1679_v42 = vld [vmem:[%s3710_s2 + $0x160] sm:$0xf0] }
  0x44   :  { %v238_v55 = vrot.slane %v218_v45, 1  ;;  %v253_v56 = vrot.slane %v219_v46, 1  ;;  %v1935_v45 = vld [vmem:[%s3710_s2 + $0x360] sm:$0xf0]  ;;  %v2463_v46 = vor.u32 %v2154_v30, %v2005_v28  ;;  %v2547_v28 = vor.u32 %v2066_v16, %v1653_v15 }
  0x45   :  { %v2481_v54 = vor.u32 %v2133_v44, %v1935_v45  ;;  %v2061_v0 = vld [vmem:[%s3710_s2 + $0x104] sm:$0xf] }
  0x46   :  { %v240_v63 = vsel %vm239_vm6, %v238_v55, %v237_v50  ;;  %v254_v2 = vsel %vm239_vm6, %v253_v56, %v252_v51  ;;  %3798 = vst [vmem:[#allocation7_spill] sm:$0xff] %v2463_v46  ;;  %v2475_v50 = vor.u32 %v2082_v41, %v1717_v40  ;;  %v2479_v51 = vor.u32 %v2069_v36, %v1679_v42  ;;  %v1685_v55 = vld [vmem:[%s3710_s2 + $0x148] sm:$0xf]  ;;  %v2045_v36 = vld [vmem:[%s3710_s2 + $0x84] sm:$0xf] }
  0x47   :  { %v255_v8 = vpack.c.b16 %v240_v63, %v240_v63  ;;  %v256_v11 = vpack.c.b16 %v254_v2, %v254_v2  ;;  %v2074_v56 = vld [vmem:[%s3710_s2 + $0x164] sm:$0xf0]  ;;  %1006 = vmatpush.bf16.msrb.mxu3 %v2463_v46  ;;  %v2515_v6 = vor.u32 %v2061_v0, %v1647_v57  ;;  %3803 = vst [vmem:[#allocation12_spill] sm:$0xff] %v2547_v28  ;;  %v1583_v42 = vld [vmem:[%s3710_s2 + $0xa0] sm:$0xf0] }
  0x48   :  { %3799 = vst [vmem:[#allocation8_spill] sm:$0xff] %v2475_v50  ;;  %v1941_v63 = vld [vmem:[%s3710_s2 + $0x348] sm:$0xf]  ;;  %994 = vmatpush.bf16.msrb.mxu2 %v2475_v50  ;;  %v2511_v3 = vor.u32 %v2074_v56, %v1685_v55  ;;  %v2109_v44 = vld [vmem:[%s3710_s2 + $0x284] sm:$0xf]  ;;  %v2587_v56 = vor.u32 %v2045_v36, %v1583_v42 }
  0x49   :  { %v263_v24 = vsel %vm261_vm7, %v255_v8, 0  ;;  %v266_v26 = vsel %vm261_vm7, %v256_v11, 0  ;;  %v2138_v2 = vld [vmem:[%s3710_s2 + $0x364] sm:$0xf0]  ;;  %v2517_v8 = vor.u32 %v2125_v58, %v1903_v61  ;;  %v2053_v11 = vld [vmem:[%s3710_s2 + $0xc4] sm:$0xf] }
  0x4a   :  { %275 = vmatpush.bf16.msra.mxu0 %v263_v24  ;;  %288 = vmatpush.bf16.msra.mxu1 %v266_v26  ;;  %3801 = vst [vmem:[#allocation10_spill] sm:$0xff] %v2511_v3  ;;  %v2538_v22 = vor.u32 %v2138_v2, %v1941_v63  ;;  %v1909_v24 = vld [vmem:[%s3710_s2 + $0x308] sm:$0xf]  ;;  %v2551_v30 = vor.u32 %v2053_v11, %v1615_v17  ;;  %v1839_v45 = vld [vmem:[%s3710_s2 + $0x2a0] sm:$0xf0] }
  0x4b   :  { %1007 = vmatpush.bf16.msrb.mxu3 %v2502_v62  ;;  %v2130_v26 = vld [vmem:[%s3710_s2 + $0x324] sm:$0xf0]  ;;  %v2589_v57 = vor.u32 %v2109_v44, %v1839_v45  ;;  %v2037_v58 = vld [vmem:[%s3710_s2 + $0x44] sm:$0xf]  ;;  %v1693_v50 = vld [vmem:[%s3710_s2 + $0x150] sm:$0xf] }
  0x4c   :  { %3802 = vst [vmem:[#allocation11_spill] sm:$0xff] %v2538_v22  ;;  %995 = vmatpush.bf16.msrb.mxu2 %v2511_v3  ;;  %v1621_v40 = vld [vmem:[%s3710_s2 + $0xc8] sm:$0xf]  ;;  %v2574_v47 = vor.u32 %v2130_v26, %v1909_v24  ;;  %v1551_v2 = vld [vmem:[%s3710_s2 + $0x60] sm:$0xf0] }
  0x4d   :  { %1513 = vmatmul.msk.bf16.vlgmr.msra.gmra.mxu0 %vm257_vm8, %v26_v31  ;;  %1514 = vmatmul.msk.bf16.vlgmr.msra.gmra.mxu1 %vm257_vm8, %v26_v31  ;;  %v2553_v31 = vor.u32 %v2117_v18, %v1871_v19  ;;  %v2058_v41 = vld [vmem:[%s3710_s2 + $0xe4] sm:$0xf0]  ;;  %v2101_v11 = vld [vmem:[%s3710_s2 + $0x244] sm:$0xf]  ;;  %v2626_v26 = vor.u32 %v2037_v58, %v1551_v2  ;;  %v1751_v58 = vld [vmem:[%s3710_s2 + $0x1e8] sm:$0xf0] }
  0x4e   :  { %967 = vmatpush.bf16.msrb.mxu0 %v2397_v12  ;;  %980 = vmatpush.bf16.msrb.mxu1 %v2399_v14  ;;  %3804 = vst [vmem:[#allocation13_spill] sm:$0xff] %v2574_v47  ;;  %v2122_v0 = vld [vmem:[%s3710_s2 + $0x2e4] sm:$0xf0]  ;;  %v2583_v55 = vor.u32 %v2058_v41, %v1621_v40  ;;  %v1807_v15 = vld [vmem:[%s3710_s2 + $0x260] sm:$0xf0] }
  0x4f   :  { %1008 = vmatpush.bf16.msrb.mxu3 %v2538_v22  ;;  %v1589_v61 = vld [vmem:[%s3710_s2 + $0x88] sm:$0xf]  ;;  %v2610_v16 = vor.u32 %v2122_v0, %v1877_v48  ;;  %v2029_v19 = vld [vmem:[%s3710_s2 + $0x4] sm:$0xf]  ;;  %3808 = vst [vmem:[#allocation17_spill] sm:$0xff] %v2626_v26  ;;  %v2628_v36 = vor.u32 %v2101_v11, %v1807_v15 }
  0x50   :  { %996 = vmatpush.bf16.msrb.mxu2 %v2547_v28  ;;  %3805 = vst [vmem:[#allocation14_spill] sm:$0xff] %v2583_v55  ;;  %v2050_v63 = vld [vmem:[%s3710_s2 + $0xa4] sm:$0xf0]  ;;  %v1519_v40 = vld [vmem:[%s3710_s2 + $0x20] sm:$0xf0] }
  0x51   :  { %3806 = vst [vmem:[#allocation15_spill] sm:$0xff] %v2610_v16  ;;  %v1845_v17 = vld [vmem:[%s3710_s2 + $0x288] sm:$0xf]  ;;  %v2622_v24 = vor.u32 %v2050_v63, %v1589_v61  ;;  %v2093_v44 = vld [vmem:[%s3710_s2 + $0x204] sm:$0xf] }
  0x52   :  { %968 = vmatpush.bf16.msrb.mxu0 %v2440_v34  ;;  %981 = vmatpush.bf16.msrb.mxu1 %v2442_v35  ;;  %v2114_v18 = vld [vmem:[%s3710_s2 + $0x2a4] sm:$0xf0]  ;;  %3809 = vst [vmem:[#allocation18_spill] sm:$0xff] %v2628_v36  ;;  %v1775_v45 = vld [vmem:[%s3710_s2 + $0x220] sm:$0xf0] }
  0x53   :  { %1009 = vmatpush.bf16.msrb.mxu3 %v2574_v47  ;;  %3807 = vst [vmem:[#allocation16_spill] sm:$0xff] %v2622_v24  ;;  %v1557_v41 = vld [vmem:[%s3710_s2 + $0x48] sm:$0xf]  ;;  %v2086_v48 = vld [vmem:[%s3710_s2 + $0x1cc] sm:$0xf]  ;;  %v2649_v0 = vor.u32 %v2114_v18, %v1845_v17  ;;  %v2671_v17 = vor.u32 %v2029_v19, %v1519_v40  ;;  %v2673_v18 = vor.u32 %v2093_v44, %v1775_v45 }
  0x54   :  { %997 = vmatpush.bf16.msrb.mxu2 %v2583_v55  ;;  %v2042_v42 = vld [vmem:[%s3710_s2 + $0x64] sm:$0xf0]  ;;  %v2150_v61 = vld [vmem:[%s3710_s2 + $0x3cc] sm:$0xf]  ;;  %v1725_v3 = vld [vmem:[%s3710_s2 + $0x190] sm:$0xf] }
  0x55   :  { %3810 = vst [vmem:[#allocation19_spill] sm:$0xff] %v2649_v0  ;;  %v2007_v63 = vld [vmem:[%s3710_s2 + $0x3e8] sm:$0xf0]  ;;  %v2661_v2 = vor.u32 %v2042_v42, %v1557_v41  ;;  %v1813_v11 = vld [vmem:[%s3710_s2 + $0x248] sm:$0xf] }
  0x56   :  { %969 = vmatpush.bf16.msrb.mxu0 %v2479_v51  ;;  %982 = vmatpush.bf16.msrb.mxu1 %v2481_v54  ;;  %v2106_v15 = vld [vmem:[%s3710_s2 + $0x264] sm:$0xf0]  ;;  %3812 = vst [vmem:[#allocation21_spill] sm:$0xff] %v2671_v17  ;;  %v2677_v41 = vor.u32 %v2150_v61, %v2007_v63  ;;  %v2078_v42 = vld [vmem:[%s3710_s2 + $0x18c] sm:$0xf] }
  0x57   :  { %1010 = vmatpush.bf16.msrb.mxu3 %v2610_v16  ;;  %3811 = vst [vmem:[#allocation20_spill] sm:$0xff] %v2661_v2  ;;  %v2675_v16 = vor.u32 %v2086_v48, %v1751_v58  ;;  %v2142_v19 = vld [vmem:[%s3710_s2 + $0x38c] sm:$0xf]  ;;  %v2692_v44 = vor.u32 %v2106_v15, %v1813_v11  ;;  %v2067_v46 = vld [vmem:[%s3710_s2 + $0x12c] sm:$0xf0] }
  0x58   :  { %998 = vmatpush.bf16.msrb.mxu2 %v2622_v24  ;;  %3813 = vst [vmem:[#allocation22_spill] sm:$0xff] %v2673_v18  ;;  %v1719_v24 = vld [vmem:[%s3710_s2 + $0x1a8] sm:$0xf0] }
  0x59   :  { %3814 = vst [vmem:[#allocation23_spill] sm:$0xff] %v2675_v16  ;;  %v1975_v40 = vld [vmem:[%s3710_s2 + $0x3a8] sm:$0xf0]  ;;  %v2699_v45 = vor.u32 %v2078_v42, %v1719_v24 }
  0x5a   :  { %970 = vmatpush.bf16.msrb.mxu0 %v2515_v6  ;;  %983 = vmatpush.bf16.msrb.mxu1 %v2517_v8  ;;  %3815 = vst [vmem:[#allocation24_spill] sm:$0xff] %v2677_v41  ;;  %v2701_v48 = vor.u32 %v2142_v19, %v1975_v40  ;;  %v2070_v58 = vld [vmem:[%s3710_s2 + $0x14c] sm:$0xf] }
  0x5b   :  { %1011 = vmatpush.bf16.msrb.mxu3 %v2649_v0  ;;  %3816 = vst [vmem:[#allocation25_spill] sm:$0xff] %v2692_v44  ;;  %v1687_v61 = vld [vmem:[%s3710_s2 + $0x168] sm:$0xf0] }
  0x5c   :  { %999 = vmatpush.bf16.msrb.mxu2 %v2661_v2  ;;  %3817 = vst [vmem:[#allocation26_spill] sm:$0xff] %v2699_v45  ;;  %v2134_v63 = vld [vmem:[%s3710_s2 + $0x34c] sm:$0xf]  ;;  %v2718_v24 = vor.u32 %v2070_v58, %v1687_v61 }
  0x5d   :  { %3818 = vst [vmem:[#allocation27_spill] sm:$0xff] %v2701_v48  ;;  %v1943_v11 = vld [vmem:[%s3710_s2 + $0x368] sm:$0xf0] }
  0x5e   :  { %971 = vmatpush.bf16.msrb.mxu0 %v2551_v30  ;;  %984 = vmatpush.bf16.msrb.mxu1 %v2553_v31  ;;  %3819 = vst [vmem:[#allocation28_spill] sm:$0xff] %v2718_v24  ;;  %v2720_v15 = vor.u32 %v2134_v63, %v1943_v11  ;;  %v2062_v42 = vld [vmem:[%s3710_s2 + $0x10c] sm:$0xf] }
  0x5f   :  { %1012 = vmatpush.bf16.msrb.mxu3 %v2692_v44  ;;  %v1655_v19 = vld [vmem:[%s3710_s2 + $0x128] sm:$0xf0] }
  0x60   :  { %3820 = vst [vmem:[#allocation29_spill] sm:$0xff] %v2720_v15  ;;  %v2126_v40 = vld [vmem:[%s3710_s2 + $0x30c] sm:$0xf]  ;;  %v2736_v58 = vor.u32 %v2062_v42, %v1655_v19 }
  0x61   :  { %v1911_v44 = vld [vmem:[%s3710_s2 + $0x328] sm:$0xf0] }
  0x62   :  { %972 = vmatpush.bf16.msrb.mxu0 %v2587_v56  ;;  %985 = vmatpush.bf16.msrb.mxu1 %v2589_v57  ;;  %3821 = vst [vmem:[#allocation30_spill] sm:$0xff] %v2736_v58  ;;  %v2738_v61 = vor.u32 %v2126_v40, %v1911_v44  ;;  %v2054_v63 = vld [vmem:[%s3710_s2 + $0xcc] sm:$0xf] }
  0x63   :  { %v1623_v11 = vld [vmem:[%s3710_s2 + $0xe8] sm:$0xf0] }
  0x64   :  { %3822 = vst [vmem:[#allocation31_spill] sm:$0xff] %v2738_v61  ;;  %v2118_v2 = vld [vmem:[%s3710_s2 + $0x2cc] sm:$0xf]  ;;  %v2754_v44 = vor.u32 %v2054_v63, %v1623_v11 }
  0x65   :  { %v1879_v0 = vld [vmem:[%s3710_s2 + $0x2e8] sm:$0xf0] }
  0x66   :  { %973 = vmatpush.bf16.msrb.mxu0 %v2626_v26  ;;  %986 = vmatpush.bf16.msrb.mxu1 %v2628_v36  ;;  %3823 = vst [vmem:[#allocation32_spill] sm:$0xff] %v2754_v44  ;;  %v2756_v42 = vor.u32 %v2118_v2, %v1879_v0  ;;  %v2046_v19 = vld [vmem:[%s3710_s2 + $0x8c] sm:$0xf]  ;;  %v2080_v36 = vld [vmem:[%s3710_s2 + $0x19c] sm:$0xf] }
  0x67   :  { %v1591_v40 = vld [vmem:[%s3710_s2 + $0xa8] sm:$0xf0] }
  0x68   :  { %3824 = vst [vmem:[#allocation33_spill] sm:$0xff] %v2756_v42  ;;  %v2110_v55 = vld [vmem:[%s3710_s2 + $0x28c] sm:$0xf]  ;;  %v2772_v0 = vor.u32 %v2046_v19, %v1591_v40  ;;  %v1525_v19 = vld [vmem:[%s3710_s2 + $0x8] sm:$0xf] }
  0x69   :  { %v2038_v63 = vld [vmem:[%s3710_s2 + $0x4c] sm:$0xf]  ;;  %v2034_v40 = vld [vmem:[%s3710_s2 + $0x24] sm:$0xf0] }
  0x6a   :  { %974 = vmatpush.bf16.msrb.mxu0 %v2671_v17  ;;  %987 = vmatpush.bf16.msrb.mxu1 %v2673_v18  ;;  %3825 = vst [vmem:[#allocation34_spill] sm:$0xff] %v2772_v0  ;;  %v1559_v11 = vld [vmem:[%s3710_s2 + $0x68] sm:$0xf0]  ;;  %v1767_v17 = vld [vmem:[%s3710_s2 + $0x1f8] sm:$0xf0] }
  0x6e   :  { %1019 = vmatpush.bf16.msra.mxu0 %v2675_v16  ;;  %1032 = vmatpush.bf16.msra.mxu1 %v2677_v41  ;;  %v2075_v41 = vld [vmem:[%s3710_s2 + $0x16c] sm:$0xf0] }
  0x6f   :  { %v1949_v16 = vld [vmem:[%s3710_s2 + $0x350] sm:$0xf] }
  0x72   :  { %1020 = vmatpush.bf16.msra.mxu0 %v2699_v45  ;;  %1033 = vmatpush.bf16.msra.mxu1 %v2701_v48  ;;  %v2083_v48 = vld [vmem:[%s3710_s2 + $0x1ac] sm:$0xf0] }
  0x76   :  { %1021 = vmatpush.bf16.msra.mxu0 %v2718_v24  ;;  %1034 = vmatpush.bf16.msra.mxu1 %v2720_v15 }
  0x7a   :  { %1022 = vmatpush.bf16.msra.mxu0 %v2736_v58  ;;  %1035 = vmatpush.bf16.msra.mxu1 %v2738_v61  ;;  %v1847_v61 = vld [vmem:[%s3710_s2 + $0x2a8] sm:$0xf0] }
  0x7b   :  { %v2774_v2 = vor.u32 %v2110_v55, %v1847_v61  ;;  %v2102_v58 = vld [vmem:[%s3710_s2 + $0x24c] sm:$0xf]  ;;  %v2790_v55 = vor.u32 %v2038_v63, %v1559_v11  ;;  %v2805_v63 = vor.u32 %v2034_v40, %v1525_v19 }
  0x7c   :  { %v1527_v11 = vld [vmem:[%s3710_s2 + $0x28] sm:$0xf0] }
  0x7d   :  { %3826 = vst [vmem:[#allocation35_spill] sm:$0xff] %v2774_v2  ;;  %v2094_v19 = vld [vmem:[%s3710_s2 + $0x20c] sm:$0xf]  ;;  %1000 = vmatpush.bf16.msrb.mxu2 %v2805_v63 }
  0x7e   :  { %1023 = vmatpush.bf16.msra.mxu0 %v2754_v44  ;;  %1036 = vmatpush.bf16.msra.mxu1 %v2756_v42  ;;  %v1815_v42 = vld [vmem:[%s3710_s2 + $0x268] sm:$0xf0]  ;;  %3827 = vst [vmem:[#allocation36_spill] sm:$0xff] %v2790_v55 }
  0x7f   :  { %v2792_v61 = vor.u32 %v2102_v58, %v1815_v42  ;;  %3829 = vst [vmem:[#allocation38_spill] sm:$0xff] %v2805_v63  ;;  %v2098_v58 = vld [vmem:[%s3710_s2 + $0x224] sm:$0xf0]  ;;  %v2030_v42 = vld [vmem:[%s3710_s2 + $0xc] sm:$0xf] }
  0x80   :  { %v1783_v40 = vld [vmem:[%s3710_s2 + $0x228] sm:$0xf0]  ;;  %v2015_v63 = vld [vmem:[%s3710_s2 + $0x3f0] sm:$0xf0] }
  0x81   :  { %3828 = vst [vmem:[#allocation37_spill] sm:$0xff] %v2792_v61 }
  0x82   :  { %1024 = vmatpush.bf16.msra.mxu0 %v2772_v0  ;;  %1037 = vmatpush.bf16.msra.mxu1 %v2774_v2  ;;  %v1781_v2 = vld [vmem:[%s3710_s2 + $0x208] sm:$0xf]  ;;  %v2827_v0 = vor.u32 %v2094_v19, %v1783_v40 }
  0x84   :  { %3832 = vst [vmem:[#allocation41_spill] sm:$0xff] %v2827_v0 }
  0x86   :  { %1025 = vmatpush.bf16.msra.mxu0 %v2790_v55  ;;  %1038 = vmatpush.bf16.msra.mxu1 %v2792_v61  ;;  %v2816_v61 = vor.u32 %v2098_v58, %v1781_v2  ;;  %v2818_v55 = vor.u32 %v2030_v42, %v1527_v11  ;;  %v155_v2 = vld [vmem:[%s3712_s3] sm:$0xff]  ;;  %v2160_v58 = vmov 0   ;;  %v2837_v11 = vld [vmem:[#allocation1 + $0x9] sm:$0xf] }
  0x87   :  { %2158 = vset.pattern.permute.xlu0 %v2160_v58  ;;  %v2835_v42 = vld [vmem:[#allocation1] sm:$0xf]  ;;  %v2013_v58 = vld [vmem:[%s3710_s2 + $0x3d0] sm:$0xf] }
  0x88   :  { %3830 = vst [vmem:[#allocation39_spill] sm:$0xff] %v2816_v61  ;;  %1013 = vmatpush.bf16.msrb.mxu3 %v2816_v61  ;;  %298 = vperm.xlu0 %2158, %v155_v2   ;;  %v2091_v2 = vld [vmem:[%s3710_s2 + $0x1ec] sm:$0xf0]  ;;  %v2151_v61 = vld [vmem:[%s3710_s2 + $0x3d4] sm:$0xf] }
  0x89   :  { %3831 = vst [vmem:[#allocation40_spill] sm:$0xff] %v2818_v55  ;;  %v2885_v62 = vor.u32 %v2151_v61, %v2015_v63  ;;  %v2143_v61 = vld [vmem:[%s3710_s2 + $0x394] sm:$0xf] }
  0x8a   :  { %1026 = vmatpush.bf16.msra.mxu0 %v2818_v55  ;;  %1039 = vmatpush.bf16.msra.mxu1 %v2827_v0  ;;  %1170 = vst [vmem:[#allocation1] ss:$9 sm:$0xff] %v2195_v1  ;;  %v1757_v0 = vld [vmem:[%s3710_s2 + $0x1d0] sm:$0xf]  ;;  %v1759_v55 = vld [vmem:[%s3710_s2 + $0x1f0] sm:$0xf0] }
  0x8b   :  { %v2155_v1 = vld [vmem:[%s3710_s2 + $0x3ec] sm:$0xf0]  ;;  %v2873_v24 = vor.u32 %v2091_v2, %v1757_v0  ;;  %3836 = vst [vmem:[#allocation45_spill] sm:$0xff] %v2885_v62  ;;  %v2079_v0 = vld [vmem:[%s3710_s2 + $0x194] sm:$0xf] }
  0x8c   :  { %v2875_v22 = vor.u32 %v2155_v1, %v2013_v58  ;;  %v1983_v63 = vld [vmem:[%s3710_s2 + $0x3b0] sm:$0xf0]  ;;  %v2915_v1 = vor.u32 %v2083_v48, %v1725_v3 }
  0x8d   :  { %3833 = vst [vmem:[#allocation42_spill] sm:$0xff] %v2873_v24  ;;  %v2932_v48 = vor.u32 %v2143_v61, %v1983_v63  ;;  %v2952_v63 = vor.u32 %v2075_v41, %v1693_v50  ;;  %v1917_v50 = vld [vmem:[%s3710_s2 + $0x310] sm:$0xf]  ;;  %v2063_v41 = vld [vmem:[%s3710_s2 + $0x114] sm:$0xf] }
  0x8e   :  { %3834 = vst [vmem:[#allocation43_spill] sm:$0xff] %v2875_v22 }
  0x8f   :  { %3837 = vst [vmem:[#allocation46_spill] sm:$0xff] %v2915_v1 }
  0x90   :  { %3840 = vst [vmem:[#allocation49_spill] sm:$0xff] %v2932_v48 }
  0x91   :  { %v2840_v19 = vld [vmem:[#allocation1] sm:$0xf]  ;;  %v2842_v40 = vld [vmem:[#allocation1 + $0x9] sm:$0xf]  ;;  %3841 = vst [vmem:[#allocation50_spill] sm:$0xff] %v2952_v63 }
  0x92   :  { %1175 = vst [vmem:[#allocation1] ss:$9 sm:$0xff] %v2201_v4  ;;  %v2087_v4 = vld [vmem:[%s3710_s2 + $0x1d4] sm:$0xf] }
  0x93   :  { %v2883_v45 = vor.u32 %v2087_v4, %v1759_v55  ;;  %v1727_v55 = vld [vmem:[%s3710_s2 + $0x1b0] sm:$0xf0] }
  0x94   :  { %v2930_v3 = vor.u32 %v2079_v0, %v1727_v55  ;;  %v1951_v0 = vld [vmem:[%s3710_s2 + $0x370] sm:$0xf0] }
  0x95   :  { %3835 = vst [vmem:[#allocation44_spill] sm:$0xff] %v2883_v45 }
  0x96   :  { %3839 = vst [vmem:[#allocation48_spill] sm:$0xff] %v2930_v3 }
  0x99   :  { %v2909_v2 = vld [vmem:[#allocation1] sm:$0xf]  ;;  %v2911_v58 = vld [vmem:[#allocation1 + $0x9] sm:$0xf] }
  0x9a   :  { %1180 = vst [vmem:[#allocation1] ss:$9 sm:$0xff] %v2207_v7 }
  0xca   :  { %v277_v44 = vpop.f32.mrf.mxu0  ;;  %v290_v47 = vpop.f32.mrf.mxu1 }
  0xcb   :  { %v2869_v28 = vpack.c.bf16 %v277_v44, %v277_v44  ;;  %v2871_v15 = vpack.c.bf16 %v290_v47, %v290_v47  ;;  %v1981_v47 = vld [vmem:[%s3710_s2 + $0x390] sm:$0xf] }
  0xcc   :  { %v2147_v44 = vld [vmem:[%s3710_s2 + $0x3ac] sm:$0xf0] }
  0xcd   :  { %949 = vmatmul.bf16.vlgmr.msra.gmra.mxu2 %v2869_v28  ;;  %962 = vmatmul.bf16.vlgmr.msra.gmra.mxu3 %v2871_v15  ;;  %v2917_v4 = vor.u32 %v2147_v44, %v1981_v47  ;;  %v2139_v47 = vld [vmem:[%s3710_s2 + $0x36c] sm:$0xf0]  ;;  %v2071_v44 = vld [vmem:[%s3710_s2 + $0x154] sm:$0xf] }
  0xce   :  { %975 = vmatmul.bf16.vlgmr.msrb.gmra.mxu0 %v2869_v28  ;;  %988 = vmatmul.bf16.vlgmr.msrb.gmra.mxu1 %v2871_v15 }
  0xcf   :  { %1045 = vmatpush.bf16.msra.mxu2 %v2873_v24  ;;  %1058 = vmatpush.bf16.msra.mxu3 %v2875_v22  ;;  %3838 = vst [vmem:[#allocation47_spill] sm:$0xff] %v2917_v4  ;;  %v1695_v22 = vld [vmem:[%s3710_s2 + $0x170] sm:$0xf0]  ;;  %v1661_v24 = vld [vmem:[%s3710_s2 + $0x110] sm:$0xf] }
  0xd0   :  { %1071 = vmatpush.bf16.msrb.mxu0 %v2883_v45  ;;  %1084 = vmatpush.bf16.msrb.mxu1 %v2885_v62  ;;  %v2135_v62 = vld [vmem:[%s3710_s2 + $0x354] sm:$0xf]  ;;  %v2954_v45 = vor.u32 %v2139_v47, %v1949_v16  ;;  %v2964_v7 = vor.u32 %v2071_v44, %v1695_v22  ;;  %v2131_v16 = vld [vmem:[%s3710_s2 + $0x32c] sm:$0xf0] }
  0xd1   :  { %v1663_v47 = vld [vmem:[%s3710_s2 + $0x130] sm:$0xf0]  ;;  %v1629_v44 = vld [vmem:[%s3710_s2 + $0xd0] sm:$0xf] }
  0xd2   :  { %v279_v55 = vpop.f32.mrf.mxu0  ;;  %v292_v61 = vpop.f32.mrf.mxu1  ;;  %3842 = vst [vmem:[#allocation51_spill] sm:$0xff] %v2954_v45  ;;  %v1919_v22 = vld [vmem:[%s3710_s2 + $0x330] sm:$0xf0] }
  0xd3   :  { %1046 = vmatpush.bf16.msra.mxu2 %v2915_v1  ;;  %1059 = vmatpush.bf16.msra.mxu3 %v2917_v4  ;;  %3843 = vst [vmem:[#allocation52_spill] sm:$0xff] %v2964_v7  ;;  %v2966_v55 = vor.u32 %v2135_v62, %v1951_v0  ;;  %v2127_v62 = vld [vmem:[%s3710_s2 + $0x314] sm:$0xf]  ;;  %v2991_v0 = vor.u32 %v2067_v46, %v1661_v24  ;;  %v2123_v4 = vld [vmem:[%s3710_s2 + $0x2ec] sm:$0xf0] }
  0xd4   :  { %1072 = vmatpush.bf16.msrb.mxu0 %v2930_v3  ;;  %1085 = vmatpush.bf16.msrb.mxu1 %v2932_v48  ;;  %v2993_v61 = vor.u32 %v2131_v16, %v1917_v50  ;;  %v2059_v48 = vld [vmem:[%s3710_s2 + $0xec] sm:$0xf0]  ;;  %v3006_v46 = vor.u32 %v2063_v41, %v1663_v47  ;;  %v3008_v24 = vor.u32 %v2127_v62, %v1919_v22  ;;  %v2055_v50 = vld [vmem:[%s3710_s2 + $0xd4] sm:$0xf]  ;;  %v3022_v41 = vld [vmem:[#allocation1] sm:$0xf] }
  0xd5   :  { %3844 = vst [vmem:[#allocation53_spill] sm:$0xff] %v2966_v55  ;;  %v1885_v3 = vld [vmem:[%s3710_s2 + $0x2d0] sm:$0xf]  ;;  %v1631_v16 = vld [vmem:[%s3710_s2 + $0xf0] sm:$0xf0]  ;;  %v3029_v62 = vor.u32 %v2059_v48, %v1629_v44 }
  0xd6   :  { %3845 = vst [vmem:[#allocation54_spill] sm:$0xff] %v2991_v0  ;;  %v3024_v47 = vld [vmem:[#allocation1 + $0x9] sm:$0xf]  ;;  %v3031_v22 = vor.u32 %v2123_v4, %v1885_v3  ;;  %v1853_v4 = vld [vmem:[%s3710_s2 + $0x290] sm:$0xf] }
  0xd7   :  { %1047 = vmatpush.bf16.msra.mxu2 %v2952_v63  ;;  %1060 = vmatpush.bf16.msra.mxu3 %v2954_v45  ;;  %3846 = vst [vmem:[#allocation55_spill] sm:$0xff] %v2993_v61  ;;  %v2119_v45 = vld [vmem:[%s3710_s2 + $0x2d4] sm:$0xf]  ;;  %v2051_v63 = vld [vmem:[%s3710_s2 + $0xac] sm:$0xf0] }
  0xd8   :  { %1073 = vmatpush.bf16.msrb.mxu0 %v2964_v7  ;;  %1086 = vmatpush.bf16.msrb.mxu1 %v2966_v55  ;;  %3847 = vst [vmem:[#allocation56_spill] sm:$0xff] %v3006_v46  ;;  %v1887_v55 = vld [vmem:[%s3710_s2 + $0x2f0] sm:$0xf0]  ;;  %v1597_v7 = vld [vmem:[%s3710_s2 + $0x90] sm:$0xf] }
  0xd9   :  { %3848 = vst [vmem:[#allocation57_spill] sm:$0xff] %v3008_v24  ;;  %v2115_v3 = vld [vmem:[%s3710_s2 + $0x2ac] sm:$0xf0]  ;;  %v2047_v48 = vld [vmem:[%s3710_s2 + $0x94] sm:$0xf] }
  0xda   :  { %1185 = vst [vmem:[#allocation1] ss:$9 sm:$0xff] %v2213_v10  ;;  %v3041_v10 = vor.u32 %v2055_v50, %v1631_v16  ;;  %v1855_v44 = vld [vmem:[%s3710_s2 + $0x2b0] sm:$0xf0]  ;;  %v1565_v50 = vld [vmem:[%s3710_s2 + $0x50] sm:$0xf]  ;;  %v3072_v16 = vor.u32 %v2051_v63, %v1597_v7 }
  0xdb   :  { %1048 = vmatpush.bf16.msra.mxu2 %v2991_v0  ;;  %1061 = vmatpush.bf16.msra.mxu3 %v2993_v61  ;;  %3849 = vst [vmem:[#allocation58_spill] sm:$0xff] %v3029_v62  ;;  %v3043_v0 = vor.u32 %v2119_v45, %v1887_v55  ;;  %v1599_v45 = vld [vmem:[%s3710_s2 + $0xb0] sm:$0xf0]  ;;  %v1821_v61 = vld [vmem:[%s3710_s2 + $0x250] sm:$0xf] }
  0xdc   :  { %3850 = vst [vmem:[#allocation59_spill] sm:$0xff] %v3031_v22  ;;  %1074 = vmatpush.bf16.msrb.mxu0 %v3006_v46  ;;  %1087 = vmatpush.bf16.msrb.mxu1 %v3008_v24  ;;  %v2111_v55 = vld [vmem:[%s3710_s2 + $0x294] sm:$0xf]  ;;  %v3074_v24 = vor.u32 %v2115_v3, %v1853_v4  ;;  %v2043_v46 = vld [vmem:[%s3710_s2 + $0x6c] sm:$0xf0]  ;;  %v3087_v63 = vor.u32 %v2047_v48, %v1599_v45 }
  0xdd   :  { %3851 = vst [vmem:[#allocation60_spill] sm:$0xff] %v3041_v10  ;;  %1001 = vmatmul.bf16.vlgmr.msrb.gmra.mxu2 %v2869_v28  ;;  %1014 = vmatmul.bf16.vlgmr.msrb.gmra.mxu3 %v2871_v15  ;;  %v2107_v1 = vld [vmem:[%s3710_s2 + $0x26c] sm:$0xf0]  ;;  %v3089_v7 = vor.u32 %v2111_v55, %v1855_v44  ;;  %v2039_v4 = vld [vmem:[%s3710_s2 + $0x54] sm:$0xf]  ;;  %v3113_v44 = vor.u32 %v2043_v46, %v1565_v50 }
  0xde   :  { %3852 = vst [vmem:[#allocation61_spill] sm:$0xff] %v3043_v0  ;;  %1027 = vmatmul.bf16.vlgmr.msra.gmra.mxu0 %v2869_v28  ;;  %1040 = vmatmul.bf16.vlgmr.msra.gmra.mxu1 %v2871_v15  ;;  %v1567_v3 = vld [vmem:[%s3710_s2 + $0x70] sm:$0xf0]  ;;  %v1533_v55 = vld [vmem:[%s3710_s2 + $0x10] sm:$0xf] }
  0xdf   :  { %1049 = vmatpush.bf16.msra.mxu2 %v3029_v62  ;;  %1062 = vmatpush.bf16.msra.mxu3 %v3031_v22  ;;  %3853 = vst [vmem:[#allocation62_spill] sm:$0xff] %v3072_v16  ;;  %v2103_v22 = vld [vmem:[%s3710_s2 + $0x254] sm:$0xf]  ;;  %v2035_v62 = vld [vmem:[%s3710_s2 + $0x2c] sm:$0xf0]  ;;  %v3128_v46 = vor.u32 %v2039_v4, %v1567_v3 }
  0xe0   :  { %3854 = vst [vmem:[#allocation63_spill] sm:$0xff] %v3074_v24  ;;  %1075 = vmatpush.bf16.msrb.mxu0 %v3041_v10  ;;  %1088 = vmatpush.bf16.msrb.mxu1 %v3043_v0  ;;  %v1823_v0 = vld [vmem:[%s3710_s2 + $0x270] sm:$0xf0]  ;;  %v3115_v10 = vor.u32 %v2107_v1, %v1821_v61  ;;  %v2021_v4 = vld [vmem:[%s3710_s2 + $0x3d8] sm:$0xf] }
  0xe1   :  { %3855 = vst [vmem:[#allocation64_spill] sm:$0xff] %v3087_v63  ;;  %v3103_v48 = vld [vmem:[#allocation1] sm:$0xf]  ;;  %v3105_v45 = vld [vmem:[#allocation1 + $0x9] sm:$0xf]  ;;  %v3130_v1 = vor.u32 %v2103_v22, %v1823_v0 }
  0xe2   :  { %3856 = vst [vmem:[#allocation65_spill] sm:$0xff] %v3089_v7  ;;  %v2031_v61 = vld [vmem:[%s3710_s2 + $0x14] sm:$0xf]  ;;  %v1765_v0 = vld [vmem:[%s3710_s2 + $0x1d8] sm:$0xf] }
  0xe3   :  { %1190 = vst [vmem:[#allocation1] ss:$9 sm:$0xff] %v2219_v13  ;;  %1050 = vmatpush.bf16.msra.mxu2 %v3072_v16  ;;  %1063 = vmatpush.bf16.msra.mxu3 %v3074_v24  ;;  %v2099_v13 = vld [vmem:[%s3710_s2 + $0x22c] sm:$0xf0]  ;;  %v1535_v50 = vld [vmem:[%s3710_s2 + $0x30] sm:$0xf0]  ;;  %v3161_v16 = vor.u32 %v2035_v62, %v1533_v55 }
  0xe4   :  { %3857 = vst [vmem:[#allocation66_spill] sm:$0xff] %v3113_v44  ;;  %1076 = vmatpush.bf16.msrb.mxu0 %v3087_v63  ;;  %1089 = vmatpush.bf16.msrb.mxu1 %v3089_v7  ;;  %v2095_v24 = vld [vmem:[%s3710_s2 + $0x214] sm:$0xf]  ;;  %v2092_v22 = vld [vmem:[%s3710_s2 + $0x1f4] sm:$0xf0]  ;;  %v3163_v18 = vor.u32 %v2099_v13, %v1789_v33  ;;  %v3176_v62 = vor.u32 %v2031_v61, %v1535_v50 }
  0xe5   :  { %3858 = vst [vmem:[#allocation67_spill] sm:$0xff] %v3115_v10  ;;  %v1791_v7 = vld [vmem:[%s3710_s2 + $0x230] sm:$0xf0]  ;;  %v2156_v3 = vld [vmem:[%s3710_s2 + $0x3f4] sm:$0xf0] }
  0xe6   :  { %3859 = vst [vmem:[#allocation68_spill] sm:$0xff] %v3128_v46  ;;  %v2088_v63 = vld [vmem:[%s3710_s2 + $0x1dc] sm:$0xf]  ;;  %v3178_v33 = vor.u32 %v2095_v24, %v1791_v7  ;;  %v1733_v55 = vld [vmem:[%s3710_s2 + $0x198] sm:$0xf] }
  0xe7   :  { %3860 = vst [vmem:[#allocation69_spill] sm:$0xff] %v3130_v1  ;;  %1051 = vmatpush.bf16.msra.mxu2 %v3113_v44  ;;  %1064 = vmatpush.bf16.msra.mxu3 %v3115_v10  ;;  %v2084_v13 = vld [vmem:[%s3710_s2 + $0x1b4] sm:$0xf0]  ;;  %v3189_v44 = vor.u32 %v2092_v22, %v1765_v0  ;;  %v3200_v50 = vor.u32 %v2088_v63, %v1767_v17  ;;  %v1735_v0 = vld [vmem:[%s3710_s2 + $0x1b8] sm:$0xf0] }
  0xe8   :  { %3861 = vst [vmem:[#allocation70_spill] sm:$0xff] %v3161_v16  ;;  %1077 = vmatpush.bf16.msrb.mxu0 %v3128_v46  ;;  %1090 = vmatpush.bf16.msrb.mxu1 %v3130_v1  ;;  %v1989_v10 = vld [vmem:[%s3710_s2 + $0x398] sm:$0xf]  ;;  %v3191_v46 = vor.u32 %v2156_v3, %v2021_v4  ;;  %v3202_v1 = vor.u32 %v2152_v32, %v2023_v20  ;;  %v2144_v17 = vld [vmem:[%s3710_s2 + $0x39c] sm:$0xf]  ;;  %v1205_v3 = vunpack.c.l.b16 %v2835_v42  ;;  %v1209_v42 = vunpack.c.l.b16 %v2909_v2 }
  0xe9   :  { %3862 = vst [vmem:[#allocation71_spill] sm:$0xff] %v3163_v18  ;;  %v2148_v24 = vld [vmem:[%s3710_s2 + $0x3b4] sm:$0xf0]  ;;  %v1991_v20 = vld [vmem:[%s3710_s2 + $0x3b8] sm:$0xf0] }
  0xea   :  { %3863 = vst [vmem:[#allocation72_spill] sm:$0xff] %v3176_v62  ;;  %v3196_v7 = vld [vmem:[#allocation1] sm:$0xf]  ;;  %v3198_v61 = vld [vmem:[#allocation1 + $0x9] sm:$0xf]  ;;  %v3223_v32 = vor.u32 %v2148_v24, %v1989_v10  ;;  %v1207_v24 = vunpack.c.l.b16 %v2840_v19  ;;  %v1221_v2 = vrot.slane %v1205_v3, 1  ;;  %v1212_v3 = vunpack.c.l.b16 %v3024_v47 }
  0xeb   :  { %3864 = vst [vmem:[#allocation73_spill] sm:$0xff] %v3178_v33  ;;  %1052 = vmatpush.bf16.msra.mxu2 %v3161_v16  ;;  %1065 = vmatpush.bf16.msra.mxu3 %v3163_v18  ;;  %v1701_v63 = vld [vmem:[%s3710_s2 + $0x158] sm:$0xf]  ;;  %v2136_v18 = vld [vmem:[%s3710_s2 + $0x35c] sm:$0xf] }
  0xec   :  { %3865 = vst [vmem:[#allocation74_spill] sm:$0xff] %v3189_v44  ;;  %1078 = vmatpush.bf16.msrb.mxu0 %v3176_v62  ;;  %1091 = vmatpush.bf16.msrb.mxu1 %v3178_v33  ;;  %v2076_v22 = vld [vmem:[%s3710_s2 + $0x174] sm:$0xf0]  ;;  %v3252_v33 = vor.u32 %v2080_v36, %v1735_v0  ;;  %v3254_v62 = vor.u32 %v2144_v17, %v1991_v20  ;;  %v1959_v19 = vld [vmem:[%s3710_s2 + $0x378] sm:$0xf0]  ;;  %v1223_v17 = vrot.slane %v1209_v42, 7  ;;  %v1208_v20 = vunpack.c.l.b16 %v2842_v40 }
  0xed   :  { %3866 = vst [vmem:[#allocation75_spill] sm:$0xff] %v3191_v46  ;;  %v1957_v4 = vld [vmem:[%s3710_s2 + $0x358] sm:$0xf]  ;;  %v1222_v42 = vsel %vm221_vm0, %v1207_v24, %v1221_v2  ;;  %v1214_v40 = vunpack.c.l.b16 %v3105_v45  ;;  %v2064_v45 = vld [vmem:[%s3710_s2 + $0x11c] sm:$0xf] }
  0xee   :  { %3867 = vst [vmem:[#allocation76_spill] sm:$0xff] %v3200_v50  ;;  %v2140_v10 = vld [vmem:[%s3710_s2 + $0x374] sm:$0xf0]  ;;  %1053 = vmatmul.bf16.vlgmr.msra.gmra.mxu2 %v2869_v28  ;;  %1066 = vmatmul.bf16.vlgmr.msra.gmra.mxu3 %v2871_v15 }
  0xef   :  { %3868 = vst [vmem:[#allocation77_spill] sm:$0xff] %v3202_v1  ;;  %1097 = vmatpush.bf16.msrb.mxu2 %v3189_v44  ;;  %1110 = vmatpush.bf16.msrb.mxu3 %v3191_v46  ;;  %v1211_v44 = vunpack.c.l.b16 %v3022_v41  ;;  %v1206_v46 = vunpack.c.l.b16 %v2837_v11  ;;  %v1210_v41 = vunpack.c.l.b16 %v2911_v58  ;;  %v3265_v11 = vor.u32 %v2076_v22, %v1701_v63  ;;  %v1669_v36 = vld [vmem:[%s3710_s2 + $0x118] sm:$0xf] }
  0xf0   :  { %1195 = vst [vmem:[#allocation1] ss:$9 sm:$0xff] %v2234_v21  ;;  %v3221_v21 = vor.u32 %v2084_v13, %v1733_v55  ;;  %v2072_v55 = vld [vmem:[%s3710_s2 + $0x15c] sm:$0xf]  ;;  %1123 = vmatpush.bf16.msra.mxu0 %v3200_v50  ;;  %1136 = vmatpush.bf16.msra.mxu1 %v3202_v1  ;;  %v2068_v0 = vld [vmem:[%s3710_s2 + $0x134] sm:$0xf0]  ;;  %v1213_v22 = vunpack.c.l.b16 %v3103_v48  ;;  %v3288_v47 = vor.u32 %v2140_v10, %v1957_v4 }
  0xf1   :  { %v1703_v13 = vld [vmem:[%s3710_s2 + $0x178] sm:$0xf0]  ;;  %1079 = vmatmul.bf16.vlgmr.msrb.gmra.mxu0 %v2869_v28  ;;  %1092 = vmatmul.bf16.vlgmr.msrb.gmra.mxu1 %v2871_v15  ;;  %v1925_v58 = vld [vmem:[%s3710_s2 + $0x318] sm:$0xf]  ;;  %v1225_v1 = vrot.slane %v1211_v44, 6  ;;  %v1235_v60 = vrot.slane %v1206_v46, 1  ;;  %v3294_v48 = vor.u32 %v2136_v18, %v1959_v19  ;;  %v1224_v44 = vsel %vm224_vm1, %v1223_v17, %v1222_v42 }
  0xf2   :  { %v2132_v63 = vld [vmem:[%s3710_s2 + $0x334] sm:$0xf0]  ;;  %v3290_v50 = vor.u32 %v2072_v55, %v1703_v13  ;;  %v1237_v59 = vrot.slane %v1210_v41, 7  ;;  %v1239_v4 = vrot.slane %v1212_v3, 6  ;;  %v1671_v46 = vld [vmem:[%s3710_s2 + $0x138] sm:$0xf0]  ;;  %v1215_v55 = vunpack.c.l.b16 %v3196_v7 }
  0xf3   :  { %1098 = vmatpush.bf16.msrb.mxu2 %v3221_v21  ;;  %1111 = vmatpush.bf16.msrb.mxu3 %v3223_v32  ;;  %v2128_v10 = vld [vmem:[%s3710_s2 + $0x31c] sm:$0xf]  ;;  %v1216_v13 = vunpack.c.l.b16 %v3198_v61  ;;  %v3313_v24 = vor.u32 %v2068_v0, %v1669_v36  ;;  %v1637_v19 = vld [vmem:[%s3710_s2 + $0xd8] sm:$0xf]  ;;  %v1227_v41 = vrot.slane %v1213_v22, 5  ;;  %v1241_v3 = vrot.slane %v1214_v40, 5 }
  0xf4   :  { %1124 = vmatpush.bf16.msra.mxu0 %v3252_v33  ;;  %1137 = vmatpush.bf16.msra.mxu1 %v3254_v62  ;;  %v1927_v18 = vld [vmem:[%s3710_s2 + $0x338] sm:$0xf0]  ;;  %v2060_v2 = vld [vmem:[%s3710_s2 + $0xf4] sm:$0xf0]  ;;  %v3324_v7 = vor.u32 %v2132_v63, %v1925_v58 }
  0xf5   :  { %v2124_v61 = vld [vmem:[%s3710_s2 + $0x2f4] sm:$0xf0]  ;;  %v2056_v36 = vld [vmem:[%s3710_s2 + $0xdc] sm:$0xf]  ;;  %v3341_v58 = vor.u32 %v2128_v10, %v1927_v18 }
  0xf6   :  { %v1639_v63 = vld [vmem:[%s3710_s2 + $0xf8] sm:$0xf0]  ;;  %v2052_v10 = vld [vmem:[%s3710_s2 + $0xb4] sm:$0xf0] }
  0xf7   :  { %v1196_v16 = vld [vmem:[#allocation1] sm:$0xf]  ;;  %v1198_v26 = vld [vmem:[#allocation1 + $0x9] sm:$0xf]  ;;  %1099 = vmatpush.bf16.msrb.mxu2 %v3265_v11  ;;  %1112 = vmatpush.bf16.msrb.mxu3 %v3288_v47  ;;  %3869 = vst [vmem:[#allocation78_spill] sm:$0xff] %v3341_v58 }
  0xf8   :  { %1200 = vst [vmem:[#allocation1] ss:$9 sm:$0xff] %v2282_v52  ;;  %v1236_v52 = vsel %vm221_vm0, %v1208_v20, %v1235_v60  ;;  %v1893_v60 = vld [vmem:[%s3710_s2 + $0x2d8] sm:$0xf]  ;;  %1125 = vmatpush.bf16.msra.mxu0 %v3290_v50  ;;  %1138 = vmatpush.bf16.msra.mxu1 %v3294_v48  ;;  %v3339_v20 = vor.u32 %v2064_v45, %v1671_v46  ;;  %v2120_v22 = vld [vmem:[%s3710_s2 + $0x2dc] sm:$0xf]  ;;  %v1217_v42 = vunpack.c.l.b16 %v1196_v16  ;;  %v1218_v40 = vunpack.c.l.b16 %v1198_v26 }
  0xf9   :  { %v1238_v17 = vsel %vm224_vm1, %v1237_v59, %v1236_v52  ;;  %v1226_v59 = vsel %vm227_vm2, %v1225_v1, %v1224_v44  ;;  %v1895_v1 = vld [vmem:[%s3710_s2 + $0x2f8] sm:$0xf0]  ;;  %v1229_v44 = vrot.slane %v1215_v55, 4  ;;  %v3352_v45 = vor.u32 %v2060_v2, %v1637_v19  ;;  %v1605_v46 = vld [vmem:[%s3710_s2 + $0x98] sm:$0xf] }
  0xfa   :  { %v1240_v0 = vsel %vm227_vm2, %v1239_v4, %v1238_v17  ;;  %v1243_v4 = vrot.slane %v1216_v13, 4  ;;  %v1861_v18 = vld [vmem:[%s3710_s2 + $0x298] sm:$0xf]  ;;  %v1228_v52 = vsel %vm230_vm3, %v1227_v41, %v1226_v59  ;;  %v3367_v16 = vor.u32 %v2124_v61, %v1893_v60  ;;  %v2048_v41 = vld [vmem:[%s3710_s2 + $0x9c] sm:$0xf] }
  0xfb   :  { %v1242_v26 = vsel %vm230_vm3, %v1241_v3, %v1240_v0  ;;  %1100 = vmatpush.bf16.msrb.mxu2 %v3313_v24  ;;  %1113 = vmatpush.bf16.msrb.mxu3 %v3324_v7  ;;  %v3369_v55 = vor.u32 %v2056_v36, %v1639_v63  ;;  %v3371_v13 = vor.u32 %v2120_v22, %v1895_v1  ;;  %v2116_v19 = vld [vmem:[%s3710_s2 + $0x2b4] sm:$0xf0]  ;;  %v1607_v3 = vld [vmem:[%s3710_s2 + $0xb8] sm:$0xf0]  ;;  %v1231_v61 = vrot.slane %v1217_v42, 3 }
  0xfc   :  { %1126 = vmatpush.bf16.msra.mxu0 %v3339_v20  ;;  %1139 = vmatpush.bf16.msra.mxu1 %v3341_v58  ;;  %v1245_v59 = vrot.slane %v1218_v40, 3  ;;  %v2112_v0 = vld [vmem:[%s3710_s2 + $0x29c] sm:$0xf]  ;;  %v1230_v22 = vsel %vm233_vm4, %v1229_v44, %v1228_v52  ;;  %v1244_v1 = vsel %vm233_vm4, %v1243_v4, %v1242_v26  ;;  %v3392_v58 = vor.u32 %v2052_v10, %v1605_v46  ;;  %v2044_v44 = vld [vmem:[%s3710_s2 + $0x74] sm:$0xf0] }
  0xfd   :  { %v1863_v63 = vld [vmem:[%s3710_s2 + $0x2b8] sm:$0xf0]  ;;  %v3396_v42 = vor.u32 %v2116_v19, %v1861_v18  ;;  %v3398_v40 = vor.u32 %v2048_v41, %v1607_v3  ;;  %v1829_v10 = vld [vmem:[%s3710_s2 + $0x258] sm:$0xf]  ;;  %v1232_v19 = vsel %vm236_vm5, %v1231_v61, %v1230_v22 }
  0xfe   :  { %v3408_v46 = vor.u32 %v2112_v0, %v1863_v63  ;;  %v2108_v18 = vld [vmem:[%s3710_s2 + $0x274] sm:$0xf0]  ;;  %v2040_v26 = vld [vmem:[%s3710_s2 + $0x5c] sm:$0xf] }
  0xff   :  { %v1201_v2 = vld [vmem:[#allocation1] sm:$0xf]  ;;  %v1203_v17 = vld [vmem:[#allocation1 + $0x9] sm:$0xf]  ;;  %1101 = vmatpush.bf16.msrb.mxu2 %v3352_v45  ;;  %1114 = vmatpush.bf16.msrb.mxu3 %v3367_v16  ;;  %3870 = vst [vmem:[#allocation79_spill] sm:$0xff] %v3398_v40  ;;  %v3434_v61 = vor.u32 %v2108_v18, %v1829_v10 }
 0x100   :  { %v1219_v60 = vunpack.c.l.b16 %v1201_v2  ;;  %v1220_v36 = vunpack.c.l.b16 %v1203_v17  ;;  %v1573_v2 = vld [vmem:[%s3710_s2 + $0x58] sm:$0xf]  ;;  %1127 = vmatpush.bf16.msra.mxu0 %v3369_v55  ;;  %1140 = vmatpush.bf16.msra.mxu1 %v3371_v13  ;;  %3871 = vst [vmem:[#allocation80_spill] sm:$0xff] %v3408_v46  ;;  %v1246_v17 = vsel %vm236_vm5, %v1245_v59, %v1244_v1  ;;  %v1575_v41 = vld [vmem:[%s3710_s2 + $0x78] sm:$0xf0] }
 0x101   :  { %v2104_v3 = vld [vmem:[%s3710_s2 + $0x25c] sm:$0xf]  ;;  %v1541_v59 = vld [vmem:[%s3710_s2 + $0x18] sm:$0xf]  ;;  %v3446_v1 = vor.u32 %v2040_v26, %v1575_v41 }
 0x102   :  { %v1233_v52 = vrot.slane %v1219_v60, 2  ;;  %v1247_v4 = vrot.slane %v1220_v36, 2  ;;  %v1831_v60 = vld [vmem:[%s3710_s2 + $0x278] sm:$0xf0]  ;;  %v3430_v36 = vor.u32 %v2044_v44, %v1573_v2  ;;  %v2036_v0 = vld [vmem:[%s3710_s2 + $0x34] sm:$0xf0] }
 0x103   :  { %1102 = vmatpush.bf16.msrb.mxu2 %v3392_v58  ;;  %1115 = vmatpush.bf16.msrb.mxu3 %v3396_v42  ;;  %v3448_v2 = vor.u32 %v2104_v3, %v1831_v60  ;;  %v1797_v44 = vld [vmem:[%s3710_s2 + $0x218] sm:$0xf]  ;;  %v2096_v18 = vld [vmem:[%s3710_s2 + $0x21c] sm:$0xf]  ;;  %v3470_v41 = vor.u32 %v2036_v0, %v1541_v59  ;;  %v3899_v0 = vld [vmem:[#allocation33_spill] sm:$0xff] }
 0x104   :  { %v1234_v63 = vsel %vm239_vm6, %v1233_v52, %v1232_v19  ;;  %v1248_v22 = vsel %vm239_vm6, %v1247_v4, %v1246_v17  ;;  %1128 = vmatpush.bf16.msra.mxu0 %v3398_v40  ;;  %1141 = vmatpush.bf16.msra.mxu1 %v3408_v46  ;;  %v2100_v10 = vld [vmem:[%s3710_s2 + $0x234] sm:$0xf0]  ;;  %v2032_v52 = vld [vmem:[%s3710_s2 + $0x1c] sm:$0xf] }
 0x105   :  { %v1543_v4 = vld [vmem:[%s3710_s2 + $0x38] sm:$0xf0]  ;;  %v1249_v19 = vpack.c.b16 %v1234_v63, %v1234_v63  ;;  %v1250_v17 = vpack.c.b16 %v1248_v22, %v1248_v22  ;;  %v3472_v3 = vor.u32 %v2100_v10, %v1797_v44  ;;  %v3901_v44 = vld [vmem:[#allocation19_spill] sm:$0xff]  ;;  %v3902_v10 = vld [vmem:[#allocation34_spill] sm:$0xff] }
 0x106   :  { %v1799_v26 = vld [vmem:[%s3710_s2 + $0x238] sm:$0xf0]  ;;  %v3476_v60 = vor.u32 %v2032_v52, %v1543_v4  ;;  %v3903_v52 = vld [vmem:[#allocation35_spill] sm:$0xff] }
 0x107   :  { %1103 = vmatpush.bf16.msrb.mxu2 %v3430_v36  ;;  %1116 = vmatpush.bf16.msrb.mxu3 %v3434_v61  ;;  %v3478_v46 = vor.u32 %v2096_v18, %v1799_v26  ;;  %v1252_v40 = vsel %vm261_vm7, %v1249_v19, 0  ;;  %v1255_v63 = vsel %vm261_vm7, %v1250_v17, 0  ;;  %v3898_v59 = vld [vmem:[#allocation32_spill] sm:$0xff]  ;;  %v3905_v18 = vld [vmem:[#allocation25_spill] sm:$0xff]  ;;  %v3908_v17 = vld [vmem:[#allocation38_spill] sm:$0xff] }
 0x108   :  { %1129 = vmatpush.bf16.msra.mxu0 %v3446_v1  ;;  %1142 = vmatpush.bf16.msra.mxu1 %v3448_v2  ;;  %v3900_v22 = vld [vmem:[#allocation16_spill] sm:$0xff]  ;;  %v3907_v19 = vld [vmem:[#allocation37_spill] sm:$0xff] }
 0x109   :  { %v3904_v4 = vld [vmem:[#allocation20_spill] sm:$0xff] }
 0x10a   :  { %v3906_v26 = vld [vmem:[#allocation36_spill] sm:$0xff] }
 0x10b   :  { %1104 = vmatpush.bf16.msrb.mxu2 %v3470_v41  ;;  %1117 = vmatpush.bf16.msrb.mxu3 %v3472_v3 }
 0x10c   :  { %1130 = vmatpush.bf16.msra.mxu0 %v3476_v60  ;;  %1143 = vmatpush.bf16.msra.mxu1 %v3478_v46 }
 0x10e   :  { %1105 = vmatmul.bf16.vlgmr.msrb.gmra.mxu2 %v2869_v28  ;;  %1118 = vmatmul.bf16.vlgmr.msrb.gmra.mxu3 %v2871_v15 }
 0x10f   :  { %1264 = vmatpush.bf16.msra.mxu2 %v1252_v40  ;;  %1277 = vmatpush.bf16.msra.mxu3 %v1255_v63  ;;  %v3897_v40 = vld [vmem:[#allocation15_spill] sm:$0xff] }
 0x110   :  { %1131 = vmatmul.bf16.vlgmr.msra.gmra.mxu0 %v2869_v28  ;;  %1144 = vmatmul.bf16.vlgmr.msra.gmra.mxu1 %v2871_v15  ;;  %v3891_v28 = vld [vmem:[#allocation29_spill] sm:$0xff]  ;;  %v3896_v15 = vld [vmem:[#allocation14_spill] sm:$0xff]  ;;  %v3909_v63 = vld [vmem:[#allocation39_spill] sm:$0xff] }
 0x111   :  { %1285 = vmatpush.bf16.msrb.mxu0 %v2236_v25  ;;  %1298 = vmatpush.bf16.msrb.mxu1 %v2241_v29  ;;  %v2159_v25 = vld [vmem:[%s3711_s1] sm:$0xf]  ;;  %v3872_v29 = vld [vmem:[#allocation2_spill] sm:$0xff] }
 0x113   :  { %1311 = vmatpush.bf16.msrb.mxu2 %v2397_v12  ;;  %1324 = vmatpush.bf16.msrb.mxu3 %v2399_v14  ;;  %v3883_v12 = vld [vmem:[#allocation24_spill] sm:$0xff] }
 0x114   :  { %v3884_v14 = vld [vmem:[#allocation8_spill] sm:$0xff] }
 0x115   :  { %1286 = vmatpush.bf16.msrb.mxu0 %v2257_v37  ;;  %1299 = vmatpush.bf16.msrb.mxu1 %v2259_v38  ;;  %v3873_v37 = vld [vmem:[#allocation3_spill] sm:$0xff]  ;;  %v3874_v38 = vld [vmem:[#allocation17_spill] sm:$0xff] }
 0x117   :  { %1312 = vmatpush.bf16.msrb.mxu2 %v2440_v34  ;;  %1325 = vmatpush.bf16.msrb.mxu3 %v2442_v35  ;;  %v3885_v34 = vld [vmem:[#allocation9_spill] sm:$0xff]  ;;  %v3886_v35 = vld [vmem:[#allocation26_spill] sm:$0xff] }
 0x119   :  { %1287 = vmatpush.bf16.msrb.mxu0 %v2271_v49  ;;  %1300 = vmatpush.bf16.msrb.mxu1 %v2285_v53  ;;  %v3875_v49 = vld [vmem:[#allocation18_spill] sm:$0xff]  ;;  %v3876_v53 = vld [vmem:[#allocation4_spill] sm:$0xff] }
 0x11b   :  { %1313 = vmatpush.bf16.msrb.mxu2 %v2479_v51  ;;  %1326 = vmatpush.bf16.msrb.mxu3 %v2481_v54  ;;  %v3887_v51 = vld [vmem:[#allocation27_spill] sm:$0xff]  ;;  %v3888_v54 = vld [vmem:[#allocation10_spill] sm:$0xff] }
 0x11d   :  { %1288 = vmatpush.bf16.msrb.mxu0 %v2302_v5  ;;  %1301 = vmatpush.bf16.msrb.mxu1 %v2305_v9  ;;  %v3877_v5 = vld [vmem:[#allocation5_spill] sm:$0xff] }
 0x11e   :  { %2027 = vmatmul.msk.bf16.vlgmr.msra.gmra.mxu2 %vm257_vm8, %v2159_v25  ;;  %2028 = vmatmul.msk.bf16.vlgmr.msra.gmra.mxu3 %vm257_vm8, %v2159_v25  ;;  %v3878_v9 = vld [vmem:[#allocation21_spill] sm:$0xff]  ;;  %v3557_v25 = vpop.permute.xlu0 %298 }
 0x11f   :  { %1314 = vmatpush.bf16.msrb.mxu2 %v2515_v6  ;;  %1327 = vmatpush.bf16.msrb.mxu3 %v2517_v8  ;;  %v3889_v6 = vld [vmem:[#allocation11_spill] sm:$0xff]  ;;  %v3890_v8 = vld [vmem:[#allocation28_spill] sm:$0xff] }
 0x121   :  { %1289 = vmatpush.bf16.msrb.mxu0 %v2323_v23  ;;  %1302 = vmatpush.bf16.msrb.mxu1 %v2328_v27  ;;  %v3879_v23 = vld [vmem:[#allocation22_spill] sm:$0xff] }
 0x122   :  { %v3880_v27 = vld [vmem:[#allocation6_spill] sm:$0xff] }
 0x123   :  { %1315 = vmatpush.bf16.msrb.mxu2 %v2551_v30  ;;  %1328 = vmatpush.bf16.msrb.mxu3 %v2553_v31  ;;  %v3892_v30 = vld [vmem:[#allocation12_spill] sm:$0xff]  ;;  %v3893_v31 = vld [vmem:[#allocation13_spill] sm:$0xff] }
 0x125   :  { %1290 = vmatpush.bf16.msrb.mxu0 %v2345_v39  ;;  %1303 = vmatpush.bf16.msrb.mxu1 %v2351_v43  ;;  %v3881_v39 = vld [vmem:[#allocation7_spill] sm:$0xff] }
 0x126   :  { %v3882_v43 = vld [vmem:[#allocation23_spill] sm:$0xff] }
 0x127   :  { %1316 = vmatpush.bf16.msrb.mxu2 %v2587_v56  ;;  %1329 = vmatpush.bf16.msrb.mxu3 %v2589_v57  ;;  %v3894_v56 = vld [vmem:[#allocation30_spill] sm:$0xff]  ;;  %v3895_v57 = vld [vmem:[#allocation31_spill] sm:$0xff] }
 0x129   :  { %1291 = vmatpush.bf16.msrb.mxu0 %v3872_v29  ;;  %1304 = vmatpush.bf16.msrb.mxu1 %v3873_v37  ;;  %v3910_v29 = vld [vmem:[#allocation40_spill] sm:$0xff]  ;;  %v3911_v37 = vld [vmem:[#allocation41_spill] sm:$0xff] }
 0x12b   :  { %1317 = vmatpush.bf16.msrb.mxu2 %v3874_v38  ;;  %1330 = vmatpush.bf16.msrb.mxu3 %v3875_v49 }
 0x12d   :  { %1292 = vmatpush.bf16.msrb.mxu0 %v3876_v53  ;;  %1305 = vmatpush.bf16.msrb.mxu1 %v3877_v5 }
 0x12f   :  { %1318 = vmatpush.bf16.msrb.mxu2 %v3878_v9  ;;  %1331 = vmatpush.bf16.msrb.mxu3 %v3879_v23 }
 0x131   :  { %1337 = vmatpush.bf16.msra.mxu0 %v3880_v27  ;;  %1350 = vmatpush.bf16.msra.mxu1 %v3881_v39 }
 0x133   :  { %1363 = vmatpush.bf16.msra.mxu2 %v3882_v43  ;;  %1376 = vmatpush.bf16.msra.mxu3 %v3883_v12 }
 0x135   :  { %1338 = vmatpush.bf16.msra.mxu0 %v3884_v14  ;;  %1351 = vmatpush.bf16.msra.mxu1 %v3885_v34 }
 0x137   :  { %1364 = vmatpush.bf16.msra.mxu2 %v3886_v35  ;;  %1377 = vmatpush.bf16.msra.mxu3 %v3887_v51 }
 0x139   :  { %1339 = vmatpush.bf16.msra.mxu0 %v3888_v54  ;;  %1352 = vmatpush.bf16.msra.mxu1 %v3889_v6 }
 0x13b   :  { %1365 = vmatpush.bf16.msra.mxu2 %v3890_v8  ;;  %1378 = vmatpush.bf16.msra.mxu3 %v3891_v28 }
 0x13d   :  { %1340 = vmatpush.bf16.msra.mxu0 %v3892_v30  ;;  %1353 = vmatpush.bf16.msra.mxu1 %v3893_v31 }
 0x13f   :  { %1366 = vmatpush.bf16.msra.mxu2 %v3894_v56  ;;  %1379 = vmatpush.bf16.msra.mxu3 %v3895_v57 }
 0x141   :  { %1341 = vmatpush.bf16.msra.mxu0 %v3896_v15  ;;  %1354 = vmatpush.bf16.msra.mxu1 %v3897_v40 }
 0x143   :  { %1367 = vmatpush.bf16.msra.mxu2 %v3898_v59  ;;  %1380 = vmatpush.bf16.msra.mxu3 %v3899_v0 }
 0x145   :  { %1342 = vmatpush.bf16.msra.mxu0 %v3900_v22  ;;  %1355 = vmatpush.bf16.msra.mxu1 %v3901_v44 }
 0x147   :  { %1368 = vmatpush.bf16.msra.mxu2 %v3902_v10  ;;  %1381 = vmatpush.bf16.msra.mxu3 %v3903_v52 }
 0x149   :  { %1343 = vmatpush.bf16.msra.mxu0 %v3904_v4  ;;  %1356 = vmatpush.bf16.msra.mxu1 %v3905_v18 }
 0x14b   :  { %1369 = vmatpush.bf16.msra.mxu2 %v3906_v26  ;;  %1382 = vmatpush.bf16.msra.mxu3 %v3907_v19  ;;  %v976_v38 = vpop.f32.mrf.mxu0  ;;  %v989_v49 = vpop.f32.mrf.mxu1 }
 0x14c   :  { %v977_v53 = vadd.f32 %v976_v38, %v3557_v25 }
 0x14d   :  { %1344 = vmatpush.bf16.msra.mxu0 %v3908_v17  ;;  %1357 = vmatpush.bf16.msra.mxu1 %v3909_v63 }
 0x14e   :  { %v990_v5 = vadd.f32 %v989_v49, %v977_v53 }
 0x14f   :  { %1370 = vmatpush.bf16.msra.mxu2 %v3910_v29  ;;  %1383 = vmatpush.bf16.msra.mxu3 %v3911_v37 }
 0x150   :  { %v1150_v9 = vmax.f32 %v990_v5, 0.0  ;;  %v950_v23 = vpop.f32.mrf.mxu2  ;;  %v963_v27 = vpop.f32.mrf.mxu3 }
 0x151   :  { %v951_v39 = vadd.f32 %v950_v23, %v3557_v25 }
 0x152   :  { %1158 = vst [vmem:[%s3713_s4 + $0x8] sm:$0xff] %v1150_v9 }
 0x153   :  { %v964_v43 = vadd.f32 %v963_v27, %v951_v39  ;;  %v978_v12 = vpop.f32.mrf.mxu0  ;;  %v991_v14 = vpop.f32.mrf.mxu1 }
 0x155   :  { %v1149_v34 = vmax.f32 %v964_v43, 0.0 }
 0x157   :  { %1157 = vst [vmem:[%s3713_s4] sm:$0xff] %v1149_v34 }
 0x158   :  { %v952_v35 = vpop.f32.mrf.mxu2  ;;  %v965_v51 = vpop.f32.mrf.mxu3 }
 0x15b   :  { %v1028_v54 = vpop.f32.mrf.mxu0  ;;  %v1041_v6 = vpop.f32.mrf.mxu1 }
 0x15c   :  { %v1029_v8 = vadd.f32 %v1028_v54, %v3557_v25 }
 0x15e   :  { %v1042_v28 = vadd.f32 %v1041_v6, %v1029_v8 }
 0x160   :  { %v1152_v30 = vmax.f32 %v1042_v28, 0.0  ;;  %v1002_v31 = vpop.f32.mrf.mxu2  ;;  %v1015_v56 = vpop.f32.mrf.mxu3 }
 0x161   :  { %v1003_v57 = vadd.f32 %v1002_v31, %v3557_v25 }
 0x162   :  { %1160 = vst [vmem:[%s3713_s4 + $0x18] sm:$0xff] %v1152_v30 }
 0x163   :  { %v1016_v15 = vadd.f32 %v1015_v56, %v1003_v57  ;;  %v1030_v40 = vpop.f32.mrf.mxu0  ;;  %v1043_v59 = vpop.f32.mrf.mxu1 }
 0x164   :  { %v3913_v40 = vld [vmem:[#allocation43_spill] sm:$0xff]  ;;  %v3914_v59 = vld [vmem:[#allocation44_spill] sm:$0xff] }
 0x165   :  { %v1151_v0 = vmax.f32 %v1016_v15, 0.0  ;;  %v3912_v15 = vld [vmem:[#allocation42_spill] sm:$0xff] }
 0x167   :  { %1159 = vst [vmem:[%s3713_s4 + $0x10] sm:$0xff] %v1151_v0  ;;  %v3915_v0 = vld [vmem:[#allocation45_spill] sm:$0xff] }
 0x168   :  { %v1004_v22 = vpop.f32.mrf.mxu2  ;;  %v1017_v44 = vpop.f32.mrf.mxu3 }
 0x16e   :  { %v1080_v10 = vpop.f32.mrf.mxu0  ;;  %v1093_v52 = vpop.f32.mrf.mxu1 }
 0x16f   :  { %v1081_v4 = vadd.f32 %v1080_v10, %v3557_v25  ;;  %v3916_v10 = vld [vmem:[#allocation46_spill] sm:$0xff] }
 0x171   :  { %v1094_v18 = vadd.f32 %v1093_v52, %v1081_v4  ;;  %v1054_v19 = vpop.f32.mrf.mxu2  ;;  %v1067_v17 = vpop.f32.mrf.mxu3  ;;  %v3917_v52 = vld [vmem:[#allocation47_spill] sm:$0xff]  ;;  %v3918_v4 = vld [vmem:[#allocation48_spill] sm:$0xff] }
 0x172   :  { %v1055_v63 = vadd.f32 %v1054_v19, %v3557_v25  ;;  %v3921_v19 = vld [vmem:[#allocation51_spill] sm:$0xff] }
 0x173   :  { %v1154_v26 = vmax.f32 %v1094_v18, 0.0  ;;  %v3919_v18 = vld [vmem:[#allocation49_spill] sm:$0xff] }
 0x174   :  { %v1068_v29 = vadd.f32 %v1067_v17, %v1055_v63  ;;  %v3922_v17 = vld [vmem:[#allocation52_spill] sm:$0xff]  ;;  %v3923_v63 = vld [vmem:[#allocation53_spill] sm:$0xff] }
 0x175   :  { %1162 = vst [vmem:[%s3713_s4 + $0x28] sm:$0xff] %v1154_v26  ;;  %v3920_v26 = vld [vmem:[#allocation50_spill] sm:$0xff] }
 0x176   :  { %v1082_v37 = vpop.f32.mrf.mxu0  ;;  %v1095_v38 = vpop.f32.mrf.mxu1  ;;  %v1153_v49 = vmax.f32 %v1068_v29, 0.0  ;;  %v3924_v29 = vld [vmem:[#allocation54_spill] sm:$0xff] }
 0x177   :  { %v3925_v37 = vld [vmem:[#allocation55_spill] sm:$0xff]  ;;  %v3926_v38 = vld [vmem:[#allocation56_spill] sm:$0xff] }
 0x178   :  { %1161 = vst [vmem:[%s3713_s4 + $0x20] sm:$0xff] %v1153_v49  ;;  %v3927_v49 = vld [vmem:[#allocation57_spill] sm:$0xff] }
 0x179   :  { %v1056_v53 = vpop.f32.mrf.mxu2  ;;  %v1069_v5 = vpop.f32.mrf.mxu3 }
 0x17a   :  { %v3928_v53 = vld [vmem:[#allocation58_spill] sm:$0xff]  ;;  %v3929_v5 = vld [vmem:[#allocation59_spill] sm:$0xff] }
 0x18d   :  { %v1132_v9 = vpop.f32.mrf.mxu0  ;;  %v1145_v23 = vpop.f32.mrf.mxu1 }
 0x18e   :  { %v1133_v27 = vadd.f32 %v1132_v9, %v3557_v25  ;;  %v3930_v9 = vld [vmem:[#allocation60_spill] sm:$0xff] }
 0x190   :  { %v1146_v39 = vadd.f32 %v1145_v23, %v1133_v27  ;;  %v3931_v23 = vld [vmem:[#allocation61_spill] sm:$0xff]  ;;  %v3932_v27 = vld [vmem:[#allocation62_spill] sm:$0xff] }
 0x191   :  { %v1106_v12 = vpop.f32.mrf.mxu2  ;;  %v1119_v14 = vpop.f32.mrf.mxu3 }
 0x192   :  { %v1156_v43 = vmax.f32 %v1146_v39, 0.0  ;;  %v1107_v34 = vadd.f32 %v1106_v12, %v3557_v25  ;;  %v3933_v39 = vld [vmem:[#allocation63_spill] sm:$0xff]  ;;  %v3935_v12 = vld [vmem:[#allocation65_spill] sm:$0xff] }
 0x194   :  { %1164 = vst [vmem:[%s3713_s4 + $0x38] sm:$0xff] %v1156_v43  ;;  %v1120_v35 = vadd.f32 %v1119_v14, %v1107_v34  ;;  %v3934_v43 = vld [vmem:[#allocation64_spill] sm:$0xff]  ;;  %v3936_v14 = vld [vmem:[#allocation66_spill] sm:$0xff]  ;;  %v3937_v34 = vld [vmem:[#allocation67_spill] sm:$0xff] }
 0x195   :  { %v1134_v51 = vpop.f32.mrf.mxu0  ;;  %v1147_v54 = vpop.f32.mrf.mxu1 }
 0x196   :  { %v1155_v6 = vmax.f32 %v1120_v35, 0.0  ;;  %v3938_v35 = vld [vmem:[#allocation68_spill] sm:$0xff]  ;;  %v3939_v51 = vld [vmem:[#allocation69_spill] sm:$0xff]  ;;  %v3940_v54 = vld [vmem:[#allocation70_spill] sm:$0xff] }
 0x198   :  { %1163 = vst [vmem:[%s3713_s4 + $0x30] sm:$0xff] %v1155_v6  ;;  %v3941_v6 = vld [vmem:[#allocation71_spill] sm:$0xff] }
 0x199   :  { %v1108_v8 = vpop.f32.mrf.mxu2  ;;  %v1121_v28 = vpop.f32.mrf.mxu3 }
 0x19a   :  { %v3942_v8 = vld [vmem:[#allocation72_spill] sm:$0xff]  ;;  %v3943_v28 = vld [vmem:[#allocation73_spill] sm:$0xff] }
 0x1a1   :  { %v1266_v30 = vpop.f32.mrf.mxu2  ;;  %v1279_v31 = vpop.f32.mrf.mxu3 }
 0x1a2   :  { %v3593_v56 = vpack.c.bf16 %v1266_v30, %v1266_v30  ;;  %v3595_v57 = vpack.c.bf16 %v1279_v31, %v1279_v31  ;;  %v3944_v30 = vld [vmem:[#allocation74_spill] sm:$0xff]  ;;  %v3945_v31 = vld [vmem:[#allocation75_spill] sm:$0xff] }
 0x1a4   :  { %1293 = vmatmul.bf16.vlgmr.msrb.gmra.mxu0 %v3593_v56  ;;  %1306 = vmatmul.bf16.vlgmr.msrb.gmra.mxu1 %v3595_v57 }
 0x1a5   :  { %1319 = vmatmul.bf16.vlgmr.msrb.gmra.mxu2 %v3593_v56  ;;  %1332 = vmatmul.bf16.vlgmr.msrb.gmra.mxu3 %v3595_v57 }
 0x1a6   :  { %1389 = vmatpush.bf16.msrb.mxu0 %v3912_v15  ;;  %1402 = vmatpush.bf16.msrb.mxu1 %v3913_v40  ;;  %v3946_v15 = vld [vmem:[#allocation76_spill] sm:$0xff]  ;;  %v3947_v40 = vld [vmem:[#allocation77_spill] sm:$0xff] }
 0x1a7   :  { %1415 = vmatpush.bf16.msrb.mxu2 %v3914_v59  ;;  %1428 = vmatpush.bf16.msrb.mxu3 %v3915_v0 }
 0x1a9   :  { %v1268_v22 = vpop.f32.mrf.mxu2  ;;  %v1281_v44 = vpop.f32.mrf.mxu3 }
 0x1aa   :  { %1390 = vmatpush.bf16.msrb.mxu0 %v3916_v10  ;;  %1403 = vmatpush.bf16.msrb.mxu1 %v3917_v52 }
 0x1ab   :  { %1416 = vmatpush.bf16.msrb.mxu2 %v3918_v4  ;;  %1429 = vmatpush.bf16.msrb.mxu3 %v3919_v18 }
 0x1ae   :  { %1391 = vmatpush.bf16.msrb.mxu0 %v3920_v26  ;;  %1404 = vmatpush.bf16.msrb.mxu1 %v3921_v19 }
 0x1af   :  { %1417 = vmatpush.bf16.msrb.mxu2 %v3922_v17  ;;  %1430 = vmatpush.bf16.msrb.mxu3 %v3923_v63 }
 0x1b2   :  { %1392 = vmatpush.bf16.msrb.mxu0 %v3924_v29  ;;  %1405 = vmatpush.bf16.msrb.mxu1 %v3925_v37 }
 0x1b3   :  { %1418 = vmatpush.bf16.msrb.mxu2 %v3926_v38  ;;  %1431 = vmatpush.bf16.msrb.mxu3 %v3927_v49 }
 0x1b4   :  { %1345 = vmatmul.bf16.vlgmr.msra.gmra.mxu0 %v3593_v56  ;;  %1358 = vmatmul.bf16.vlgmr.msra.gmra.mxu1 %v3595_v57 }
 0x1b5   :  { %1371 = vmatmul.bf16.vlgmr.msra.gmra.mxu2 %v3593_v56  ;;  %1384 = vmatmul.bf16.vlgmr.msra.gmra.mxu3 %v3595_v57 }
 0x1b6   :  { %1393 = vmatpush.bf16.msrb.mxu0 %v3928_v53  ;;  %1406 = vmatpush.bf16.msrb.mxu1 %v3929_v5 }
 0x1b7   :  { %1419 = vmatpush.bf16.msrb.mxu2 %v3930_v9  ;;  %1432 = vmatpush.bf16.msrb.mxu3 %v3931_v23 }
 0x1ba   :  { %1394 = vmatpush.bf16.msrb.mxu0 %v3932_v27  ;;  %1407 = vmatpush.bf16.msrb.mxu1 %v3933_v39 }
 0x1bb   :  { %1420 = vmatpush.bf16.msrb.mxu2 %v3934_v43  ;;  %1433 = vmatpush.bf16.msrb.mxu3 %v3935_v12 }
 0x1be   :  { %1395 = vmatpush.bf16.msrb.mxu0 %v3936_v14  ;;  %1408 = vmatpush.bf16.msrb.mxu1 %v3937_v34 }
 0x1bf   :  { %1421 = vmatpush.bf16.msrb.mxu2 %v3938_v35  ;;  %1434 = vmatpush.bf16.msrb.mxu3 %v3939_v51 }
 0x1c2   :  { %1396 = vmatpush.bf16.msrb.mxu0 %v3940_v54  ;;  %1409 = vmatpush.bf16.msrb.mxu1 %v3941_v6 }
 0x1c3   :  { %1422 = vmatpush.bf16.msrb.mxu2 %v3942_v8  ;;  %1435 = vmatpush.bf16.msrb.mxu3 %v3943_v28 }
 0x1c5   :  { %1397 = vmatmul.bf16.vlgmr.msrb.gmra.mxu0 %v3593_v56  ;;  %1410 = vmatmul.bf16.vlgmr.msrb.gmra.mxu1 %v3595_v57 }
 0x1c6   :  { %1441 = vmatpush.bf16.msra.mxu0 %v3944_v30  ;;  %1454 = vmatpush.bf16.msra.mxu1 %v3945_v31 }
 0x1c7   :  { %1467 = vmatpush.bf16.msra.mxu2 %v3946_v15  ;;  %1480 = vmatpush.bf16.msra.mxu3 %v3947_v40 }
 0x1c8   :  { %1423 = vmatmul.bf16.vlgmr.msrb.gmra.mxu2 %v3593_v56  ;;  %1436 = vmatmul.bf16.vlgmr.msrb.gmra.mxu3 %v3595_v57 }
 0x1ca   :  { %1442 = vmatpush.bf16.msra.mxu0 %v3221_v21  ;;  %1455 = vmatpush.bf16.msra.mxu1 %v3223_v32  ;;  %v3948_v21 = vld [vmem:[#allocation78_spill] sm:$0xff] }
 0x1cb   :  { %1468 = vmatpush.bf16.msra.mxu2 %v3252_v33  ;;  %1481 = vmatpush.bf16.msra.mxu3 %v3254_v62  ;;  %v3949_v62 = vld [vmem:[#allocation79_spill] sm:$0xff]  ;;  %v3950_v33 = vld [vmem:[#allocation80_spill] sm:$0xff] }
 0x1ce   :  { %1443 = vmatpush.bf16.msra.mxu0 %v3265_v11  ;;  %1456 = vmatpush.bf16.msra.mxu1 %v3288_v47 }
 0x1cf   :  { %1469 = vmatpush.bf16.msra.mxu2 %v3290_v50  ;;  %1482 = vmatpush.bf16.msra.mxu3 %v3294_v48 }
 0x1d2   :  { %1444 = vmatpush.bf16.msra.mxu0 %v3313_v24  ;;  %1457 = vmatpush.bf16.msra.mxu1 %v3324_v7 }
 0x1d3   :  { %1470 = vmatpush.bf16.msra.mxu2 %v3339_v20  ;;  %1483 = vmatpush.bf16.msra.mxu3 %v3948_v21 }
 0x1d6   :  { %1445 = vmatpush.bf16.msra.mxu0 %v3352_v45  ;;  %1458 = vmatpush.bf16.msra.mxu1 %v3367_v16 }
 0x1d7   :  { %1471 = vmatpush.bf16.msra.mxu2 %v3369_v55  ;;  %1484 = vmatpush.bf16.msra.mxu3 %v3371_v13 }
 0x1da   :  { %1446 = vmatpush.bf16.msra.mxu0 %v3392_v58  ;;  %1459 = vmatpush.bf16.msra.mxu1 %v3396_v42 }
 0x1db   :  { %1472 = vmatpush.bf16.msra.mxu2 %v3949_v62  ;;  %1485 = vmatpush.bf16.msra.mxu3 %v3950_v33 }
 0x1de   :  { %1447 = vmatpush.bf16.msra.mxu0 %v3430_v36  ;;  %1460 = vmatpush.bf16.msra.mxu1 %v3434_v61 }
 0x1df   :  { %1473 = vmatpush.bf16.msra.mxu2 %v3446_v1  ;;  %1486 = vmatpush.bf16.msra.mxu3 %v3448_v2 }
 0x1e2   :  { %1448 = vmatpush.bf16.msra.mxu0 %v3470_v41  ;;  %1461 = vmatpush.bf16.msra.mxu1 %v3472_v3 }
 0x1e3   :  { %1474 = vmatpush.bf16.msra.mxu2 %v3476_v60  ;;  %1487 = vmatpush.bf16.msra.mxu3 %v3478_v46 }
 0x1e5   :  { %1449 = vmatmul.bf16.vlgmr.msra.gmra.mxu0 %v3593_v56  ;;  %1462 = vmatmul.bf16.vlgmr.msra.gmra.mxu1 %v3595_v57 }
 0x1e6   :  { %1475 = vmatmul.bf16.vlgmr.msra.gmra.mxu2 %v3593_v56  ;;  %1488 = vmatmul.bf16.vlgmr.msra.gmra.mxu3 %v3595_v57 }
 0x221   :  { %v1294_v50 = vpop.f32.mrf.mxu0  ;;  %v1307_v32 = vpop.f32.mrf.mxu1 }
 0x222   :  { %v1295_v11 = vadd.f32 %v1294_v50, %v3557_v25 }
 0x224   :  { %v1308_v47 = vadd.f32 %v1307_v32, %v1295_v11 }
 0x226   :  { %v1493_v48 = vmax.f32 %v1308_v47, 0.0 }
 0x228   :  { %1501 = vst [vmem:[%s3713_s4 + $0x40] sm:$0xff] %v1493_v48  ;;  %v1320_v24 = vpop.f32.mrf.mxu2  ;;  %v1333_v7 = vpop.f32.mrf.mxu3 }
 0x229   :  { %v1321_v20 = vadd.f32 %v1320_v24, %v3557_v25  ;;  %v1296_v58 = vpop.f32.mrf.mxu0  ;;  %v1309_v45 = vpop.f32.mrf.mxu1 }
 0x22b   :  { %v1334_v16 = vadd.f32 %v1333_v7, %v1321_v20 }
 0x22d   :  { %v1494_v55 = vmax.f32 %v1334_v16, 0.0 }
 0x22f   :  { %1502 = vst [vmem:[%s3713_s4 + $0x48] sm:$0xff] %v1494_v55 }
 0x230   :  { %v1322_v13 = vpop.f32.mrf.mxu2  ;;  %v1335_v42 = vpop.f32.mrf.mxu3 }
 0x231   :  { %v1346_v46 = vpop.f32.mrf.mxu0  ;;  %v1359_v36 = vpop.f32.mrf.mxu1 }
 0x232   :  { %v1347_v61 = vadd.f32 %v1346_v46, %v3557_v25 }
 0x234   :  { %v1360_v1 = vadd.f32 %v1359_v36, %v1347_v61 }
 0x236   :  { %v1495_v2 = vmax.f32 %v1360_v1, 0.0 }
 0x238   :  { %1503 = vst [vmem:[%s3713_s4 + $0x50] sm:$0xff] %v1495_v2  ;;  %v1372_v41 = vpop.f32.mrf.mxu2  ;;  %v1385_v3 = vpop.f32.mrf.mxu3 }
 0x239   :  { %v1373_v60 = vadd.f32 %v1372_v41, %v3557_v25  ;;  %v1348_v56 = vpop.f32.mrf.mxu0  ;;  %v1361_v57 = vpop.f32.mrf.mxu1 }
 0x23b   :  { %v1386_v59 = vadd.f32 %v1385_v3, %v1373_v60 }
 0x23d   :  { %v1496_v0 = vmax.f32 %v1386_v59, 0.0 }
 0x23f   :  { %1504 = vst [vmem:[%s3713_s4 + $0x58] sm:$0xff] %v1496_v0 }
 0x240   :  { %v1374_v22 = vpop.f32.mrf.mxu2  ;;  %v1387_v44 = vpop.f32.mrf.mxu3 }
 0x242   :  { %v1398_v10 = vpop.f32.mrf.mxu0  ;;  %v1411_v52 = vpop.f32.mrf.mxu1 }
 0x243   :  { %v1399_v4 = vadd.f32 %v1398_v10, %v3557_v25 }
 0x245   :  { %v1412_v18 = vadd.f32 %v1411_v52, %v1399_v4 }
 0x247   :  { %v1497_v26 = vmax.f32 %v1412_v18, 0.0 }
 0x249   :  { %1505 = vst [vmem:[%s3713_s4 + $0x60] sm:$0xff] %v1497_v26 }
 0x24a   :  { %v1400_v29 = vpop.f32.mrf.mxu0  ;;  %v1413_v37 = vpop.f32.mrf.mxu1 }
 0x24b   :  { %v1424_v19 = vpop.f32.mrf.mxu2  ;;  %v1437_v17 = vpop.f32.mrf.mxu3 }
 0x24c   :  { %v1425_v63 = vadd.f32 %v1424_v19, %v3557_v25 }
 0x24e   :  { %v1438_v38 = vadd.f32 %v1437_v17, %v1425_v63 }
 0x250   :  { %v1498_v49 = vmax.f32 %v1438_v38, 0.0 }
 0x252   :  { %1506 = vst [vmem:[%s3713_s4 + $0x68] sm:$0xff] %v1498_v49 }
 0x253   :  { %v1426_v53 = vpop.f32.mrf.mxu2  ;;  %v1439_v5 = vpop.f32.mrf.mxu3 }
 0x262   :  { %v1450_v9 = vpop.f32.mrf.mxu0  ;;  %v1463_v23 = vpop.f32.mrf.mxu1 }
 0x263   :  { %v1451_v27 = vadd.f32 %v1450_v9, %v3557_v25 }
 0x265   :  { %v1464_v39 = vadd.f32 %v1463_v23, %v1451_v27 }
 0x267   :  { %v1499_v43 = vmax.f32 %v1464_v39, 0.0 }
 0x269   :  { %1507 = vst [vmem:[%s3713_s4 + $0x70] sm:$0xff] %v1499_v43  ;;  %v1476_v12 = vpop.f32.mrf.mxu2  ;;  %v1489_v14 = vpop.f32.mrf.mxu3 }
 0x26a   :  { %v1477_v34 = vadd.f32 %v1476_v12, %v3557_v25  ;;  %v1452_v35 = vpop.f32.mrf.mxu0  ;;  %v1465_v51 = vpop.f32.mrf.mxu1 }
 0x26c   :  { %v1490_v54 = vadd.f32 %v1489_v14, %v1477_v34 }
 0x26e   :  { %v1500_v6 = vmax.f32 %v1490_v54, 0.0 }
 0x270   :  { %1508 = vst [vmem:[%s3713_s4 + $0x78] sm:$0xff] %v1500_v6 }
 0x271   :  { %v1478_v8 = vpop.f32.mrf.mxu2  ;;  %v1491_v28 = vpop.f32.mrf.mxu3 }

// kernel: csfi3_forward.10
= control target key start
LH: loop header
LB: loop body
LE: loop exit
PB: predicated region body
PF: predicated region fallthrough
CT: control target
= control target key end

     0   :  { %v108_v1 = vmov 0   ;;  %vm62_vm0 = vcmask 1043456   ;;  %vm58_vm1 = vcmask 588800   ;;  %s153_s0 = inlined_call_operand.vmem [shape: bf16[72,128], index: 0, kind: input, shape index: {}]   ;;  %s154_s2 = inlined_call_operand.vmem [shape: f32[8,1], index: 2, kind: input, shape index: {}]   ;;  %s155_s1 = inlined_call_operand.vmem [shape: bf16[8,72], index: 1, kind: input, shape index: {}]   ;;  %s156_s3 = inlined_call_operand.vmem [shape: f32[8,128], index: 3, kind: output, shape index: {}]  }
   0x1   :  { %v24_v0 = vld [vmem:[%s153_s0 + $0x20] sm:$0xf]  ;;  %107 = vset.pattern.permute.xlu0 %v108_v1  ;;  %v105_v6 = vld [vmem:[%s153_s0 + $0x18] sm:$0xff]  ;;  %v104_v7 = vld [vmem:[%s153_s0 + $0x10] sm:$0xff] }
   0x2   :  { %v48_v2 = vunpack.c.l.b16 %v24_v0  ;;  %v25_v3 = vld [vmem:[%s154_s2] sm:$0xff]  ;;  %v103_v8 = vld [vmem:[%s153_s0 + $0x8] sm:$0xff] }
   0x3   :  { %28 = vperm.xlu0 %107, %v25_v3   ;;  %v102_v9 = vld [vmem:[%s153_s0] sm:$0xff] }
   0x4   :  { %v53_v4 = vpack.c.b16 %v48_v2, %v48_v2  ;;  %v15_v10 = vld [vmem:[%s155_s1] sm:$0xf] }
   0x6   :  { %v64_v5 = vsel %vm62_vm0, %v53_v4, 0 }
   0x7   :  { %69 = vmatpush.bf16.msra.mxu0 %v64_v5 }
   0xb   :  { %70 = vmatpush.bf16.msra.mxu0 %v105_v6 }
   0xf   :  { %71 = vmatpush.bf16.msra.mxu0 %v104_v7 }
  0x13   :  { %72 = vmatpush.bf16.msra.mxu0 %v103_v8 }
  0x17   :  { %73 = vmatpush.bf16.msra.mxu0 %v102_v9 }
  0x1a   :  { %101 = vmatmul.msk.bf16.vlgmr.msra.gmra.mxu0 %vm58_vm1, %v15_v10 }
  0x75   :  { %v29_v11 = vpop.permute.xlu0 %28 }
  0x97   :  { %v75_v12 = vpop.f32.mrf.mxu0 }
  0x98   :  { %v76_v13 = vadd.f32 %v75_v12, %v29_v11 }
  0x9a   :  { %v79_v14 = vmax.f32 %v76_v13, 0.0 }
  0x9c   :  { %80 = vst [vmem:[%s156_s3] sm:$0xff] %v79_v14 }
  0x9f   :  { %v77_v15 = vpop.f32.mrf.mxu0 }

// kernel: csfi3_forward.11
= control target key start
LH: loop header
LB: loop body
LE: loop exit
PB: predicated region body
PF: predicated region fallthrough
CT: control target
= control target key end

     0   :  { %s580_s12 = smov 0   ;;  %s582_s13 = smov 0   ;;  %s672_s0 = inlined_call_operand.vmem [shape: bf16[72,512], index: 0, kind: input, shape index: {}]   ;;  %s673_s1 = inlined_call_operand.vmem [shape: bf16[16,72], index: 1, kind: input, shape index: {}]   ;;  %s674_s2 = inlined_call_operand.vmem [shape: f32[16,1], index: 2, kind: input, shape index: {}]   ;;  %s675_s3 = inlined_call_operand.vmem [shape: f32[16,512], index: 3, kind: output, shape index: {}]  }
   0x1   :  { %s584_s14 = smov 0  }
   0x2 LB: > { %s445_s15 = sadd.s32 4294967295, %s557_s14   ;;  %s597_s16 = sadd.s32 1, %s557_s14   ;;  %s557_s14 = sphi %s584_s14, %s679_s14   ;;  %s553_s13 = sphi %s582_s13, %s678_s13   ;;  %s549_s12 = sphi %s580_s12, %s677_s12  }
   0x3   : > { %s17_s17 = ssub.s32 %s557_s14, %s597_s16  ;;  %s20_s18 = sadd.s32 1, %s553_s13 }
   0x4   : > { %p18_p0 = scmp.eq.s32.totalorder %s17_s17, 0  ;;  %p27_p1 = scmp.ne.s32.totalorder %s553_s13, %s549_s12 }
   0x5   : > { %p28_p2 = scmp.eq.s32.totalorder %s557_s14, 0  ;;  %p99_p3 = scmp.eq.s32.totalorder %s445_s15, 1 }
   0x6   : > { %s608_s19 = scalar_select %p18_p0, %s553_s13, %s20_s18  }
   0x7   : > { %p29_p4 = por %p28_p2, %p27_p1  ;;  %p610_p5 = por %p99_p3, %p27_p1 }
   0x8   : > { %p448_p6 = scmp.ge.s32.totalorder %s557_s14, 2 }
   0xa   : > { %127 = sbr.rel (%p448_p6) target bundleno = 28 (0x1c), region = 24 }
   0xf   : > { %130 = sbr.rel (!%p29_p4) target bundleno = 28 (0x1c), region = 28  ;;  %s132_s21 = sand.u32 (%p29_p4), 1, %s553_s13  }
  0x10   : > { %s496_s22 = sshll.u32 (%p29_p4), %s557_s14, 3  ;;  %s507_s23 = smul.u32 (%p29_p4), 72, %s132_s21 }
  0x11   : > { %s137_s26 = scalar_lea.vmem (%p29_p4), %s672_s0, %s496_s22 }
  0x12   : > { %v182_v0 = vld [vmem:[%s137_s26] sm:$0xff] (%p29_p4)  ;;  %v184_v1 = vld [vmem:[%s137_s26 + $0x10] sm:$0xff] (%p29_p4)  ;;  %s134_s27 = scalar_lea.vmem (%p29_p4), [#allocation2], %s507_s23 }
  0x13   : > { %v186_v2 = vld [vmem:[%s137_s26 + $0x20] sm:$0xff] (%p29_p4)  ;;  %183 = vst [vmem:[%s134_s27] sm:$0xff] (%p29_p4), %v182_v0  ;;  %v188_v3 = vld [vmem:[%s137_s26 + $0x30] sm:$0xff] (%p29_p4) }
  0x14   : > { %185 = vst [vmem:[%s134_s27 + $0x8] sm:$0xff] %v184_v1  ;;  %v190_v4 = vld [vmem:[%s137_s26 + $0x40] sm:$0xff]  ;;  %v192_v5 = vld [vmem:[%s137_s26 + $0x50] sm:$0xff] }
  0x15   : > { %187 = vst [vmem:[%s134_s27 + $0x10] sm:$0xff] %v186_v2  ;;  %v194_v6 = vld [vmem:[%s137_s26 + $0x60] sm:$0xff]  ;;  %v196_v7 = vld [vmem:[%s137_s26 + $0x70] sm:$0xff] }
  0x16   : > { %189 = vst [vmem:[%s134_s27 + $0x18] sm:$0xff] %v188_v3  ;;  %v198_v8 = vld [vmem:[%s137_s26 + $0x80] sm:$0xff] }
  0x17   : > { %191 = vst [vmem:[%s134_s27 + $0x20] sm:$0xff] %v190_v4 }
  0x18   : > { %193 = vst [vmem:[%s134_s27 + $0x28] sm:$0xff] %v192_v5 }
  0x19   : > { %195 = vst [vmem:[%s134_s27 + $0x30] sm:$0xff] %v194_v6 }
  0x1a   : > { %197 = vst [vmem:[%s134_s27 + $0x38] sm:$0xff] %v196_v7 }
  0x1b   : > { %199 = vst [vmem:[%s134_s27 + $0x40] sm:$0xff] %v198_v8 }
  0x1c PF: > { %p451_p7 = scmp.ge.s32.totalorder %s557_s14, 1  ;;  %p204_p8 = scmp.lt.s32.totalorder %s557_s14, 3 }
  0x1e   : > { %p205_p9 = pnand %p451_p7, %p204_p8 }
  0x1f   : > { %s211_s28 = sand.u32 (!%p205_p9), 1, %s549_s12  }
  0x20   : > { %208 = sbr.rel (%p205_p9) target bundleno = 211 (0xd3), region = 66  ;;  %s452_s10 = sshll.u32 (!%p205_p9), %s211_s28, 5 }
  0x21   : > { %s508_s4 = smul.u32 (!%p205_p9), 72, %s211_s28  ;;  %s232_s11 = scalar_lea.vmem (!%p205_p9), [#allocation3], %s452_s10 }
  0x23   : > { %s628_s5 = scalar_lea.vmem (!%p205_p9), [#allocation2], %s508_s4 }
  0x25   : > { %v247_v9 = vld [vmem:[%s674_s2] sm:$0xff]  ;;  %v559_v10 = vmov 0   ;;  %vm313_vm0 = vcmask 1043456   ;;  %v483_v14 = vld [vmem:[%s628_s5 + $0x30] sm:$0xf]  ;;  %v248_v20 = vld [vmem:[%s674_s2 + $0x8] sm:$0xff] }
  0x26   : > { %534 = vset.pattern.permute.xlu0 %v559_v10  ;;  %v246_v11 = vld [vmem:[%s628_s5 + $0x40] sm:$0xff]  ;;  %v505_v17 = vld [vmem:[%s628_s5 + $0x34] sm:$0xf0]  ;;  %v504_v18 = vld [vmem:[%s628_s5 + $0x34] sm:$0xf]  ;;  %vm309_vm1 = vcmask 588800  }
  0x27   : > { %251 = vperm.xlu0 %534, %v247_v9   ;;  %v289_v12 = vunpack.c.l.b16 %v246_v11  ;;  %v290_v13 = vunpack.c.h.b16 %v246_v11  ;;  %v485_v19 = vld [vmem:[%s628_s5 + $0x38] sm:$0xf0]  ;;  %v484_v23 = vor.u32 %v505_v17, %v483_v14  ;;  %v475_v25 = vld [vmem:[%s628_s5 + $0x20] sm:$0xf]  ;;  %v503_v26 = vld [vmem:[%s628_s5 + $0x24] sm:$0xf0] }
  0x28   : > { %v488_v24 = vor.u32 %v504_v18, %v485_v19  ;;  %v502_v27 = vld [vmem:[%s628_s5 + $0x24] sm:$0xf]  ;;  %v477_v28 = vld [vmem:[%s628_s5 + $0x28] sm:$0xf0]  ;;  %v476_v29 = vor.u32 %v503_v26, %v475_v25  ;;  %v467_v31 = vld [vmem:[%s628_s5 + $0x10] sm:$0xf] }
  0x29   : > { %v299_v15 = vpack.c.b16 %v289_v12, %v289_v12  ;;  %v300_v16 = vpack.c.b16 %v290_v13, %v290_v13  ;;  %v480_v30 = vor.u32 %v502_v27, %v477_v28  ;;  %v501_v32 = vld [vmem:[%s628_s5 + $0x14] sm:$0xf0]  ;;  %v500_v33 = vld [vmem:[%s628_s5 + $0x14] sm:$0xf]  ;;  %v469_v34 = vld [vmem:[%s628_s5 + $0x18] sm:$0xf0] }
  0x2a   : > { %v468_v35 = vor.u32 %v501_v32, %v467_v31  ;;  %v472_v36 = vor.u32 %v500_v33, %v469_v34  ;;  %v459_v37 = vld [vmem:[%s628_s5] sm:$0xf]  ;;  %v499_v38 = vld [vmem:[%s628_s5 + $0x4] sm:$0xf0]  ;;  %v498_v39 = vld [vmem:[%s628_s5 + $0x4] sm:$0xf] }
  0x2b   : > { %v315_v21 = vsel %vm313_vm0, %v299_v15, 0  ;;  %v318_v22 = vsel %vm313_vm0, %v300_v16, 0  ;;  %v461_v40 = vld [vmem:[%s628_s5 + $0x8] sm:$0xf0]  ;;  %v460_v41 = vor.u32 %v499_v38, %v459_v37  ;;  %v497_v43 = vld [vmem:[%s673_s1] sm:$0xff]  ;;  %s506_s12 = sshll.u32 (%p610_p5), %s445_s15, 4 }
  0x2c   : > { %323 = vmatpush.bf16.msra.mxu0 %v315_v21  ;;  %337 = vmatpush.bf16.msra.mxu1 %v318_v22  ;;  %v464_v42 = vor.u32 %v498_v39, %v461_v40  ;;  %s365_s21 = scalar_lea.vmem (%p610_p5), %s675_s3, %s506_s12 }
  0x2f   : > { %256 = vperm.xlu0 %534, %v248_v20  }
  0x30   : > { %324 = vmatpush.bf16.msra.mxu0 %v484_v23  ;;  %338 = vmatpush.bf16.msra.mxu1 %v488_v24 }
  0x34   : > { %325 = vmatpush.bf16.msra.mxu0 %v476_v29  ;;  %339 = vmatpush.bf16.msra.mxu1 %v480_v30 }
  0x38   : > { %326 = vmatpush.bf16.msra.mxu0 %v468_v35  ;;  %340 = vmatpush.bf16.msra.mxu1 %v472_v36 }
  0x3c   : > { %327 = vmatpush.bf16.msra.mxu0 %v460_v41  ;;  %341 = vmatpush.bf16.msra.mxu1 %v464_v42 }
  0x3f   : > { %489 = vmatmul.msk.bf16.vlgmr.msra.gmra.mxu0 %vm309_vm1, %v497_v43  ;;  %490 = vmatmul.msk.bf16.vlgmr.msra.gmra.mxu1 %vm309_vm1, %v497_v43 }
  0x99   : > { %v252_v44 = vpop.permute.xlu0 %251 }
  0xa1   : > { %v257_v51 = vpop.permute.xlu0 %256 }
  0xbc   : > { %v329_v45 = vpop.f32.mrf.mxu0  ;;  %v343_v46 = vpop.f32.mrf.mxu1 }
  0xbd   : > { %v330_v47 = vadd.f32 %v329_v45, %v252_v44  ;;  %v344_v48 = vadd.f32 %v343_v46, %v252_v44 }
  0xbf   : > { %v348_v49 = vmax.f32 %v330_v47, 0.0  ;;  %v349_v50 = vmax.f32 %v344_v48, 0.0 }
  0xc1   : > { %352 = vst [vmem:[%s232_s11] sm:$0xff] %v348_v49 }
  0xc2   : > { %353 = vst [vmem:[%s232_s11 + $0x8] sm:$0xff] %v349_v50 }
  0xc4   : > { %v331_v52 = vpop.f32.mrf.mxu0  ;;  %v345_v53 = vpop.f32.mrf.mxu1 }
  0xc5   : > { %v332_v54 = vadd.f32 %v331_v52, %v257_v51  ;;  %v346_v55 = vadd.f32 %v345_v53, %v257_v51 }
  0xc6   : > { %362 = sbr.rel (!%p610_p5) target bundleno = 211 (0xd3), region = 74 }
  0xc7   : > { %v350_v56 = vmax.f32 %v332_v54, 0.0  ;;  %v351_v57 = vmax.f32 %v346_v55, 0.0 }
  0xc8   : > { %v378_v58 = vld [vmem:[%s232_s11] sm:$0xff] (%p610_p5) }
  0xc9   : > { %354 = vst [vmem:[%s232_s11 + $0x10] sm:$0xff] %v350_v56  ;;  %v380_v59 = vld [vmem:[%s232_s11 + $0x8] sm:$0xff] (%p610_p5) }
  0xca   : > { %355 = vst [vmem:[%s232_s11 + $0x18] sm:$0xff] %v351_v57 }
  0xcb   : > { %379 = vst [vmem:[%s365_s21] sm:$0xff] %v378_v58 }
  0xcc   : > { %381 = vst [vmem:[%s365_s21 + $0x8] sm:$0xff] %v380_v59 }
  0xd0   : > { %v382_v60 = vld [vmem:[%s232_s11 + $0x10] sm:$0xff] }
  0xd1   : > { %v384_v61 = vld [vmem:[%s232_s11 + $0x18] sm:$0xff]  ;;  %383 = vst [vmem:[%s365_s21 + $0x20] sm:$0xff] %v382_v60 }
  0xd2   : > { %385 = vst [vmem:[%s365_s21 + $0x28] sm:$0xff] %v384_v61 }
  0xd3 PF: > { %p10_p10 = scmp.ge.s32.totalorder %s597_s16, 4   ;;  %s677_s12 = smov %s553_s13 }
  0xd4   : > { %s678_s13 = smov %s608_s19  ;;  %s679_s14 = smov %s597_s16 }
  0xd5   :  { %12 = sbr.rel (!%p10_p10) target bundleno = 2 (0x2), region = 128 }

// kernel: csfi3_forward.13
= control target key start
LH: loop header
LB: loop body
LE: loop exit
PB: predicated region body
PF: predicated region fallthrough
CT: control target
= control target key end

     0   :  { %vm140_vm0 = vcmask 1043456   ;;  %v244_v4 = vmov 0   ;;  %vm136_vm1 = vcmask 719872   ;;  %s316_s0 = inlined_call_operand.vmem [shape: bf16[216,128], index: 0, kind: input, shape index: {}]   ;;  %s317_s2 = inlined_call_operand.vmem [shape: f32[8,1], index: 2, kind: input, shape index: {}]   ;;  %s318_s1 = inlined_call_operand.vmem [shape: bf16[8,216], index: 1, kind: input, shape index: {}]   ;;  %s319_s3 = inlined_call_operand.vmem [shape: f32[8,128], index: 3, kind: output, shape index: {}]  }
   0x1   :  { %v236_v0 = vld [vmem:[%s316_s0 + $0x38] sm:$0xff]  ;;  %v42_v1 = vld [vmem:[%s316_s0 + $0x68] sm:$0xf]  ;;  %v235_v3 = vld [vmem:[%s316_s0 + $0x30] sm:$0xff]  ;;  %243 = vset.pattern.permute.xlu0 %v244_v4 }
   0x2   :  { %v108_v2 = vunpack.c.l.b16 %v42_v1  ;;  %144 = vmatpush.bf16.msra.mxu0 %v236_v0  ;;  %v43_v7 = vld [vmem:[%s317_s2] sm:$0xff]  ;;  %v234_v9 = vld [vmem:[%s316_s0 + $0x28] sm:$0xff]  ;;  %v240_v10 = vld [vmem:[%s316_s0 + $0x58] sm:$0xff] }
   0x3   :  { %v241_v8 = vld [vmem:[%s316_s0 + $0x60] sm:$0xff]  ;;  %46 = vperm.xlu0 %243, %v43_v7   ;;  %v239_v12 = vld [vmem:[%s316_s0 + $0x50] sm:$0xff]  ;;  %v232_v13 = vld [vmem:[%s316_s0 + $0x18] sm:$0xff] }
   0x4   :  { %v122_v5 = vpack.c.b16 %v108_v2, %v108_v2  ;;  %v233_v11 = vld [vmem:[%s316_s0 + $0x20] sm:$0xff]  ;;  %v238_v14 = vld [vmem:[%s316_s0 + $0x48] sm:$0xff]  ;;  %v231_v15 = vld [vmem:[%s316_s0 + $0x10] sm:$0xff] }
   0x5   :  { %v15_v16 = vld [vmem:[%s318_s1] sm:$0xff]  ;;  %v230_v19 = vld [vmem:[%s316_s0 + $0x8] sm:$0xff] }
   0x6   :  { %v142_v6 = vsel %vm140_vm0, %v122_v5, 0  ;;  %145 = vmatpush.bf16.msra.mxu0 %v235_v3  ;;  %v51_v17 = vunpack.c.h.b16 %v15_v16  ;;  %v237_v18 = vld [vmem:[%s316_s0 + $0x40] sm:$0xff]  ;;  %v50_v21 = vunpack.c.l.b16 %v15_v16 }
   0x7   :  { %159 = vmatpush.bf16.msra.mxu1 %v142_v6  ;;  %v229_v22 = vld [vmem:[%s316_s0] sm:$0xff] }
   0x8   :  { %v53_v20 = vpack.c.b16 %v51_v17, %v51_v17  ;;  %v52_v23 = vpack.c.b16 %v50_v21, %v50_v21 }
   0xa   :  { %146 = vmatpush.bf16.msra.mxu0 %v234_v9 }
   0xb   :  { %160 = vmatpush.bf16.msra.mxu1 %v241_v8 }
   0xe   :  { %147 = vmatpush.bf16.msra.mxu0 %v233_v11 }
   0xf   :  { %161 = vmatpush.bf16.msra.mxu1 %v240_v10 }
  0x12   :  { %148 = vmatpush.bf16.msra.mxu0 %v232_v13 }
  0x13   :  { %162 = vmatpush.bf16.msra.mxu1 %v239_v12 }
  0x16   :  { %149 = vmatpush.bf16.msra.mxu0 %v231_v15 }
  0x17   :  { %163 = vmatpush.bf16.msra.mxu1 %v238_v14 }
  0x1a   :  { %150 = vmatpush.bf16.msra.mxu0 %v230_v19 }
  0x1b   :  { %164 = vmatpush.bf16.msra.mxu1 %v237_v18 }
  0x1e   :  { %228 = vmatmul.msk.bf16.vlgmr.msra.gmra.mxu1 %vm136_vm1, %v53_v20  ;;  %151 = vmatpush.bf16.msra.mxu0 %v229_v22 }
  0x21   :  { %152 = vmatmul.bf16.vlgmr.msra.gmra.mxu0 %v52_v23 }
  0x75   :  { %v47_v25 = vpop.permute.xlu0 %46 }
  0x9b   :  { %v166_v24 = vpop.f32.mrf.mxu1 }
  0x9e   :  { %v153_v26 = vpop.f32.mrf.mxu0 }
  0x9f   :  { %v154_v27 = vadd.f32 %v153_v26, %v47_v25 }
  0xa1   :  { %v167_v28 = vadd.f32 %v166_v24, %v154_v27 }
  0xa3   :  { %v168_v29 = vpop.f32.mrf.mxu1  ;;  %v170_v30 = vmax.f32 %v167_v28, 0.0 }
  0xa5   :  { %171 = vst [vmem:[%s319_s3] sm:$0xff] %v170_v30 }
  0xa6   :  { %v155_v31 = vpop.f32.mrf.mxu0 }

// kernel: csfi3_forward.14
= control target key start
LH: loop header
LB: loop body
LE: loop exit
PB: predicated region body
PF: predicated region fallthrough
CT: control target
= control target key end

     0   :  { %s835_s12 = smov 0   ;;  %s837_s13 = smov 0   ;;  %s1006_s0 = inlined_call_operand.vmem [shape: bf16[216,512], index: 0, kind: input, shape index: {}]   ;;  %s1007_s1 = inlined_call_operand.vmem [shape: bf16[8,216], index: 1, kind: input, shape index: {}]   ;;  %s1008_s2 = inlined_call_operand.vmem [shape: f32[8,1], index: 2, kind: input, shape index: {}]   ;;  %s1009_s3 = inlined_call_operand.vmem [shape: f32[8,512], index: 3, kind: output, shape index: {}]  }
   0x1   :  { %s839_s14 = smov 0  }
   0x2 LB: > { %s618_s15 = sadd.s32 4294967295, %s812_s14   ;;  %s852_s16 = sadd.s32 1, %s812_s14   ;;  %s812_s14 = sphi %s839_s14, %s1012_s14   ;;  %s808_s13 = sphi %s837_s13, %s1011_s13   ;;  %s804_s12 = sphi %s835_s12, %s1010_s12  }
   0x3   : > { %s17_s17 = ssub.s32 %s812_s14, %s852_s16  ;;  %s20_s18 = sadd.s32 1, %s808_s13 }
   0x4   : > { %p18_p0 = scmp.eq.s32.totalorder %s17_s17, 0  ;;  %p27_p1 = scmp.ne.s32.totalorder %s808_s13, %s804_s12 }
   0x5   : > { %p28_p2 = scmp.eq.s32.totalorder %s812_s14, 0  ;;  %p621_p4 = scmp.ge.s32.totalorder %s812_s14, 2 }
   0x6   : > { %s861_s19 = scalar_select %p18_p0, %s808_s13, %s20_s18  }
   0x7   : > { %p29_p3 = por %p28_p2, %p27_p1  ;;  %127 = sbr.rel (%p621_p4) target bundleno = 43 (0x2b), region = 24 }
   0xc   : > { %130 = sbr.rel (!%p29_p3) target bundleno = 43 (0x2b), region = 28  ;;  %s132_s20 = sand.u32 (%p29_p3), 1, %s808_s13  }
   0xd   : > { %s735_s21 = sshll.u32 (%p29_p3), %s812_s14, 3  ;;  %s762_s22 = smul.u32 (%p29_p3), 216, %s132_s20 }
   0xe   : > { %s869_s25 = scalar_lea.vmem (%p29_p3), %s1006_s0, %s735_s21 }
   0xf   : > { %v218_v0 = vld [vmem:[%s869_s25] sm:$0xff] (%p29_p3)  ;;  %v220_v1 = vld [vmem:[%s869_s25 + $0x10] sm:$0xff] (%p29_p3)  ;;  %s874_s26 = scalar_lea.vmem (%p29_p3), [#allocation2], %s762_s22 }
  0x10   : > { %v222_v2 = vld [vmem:[%s869_s25 + $0x20] sm:$0xff] (%p29_p3)  ;;  %219 = vst [vmem:[%s874_s26] sm:$0xff] (%p29_p3), %v218_v0  ;;  %v224_v3 = vld [vmem:[%s869_s25 + $0x30] sm:$0xff] (%p29_p3) }
  0x11   : > { %221 = vst [vmem:[%s874_s26 + $0x8] sm:$0xff] %v220_v1  ;;  %v226_v4 = vld [vmem:[%s869_s25 + $0x40] sm:$0xff]  ;;  %v228_v5 = vld [vmem:[%s869_s25 + $0x50] sm:$0xff] }
  0x12   : > { %223 = vst [vmem:[%s874_s26 + $0x10] sm:$0xff] %v222_v2  ;;  %v230_v6 = vld [vmem:[%s869_s25 + $0x60] sm:$0xff]  ;;  %v232_v7 = vld [vmem:[%s869_s25 + $0x70] sm:$0xff] }
  0x13   : > { %225 = vst [vmem:[%s874_s26 + $0x18] sm:$0xff] %v224_v3  ;;  %v234_v8 = vld [vmem:[%s869_s25 + $0x80] sm:$0xff]  ;;  %v236_v9 = vld [vmem:[%s869_s25 + $0x90] sm:$0xff] }
  0x14   : > { %227 = vst [vmem:[%s874_s26 + $0x20] sm:$0xff] %v226_v4  ;;  %v238_v10 = vld [vmem:[%s869_s25 + $0xa0] sm:$0xff]  ;;  %v240_v11 = vld [vmem:[%s869_s25 + $0xb0] sm:$0xff] }
  0x15   : > { %229 = vst [vmem:[%s874_s26 + $0x28] sm:$0xff] %v228_v5  ;;  %v242_v12 = vld [vmem:[%s869_s25 + $0xc0] sm:$0xff]  ;;  %v244_v13 = vld [vmem:[%s869_s25 + $0xd0] sm:$0xff] }
  0x16   : > { %231 = vst [vmem:[%s874_s26 + $0x30] sm:$0xff] %v230_v6  ;;  %v246_v14 = vld [vmem:[%s869_s25 + $0xe0] sm:$0xff]  ;;  %v248_v15 = vld [vmem:[%s869_s25 + $0xf0] sm:$0xff] }
  0x17   : > { %233 = vst [vmem:[%s874_s26 + $0x38] sm:$0xff] %v232_v7  ;;  %v250_v16 = vld [vmem:[%s869_s25 + $0x100] sm:$0xff]  ;;  %v252_v17 = vld [vmem:[%s869_s25 + $0x110] sm:$0xff] }
  0x18   : > { %235 = vst [vmem:[%s874_s26 + $0x40] sm:$0xff] %v234_v8  ;;  %v254_v18 = vld [vmem:[%s869_s25 + $0x120] sm:$0xff]  ;;  %v256_v19 = vld [vmem:[%s869_s25 + $0x130] sm:$0xff] }
  0x19   : > { %237 = vst [vmem:[%s874_s26 + $0x48] sm:$0xff] %v236_v9  ;;  %v258_v20 = vld [vmem:[%s869_s25 + $0x140] sm:$0xff]  ;;  %v260_v21 = vld [vmem:[%s869_s25 + $0x150] sm:$0xff] }
  0x1a   : > { %239 = vst [vmem:[%s874_s26 + $0x50] sm:$0xff] %v238_v10  ;;  %v262_v22 = vld [vmem:[%s869_s25 + $0x160] sm:$0xff]  ;;  %v264_v23 = vld [vmem:[%s869_s25 + $0x170] sm:$0xff] }
  0x1b   : > { %241 = vst [vmem:[%s874_s26 + $0x58] sm:$0xff] %v240_v11  ;;  %v266_v24 = vld [vmem:[%s869_s25 + $0x180] sm:$0xff]  ;;  %v268_v25 = vld [vmem:[%s869_s25 + $0x190] sm:$0xff] }
  0x1c   : > { %243 = vst [vmem:[%s874_s26 + $0x60] sm:$0xff] %v242_v12  ;;  %v270_v26 = vld [vmem:[%s869_s25 + $0x1a0] sm:$0xff] }
  0x1d   : > { %245 = vst [vmem:[%s874_s26 + $0x68] sm:$0xff] %v244_v13 }
  0x1e   : > { %247 = vst [vmem:[%s874_s26 + $0x70] sm:$0xff] %v246_v14 }
  0x1f   : > { %249 = vst [vmem:[%s874_s26 + $0x78] sm:$0xff] %v248_v15 }
  0x20   : > { %251 = vst [vmem:[%s874_s26 + $0x80] sm:$0xff] %v250_v16 }
  0x21   : > { %253 = vst [vmem:[%s874_s26 + $0x88] sm:$0xff] %v252_v17 }
  0x22   : > { %255 = vst [vmem:[%s874_s26 + $0x90] sm:$0xff] %v254_v18 }
  0x23   : > { %257 = vst [vmem:[%s874_s26 + $0x98] sm:$0xff] %v256_v19 }
  0x24   : > { %259 = vst [vmem:[%s874_s26 + $0xa0] sm:$0xff] %v258_v20 }
  0x25   : > { %261 = vst [vmem:[%s874_s26 + $0xa8] sm:$0xff] %v260_v21 }
  0x26   : > { %263 = vst [vmem:[%s874_s26 + $0xb0] sm:$0xff] %v262_v22 }
  0x27   : > { %265 = vst [vmem:[%s874_s26 + $0xb8] sm:$0xff] %v264_v23 }
  0x28   : > { %267 = vst [vmem:[%s874_s26 + $0xc0] sm:$0xff] %v266_v24 }
  0x29   : > { %269 = vst [vmem:[%s874_s26 + $0xc8] sm:$0xff] %v268_v25 }
  0x2a   : > { %271 = vst [vmem:[%s874_s26 + $0xd0] sm:$0xff] %v270_v26 }
  0x2b PF: > { %p624_p5 = scmp.ge.s32.totalorder %s812_s14, 1  ;;  %p276_p6 = scmp.lt.s32.totalorder %s812_s14, 3 }
  0x2d   : > { %p277_p7 = pnand %p624_p5, %p276_p6 }
  0x2e   : > { %s283_s27 = sand.u32 (!%p277_p7), 1, %s804_s12   ;;  %s625_s7 = sshll.u32 (!%p277_p7), %s618_s15, 1 }
  0x2f   : > { %280 = sbr.rel (%p277_p7) target bundleno = 227 (0xe3), region = 66  ;;  %p308_p8 = scmp.lt.s32.totalorder (!%p277_p7), %s625_s7, 3 }
  0x30   : > { %s763_s28 = smul.u32 (!%p277_p7), 216, %s283_s27 }
  0x32   : > { %s930_s29 = scalar_lea.vmem (!%p277_p7), [#allocation2], %s763_s28 }
  0x34   : > { %v685_v27 = vld [vmem:[%s930_s29 + $0x70] sm:$0xf]  ;;  %v751_v28 = vld [vmem:[%s930_s29 + $0x74] sm:$0xf0]  ;;  %v750_v29 = vld [vmem:[%s930_s29 + $0x74] sm:$0xf] }
  0x35   : > { %v686_v30 = vor.u32 %v751_v28, %v685_v27  ;;  %v687_v31 = vld [vmem:[%s930_s29 + $0x78] sm:$0xf0]  ;;  %v341_v32 = vld [vmem:[%s930_s29 + $0xd0] sm:$0xff]  ;;  %v677_v33 = vld [vmem:[%s930_s29 + $0x60] sm:$0xf]  ;;  %vm493_vm0 = vcmask 1043456  }
  0x36   : > { %v690_v34 = vor.u32 %v750_v29, %v687_v31  ;;  %v434_v35 = vunpack.c.h.b16 %v341_v32  ;;  %v749_v36 = vld [vmem:[%s930_s29 + $0x64] sm:$0xf0]  ;;  %v748_v37 = vld [vmem:[%s930_s29 + $0x64] sm:$0xf]  ;;  %v679_v38 = vld [vmem:[%s930_s29 + $0x68] sm:$0xf0]  ;;  %v433_v39 = vunpack.c.l.b16 %v341_v32 }
  0x37   : > { %500 = vmatpush.bf16.msra.mxu0 %v686_v30  ;;  %v678_v40 = vor.u32 %v749_v36, %v677_v33  ;;  %v760_v41 = vld [vmem:[%s930_s29 + $0xc4] sm:$0xf]  ;;  %v727_v42 = vld [vmem:[%s930_s29 + $0xc8] sm:$0xf0]  ;;  %v682_v44 = vor.u32 %v748_v37, %v679_v38  ;;  %v669_v46 = vld [vmem:[%s930_s29 + $0x50] sm:$0xf] }
  0x38   : > { %526 = vmatpush.bf16.msra.mxu2 %v690_v34  ;;  %v462_v43 = vpack.c.b16 %v434_v35, %v434_v35  ;;  %v461_v45 = vpack.c.b16 %v433_v39, %v433_v39  ;;  %v747_v47 = vld [vmem:[%s930_s29 + $0x54] sm:$0xf0]  ;;  %v746_v48 = vld [vmem:[%s930_s29 + $0x54] sm:$0xf]  ;;  %v671_v49 = vld [vmem:[%s930_s29 + $0x58] sm:$0xf0]  ;;  %v730_v54 = vor.u32 %v760_v41, %v727_v42 }
  0x39   : > { %v725_v50 = vld [vmem:[%s930_s29 + $0xc0] sm:$0xf]  ;;  %v761_v51 = vld [vmem:[%s930_s29 + $0xc4] sm:$0xf0]  ;;  %v670_v55 = vor.u32 %v747_v47, %v669_v46  ;;  %v758_v56 = vld [vmem:[%s930_s29 + $0xb4] sm:$0xf]  ;;  %v674_v58 = vor.u32 %v746_v48, %v671_v49 }
  0x3a   : > { %v498_v52 = vsel %vm493_vm0, %v462_v43, 0  ;;  %v495_v53 = vsel %vm493_vm0, %v461_v45, 0  ;;  %v719_v57 = vld [vmem:[%s930_s29 + $0xb8] sm:$0xf0]  ;;  %v726_v59 = vor.u32 %v761_v51, %v725_v50  ;;  %v661_v60 = vld [vmem:[%s930_s29 + $0x40] sm:$0xf] }
  0x3b   : > { %541 = vmatpush.bf16.msra.mxu3 %v498_v52  ;;  %501 = vmatpush.bf16.msra.mxu0 %v678_v40  ;;  %v745_v61 = vld [vmem:[%s930_s29 + $0x44] sm:$0xf0]  ;;  %v744_v62 = vld [vmem:[%s930_s29 + $0x44] sm:$0xf]  ;;  %v663_v63 = vld [vmem:[%s930_s29 + $0x48] sm:$0xf0]  ;;  %v722_v2 = vor.u32 %v758_v56, %v719_v57 }
  0x3c   : > { %527 = vmatpush.bf16.msra.mxu2 %v682_v44  ;;  %515 = vmatpush.bf16.msra.mxu1 %v495_v53  ;;  %v717_v0 = vld [vmem:[%s930_s29 + $0xb0] sm:$0xf]  ;;  %v759_v1 = vld [vmem:[%s930_s29 + $0xb4] sm:$0xf0]  ;;  %v662_v3 = vor.u32 %v745_v61, %v661_v60  ;;  %v756_v4 = vld [vmem:[%s930_s29 + $0xa4] sm:$0xf]  ;;  %v666_v6 = vor.u32 %v744_v62, %v663_v63 }
  0x3d   : > { %v711_v5 = vld [vmem:[%s930_s29 + $0xa8] sm:$0xf0]  ;;  %v718_v7 = vor.u32 %v759_v1, %v717_v0  ;;  %v653_v8 = vld [vmem:[%s930_s29 + $0x30] sm:$0xf]  ;;  %v743_v9 = vld [vmem:[%s930_s29 + $0x34] sm:$0xf0] }
  0x3e   : > { %v742_v10 = vld [vmem:[%s930_s29 + $0x34] sm:$0xf]  ;;  %v655_v11 = vld [vmem:[%s930_s29 + $0x38] sm:$0xf0]  ;;  %v709_v12 = vld [vmem:[%s930_s29 + $0xa0] sm:$0xf]  ;;  %v714_v14 = vor.u32 %v756_v4, %v711_v5  ;;  %v654_v15 = vor.u32 %v743_v9, %v653_v8 }
  0x3f   : > { %542 = vmatpush.bf16.msra.mxu3 %v730_v54  ;;  %502 = vmatpush.bf16.msra.mxu0 %v670_v55  ;;  %v757_v13 = vld [vmem:[%s930_s29 + $0xa4] sm:$0xf0]  ;;  %v754_v16 = vld [vmem:[%s930_s29 + $0x94] sm:$0xf]  ;;  %v703_v17 = vld [vmem:[%s930_s29 + $0x98] sm:$0xf0]  ;;  %v658_v18 = vor.u32 %v742_v10, %v655_v11 }
  0x40   : > { %528 = vmatpush.bf16.msra.mxu2 %v674_v58  ;;  %516 = vmatpush.bf16.msra.mxu1 %v726_v59  ;;  %v710_v19 = vor.u32 %v757_v13, %v709_v12  ;;  %v645_v20 = vld [vmem:[%s930_s29 + $0x20] sm:$0xf]  ;;  %v741_v21 = vld [vmem:[%s930_s29 + $0x24] sm:$0xf0]  ;;  %v740_v22 = vld [vmem:[%s930_s29 + $0x24] sm:$0xf]  ;;  %v706_v27 = vor.u32 %v754_v16, %v703_v17 }
  0x41   : > { %v647_v23 = vld [vmem:[%s930_s29 + $0x28] sm:$0xf0]  ;;  %v701_v24 = vld [vmem:[%s930_s29 + $0x90] sm:$0xf]  ;;  %v755_v25 = vld [vmem:[%s930_s29 + $0x94] sm:$0xf0]  ;;  %v646_v28 = vor.u32 %v741_v21, %v645_v20 }
  0x42   : > { %v314_v26 = vld [vmem:[%s1007_s1] sm:$0xff]  ;;  %v650_v32 = vor.u32 %v740_v22, %v647_v23  ;;  %v702_v33 = vor.u32 %v755_v25, %v701_v24  ;;  %v637_v34 = vld [vmem:[%s930_s29 + $0x10] sm:$0xf]  ;;  %v739_v35 = vld [vmem:[%s930_s29 + $0x14] sm:$0xf0]  ;;  %v814_v40 = vmov 0  }
  0x43   : > { %543 = vmatpush.bf16.msra.mxu3 %v722_v2  ;;  %503 = vmatpush.bf16.msra.mxu0 %v662_v3  ;;  %v752_v29 = vld [vmem:[%s930_s29 + $0x84] sm:$0xf]  ;;  %v695_v30 = vld [vmem:[%s930_s29 + $0x88] sm:$0xf0]  ;;  %v738_v36 = vld [vmem:[%s930_s29 + $0x14] sm:$0xf]  ;;  %v350_v41 = vunpack.c.h.b16 %v314_v26  ;;  %v638_v43 = vor.u32 %v739_v35, %v637_v34  ;;  %v349_v51 = vunpack.c.l.b16 %v314_v26 }
  0x44   : > { %529 = vmatpush.bf16.msra.mxu2 %v666_v6  ;;  %517 = vmatpush.bf16.msra.mxu1 %v718_v7  ;;  %v342_v31 = vld [vmem:[%s1008_s2] sm:$0xff]  ;;  %v639_v37 = vld [vmem:[%s930_s29 + $0x18] sm:$0xf0]  ;;  %v698_v42 = vor.u32 %v752_v29, %v695_v30  ;;  %vm489_vm1 = vcmask 719872   ;;  %s1014_s7 = smov (!%p308_p8, %s625_s7), 3 }
  0x45   : > { %v693_v38 = vld [vmem:[%s930_s29 + $0x80] sm:$0xf]  ;;  %v753_v39 = vld [vmem:[%s930_s29 + $0x84] sm:$0xf0]  ;;  %789 = vset.pattern.permute.xlu0 %v814_v40  ;;  %v642_v44 = vor.u32 %v738_v36, %v639_v37  ;;  %v736_v48 = vld [vmem:[%s930_s29 + $0x4] sm:$0xf]  ;;  %v352_v50 = vpack.c.b16 %v350_v41, %v350_v41  ;;  %v351_v54 = vpack.c.b16 %v349_v51, %v349_v51 }
  0x46   : > { %345 = vperm.xlu0 %789, %v342_v31   ;;  %v694_v45 = vor.u32 %v753_v39, %v693_v38  ;;  %v629_v46 = vld [vmem:[%s930_s29] sm:$0xf]  ;;  %v737_v47 = vld [vmem:[%s930_s29 + $0x4] sm:$0xf0]  ;;  %v631_v49 = vld [vmem:[%s930_s29 + $0x8] sm:$0xf0] }
  0x47   : > { %544 = vmatpush.bf16.msra.mxu3 %v714_v14  ;;  %504 = vmatpush.bf16.msra.mxu0 %v654_v15  ;;  %v630_v52 = vor.u32 %v737_v47, %v629_v46  ;;  %v634_v53 = vor.u32 %v736_v48, %v631_v49  ;;  %s626_s8 = sshll.u32 %s1014_s7, 3 }
  0x48   : > { %530 = vmatpush.bf16.msra.mxu2 %v658_v18  ;;  %518 = vmatpush.bf16.msra.mxu1 %v710_v19  ;;  %s311_s11 = scalar_lea.vmem %s1009_s3, %s626_s8 }
  0x4b   : > { %545 = vmatpush.bf16.msra.mxu3 %v706_v27  ;;  %505 = vmatpush.bf16.msra.mxu0 %v646_v28 }
  0x4c   : > { %531 = vmatpush.bf16.msra.mxu2 %v650_v32  ;;  %519 = vmatpush.bf16.msra.mxu1 %v702_v33 }
  0x4f   : > { %546 = vmatpush.bf16.msra.mxu3 %v698_v42  ;;  %506 = vmatpush.bf16.msra.mxu0 %v638_v43 }
  0x50   : > { %532 = vmatpush.bf16.msra.mxu2 %v642_v44  ;;  %520 = vmatpush.bf16.msra.mxu1 %v694_v45 }
  0x52   : > { %732 = vmatmul.msk.bf16.vlgmr.msra.gmra.mxu3 %vm489_vm1, %v352_v50 }
  0x53   : > { %507 = vmatpush.bf16.msra.mxu0 %v630_v52  ;;  %731 = vmatmul.msk.bf16.vlgmr.msra.gmra.mxu1 %vm489_vm1, %v352_v50 }
  0x54   : > { %533 = vmatpush.bf16.msra.mxu2 %v634_v53 }
  0x56   : > { %508 = vmatmul.bf16.vlgmr.msra.gmra.mxu0 %v351_v54 }
  0x57   : > { %534 = vmatmul.bf16.vlgmr.msra.gmra.mxu2 %v351_v54 }
  0xb8   : > { %v346_v56 = vpop.permute.xlu0 %345 }
  0xd0   : > { %v522_v55 = vpop.f32.mrf.mxu1 }
  0xd3   : > { %v509_v57 = vpop.f32.mrf.mxu0 }
  0xd4   : > { %v510_v58 = vadd.f32 %v509_v57, %v346_v56 }
  0xd5   : > { %v548_v59 = vpop.f32.mrf.mxu3 }
  0xd6   : > { %v523_v60 = vadd.f32 %v522_v55, %v510_v58 }
  0xd8   : > { %v552_v61 = vmax.f32 %v523_v60, 0.0  ;;  %v524_v62 = vpop.f32.mrf.mxu1 }
  0xda   : > { %554 = vst [vmem:[%s311_s11] sm:$0xff] %v552_v61  ;;  %v535_v63 = vpop.f32.mrf.mxu2 }
  0xdb   : > { %v536_v0 = vadd.f32 %v535_v63, %v346_v56  ;;  %v511_v1 = vpop.f32.mrf.mxu0 }
  0xdd   : > { %v549_v2 = vadd.f32 %v548_v59, %v536_v0  ;;  %v550_v3 = vpop.f32.mrf.mxu3 }
  0xdf   : > { %v553_v4 = vmax.f32 %v549_v2, 0.0 }
  0xe1   : > { %555 = vst [vmem:[%s311_s11 + $0x8] sm:$0xff] %v553_v4 }
  0xe2   : > { %v537_v5 = vpop.f32.mrf.mxu2 }
  0xe3 PF: > { %p10_p9 = scmp.ge.s32.totalorder %s852_s16, 4   ;;  %s1010_s12 = smov %s808_s13 }
  0xe4   : > { %s1011_s13 = smov %s861_s19  ;;  %s1012_s14 = smov %s852_s16 }
  0xe5   :  { %12 = sbr.rel (!%p10_p9) target bundleno = 2 (0x2), region = 105 }

// kernel: csfi3_forward.15
= control target key start
LH: loop header
LB: loop body
LE: loop exit
PB: predicated region body
PF: predicated region fallthrough
CT: control target
= control target key end

     0   :  { %s1997_s12 = smov 0   ;;  %s1999_s13 = smov 0   ;;  %s2539_s0 = inlined_call_operand.vmem [shape: bf16[216,2048], index: 0, kind: input, shape index: {}]   ;;  %s2540_s1 = inlined_call_operand.vmem [shape: bf16[8,216], index: 1, kind: input, shape index: {}]   ;;  %s2541_s2 = inlined_call_operand.vmem [shape: f32[8,1], index: 2, kind: input, shape index: {}]   ;;  %s2542_s3 = inlined_call_operand.vmem [shape: f32[8,2048], index: 3, kind: output, shape index: {}]  }
   0x1   :  { %s2001_s14 = smov 0  }
   0x2 LB: > { %s1384_s15 = sadd.s32 4294967295, %s1974_s14   ;;  %s2014_s16 = sadd.s32 1, %s1974_s14   ;;  %s1974_s14 = sphi %s2001_s14, %s2545_s14   ;;  %s1970_s13 = sphi %s1999_s13, %s2544_s13   ;;  %s1966_s12 = sphi %s1997_s12, %s2543_s12  }
   0x3   : > { %s17_s17 = ssub.s32 %s1974_s14, %s2014_s16  ;;  %s20_s18 = sadd.s32 1, %s1970_s13 }
   0x4   : > { %p18_p0 = scmp.eq.s32.totalorder %s17_s17, 0  ;;  %p27_p1 = scmp.ne.s32.totalorder %s1970_s13, %s1966_s12 }
   0x5   : > { %p28_p2 = scmp.eq.s32.totalorder %s1974_s14, 0  ;;  %p1387_p4 = scmp.ge.s32.totalorder %s1974_s14, 2 }
   0x6   : > { %s2023_s19 = scalar_select %p18_p0, %s1970_s13, %s20_s18  }
   0x7   : > { %p29_p3 = por %p28_p2, %p27_p1  ;;  %127 = sbr.rel (%p1387_p4) target bundleno = 124 (0x7c), region = 24 }
   0xc   : > { %130 = sbr.rel (!%p29_p3) target bundleno = 124 (0x7c), region = 28  ;;  %s132_s20 = sand.u32 (%p29_p3), 1, %s1970_s13  }
   0xd   : > { %s1819_s21 = sshll.u32 (%p29_p3), %s1974_s14, 5  ;;  %s1924_s22 = smul.u32 (%p29_p3), 864, %s132_s20 }
   0xe   : > { %s2031_s25 = scalar_lea.vmem (%p29_p3), %s2539_s0, %s1819_s21 }
   0xf   : > { %v150_v0 = vld [vmem:[%s2031_s25] sm:$0xff] (%p29_p3)  ;;  %v152_v1 = vld [vmem:[%s2031_s25 + $0x8] sm:$0xff] (%p29_p3)  ;;  %v154_v2 = vld [vmem:[%s2031_s25 + $0x10] sm:$0xff] (%p29_p3)  ;;  %s2036_s26 = scalar_lea.vmem (%p29_p3), [#allocation2], %s1924_s22 }
  0x10   : > { %151 = vst [vmem:[%s2036_s26] sm:$0xff] (%p29_p3), %v150_v0  ;;  %v156_v3 = vld [vmem:[%s2031_s25 + $0x18] sm:$0xff] (%p29_p3)  ;;  %v158_v4 = vld [vmem:[%s2031_s25 + $0x40] sm:$0xff] (%p29_p3)  ;;  %v160_v5 = vld [vmem:[%s2031_s25 + $0x48] sm:$0xff] (%p29_p3) }
  0x11   : > { %153 = vst [vmem:[%s2036_s26 + $0x8] sm:$0xff] %v152_v1  ;;  %v162_v6 = vld [vmem:[%s2031_s25 + $0x50] sm:$0xff]  ;;  %v164_v7 = vld [vmem:[%s2031_s25 + $0x58] sm:$0xff]  ;;  %v166_v8 = vld [vmem:[%s2031_s25 + $0x80] sm:$0xff] }
  0x12   : > { %155 = vst [vmem:[%s2036_s26 + $0x10] sm:$0xff] %v154_v2  ;;  %v168_v9 = vld [vmem:[%s2031_s25 + $0x88] sm:$0xff]  ;;  %v170_v10 = vld [vmem:[%s2031_s25 + $0x90] sm:$0xff]  ;;  %v172_v11 = vld [vmem:[%s2031_s25 + $0x98] sm:$0xff] }
  0x13   : > { %157 = vst [vmem:[%s2036_s26 + $0x18] sm:$0xff] %v156_v3  ;;  %v174_v12 = vld [vmem:[%s2031_s25 + $0xc0] sm:$0xff]  ;;  %v176_v13 = vld [vmem:[%s2031_s25 + $0xc8] sm:$0xff]  ;;  %v178_v14 = vld [vmem:[%s2031_s25 + $0xd0] sm:$0xff] }
  0x14   : > { %159 = vst [vmem:[%s2036_s26 + $0x20] sm:$0xff] %v158_v4  ;;  %v180_v15 = vld [vmem:[%s2031_s25 + $0xd8] sm:$0xff]  ;;  %v182_v16 = vld [vmem:[%s2031_s25 + $0x100] sm:$0xff]  ;;  %v184_v17 = vld [vmem:[%s2031_s25 + $0x108] sm:$0xff] }
  0x15   : > { %161 = vst [vmem:[%s2036_s26 + $0x28] sm:$0xff] %v160_v5  ;;  %v186_v18 = vld [vmem:[%s2031_s25 + $0x110] sm:$0xff]  ;;  %v188_v19 = vld [vmem:[%s2031_s25 + $0x118] sm:$0xff]  ;;  %v190_v20 = vld [vmem:[%s2031_s25 + $0x140] sm:$0xff] }
  0x16   : > { %163 = vst [vmem:[%s2036_s26 + $0x30] sm:$0xff] %v162_v6  ;;  %v192_v21 = vld [vmem:[%s2031_s25 + $0x148] sm:$0xff]  ;;  %v194_v22 = vld [vmem:[%s2031_s25 + $0x150] sm:$0xff]  ;;  %v196_v23 = vld [vmem:[%s2031_s25 + $0x158] sm:$0xff] }
  0x17   : > { %165 = vst [vmem:[%s2036_s26 + $0x38] sm:$0xff] %v164_v7  ;;  %v198_v24 = vld [vmem:[%s2031_s25 + $0x180] sm:$0xff]  ;;  %v200_v25 = vld [vmem:[%s2031_s25 + $0x188] sm:$0xff]  ;;  %v202_v26 = vld [vmem:[%s2031_s25 + $0x190] sm:$0xff] }
  0x18   : > { %167 = vst [vmem:[%s2036_s26 + $0x40] sm:$0xff] %v166_v8  ;;  %v204_v27 = vld [vmem:[%s2031_s25 + $0x198] sm:$0xff]  ;;  %v206_v28 = vld [vmem:[%s2031_s25 + $0x1c0] sm:$0xff]  ;;  %v208_v29 = vld [vmem:[%s2031_s25 + $0x1c8] sm:$0xff] }
  0x19   : > { %169 = vst [vmem:[%s2036_s26 + $0x48] sm:$0xff] %v168_v9  ;;  %v210_v30 = vld [vmem:[%s2031_s25 + $0x1d0] sm:$0xff]  ;;  %v212_v31 = vld [vmem:[%s2031_s25 + $0x1d8] sm:$0xff]  ;;  %v214_v32 = vld [vmem:[%s2031_s25 + $0x200] sm:$0xff] }
  0x1a   : > { %171 = vst [vmem:[%s2036_s26 + $0x50] sm:$0xff] %v170_v10  ;;  %v216_v33 = vld [vmem:[%s2031_s25 + $0x208] sm:$0xff]  ;;  %v218_v34 = vld [vmem:[%s2031_s25 + $0x210] sm:$0xff]  ;;  %v220_v35 = vld [vmem:[%s2031_s25 + $0x218] sm:$0xff] }
  0x1b   : > { %173 = vst [vmem:[%s2036_s26 + $0x58] sm:$0xff] %v172_v11  ;;  %v222_v36 = vld [vmem:[%s2031_s25 + $0x240] sm:$0xff]  ;;  %v224_v37 = vld [vmem:[%s2031_s25 + $0x248] sm:$0xff]  ;;  %v226_v38 = vld [vmem:[%s2031_s25 + $0x250] sm:$0xff] }
  0x1c   : > { %175 = vst [vmem:[%s2036_s26 + $0x60] sm:$0xff] %v174_v12  ;;  %v228_v39 = vld [vmem:[%s2031_s25 + $0x258] sm:$0xff]  ;;  %v230_v40 = vld [vmem:[%s2031_s25 + $0x280] sm:$0xff]  ;;  %v232_v41 = vld [vmem:[%s2031_s25 + $0x288] sm:$0xff] }
  0x1d   : > { %177 = vst [vmem:[%s2036_s26 + $0x68] sm:$0xff] %v176_v13  ;;  %v234_v42 = vld [vmem:[%s2031_s25 + $0x290] sm:$0xff]  ;;  %v236_v43 = vld [vmem:[%s2031_s25 + $0x298] sm:$0xff]  ;;  %v238_v44 = vld [vmem:[%s2031_s25 + $0x2c0] sm:$0xff] }
  0x1e   : > { %179 = vst [vmem:[%s2036_s26 + $0x70] sm:$0xff] %v178_v14  ;;  %v240_v45 = vld [vmem:[%s2031_s25 + $0x2c8] sm:$0xff]  ;;  %v242_v46 = vld [vmem:[%s2031_s25 + $0x2d0] sm:$0xff]  ;;  %v244_v47 = vld [vmem:[%s2031_s25 + $0x2d8] sm:$0xff] }
  0x1f   : > { %181 = vst [vmem:[%s2036_s26 + $0x78] sm:$0xff] %v180_v15  ;;  %v246_v48 = vld [vmem:[%s2031_s25 + $0x300] sm:$0xff]  ;;  %v248_v49 = vld [vmem:[%s2031_s25 + $0x308] sm:$0xff]  ;;  %v250_v50 = vld [vmem:[%s2031_s25 + $0x310] sm:$0xff] }
  0x20   : > { %183 = vst [vmem:[%s2036_s26 + $0x80] sm:$0xff] %v182_v16  ;;  %v252_v51 = vld [vmem:[%s2031_s25 + $0x318] sm:$0xff]  ;;  %v254_v52 = vld [vmem:[%s2031_s25 + $0x340] sm:$0xff]  ;;  %v256_v53 = vld [vmem:[%s2031_s25 + $0x348] sm:$0xff] }
  0x21   : > { %185 = vst [vmem:[%s2036_s26 + $0x88] sm:$0xff] %v184_v17  ;;  %v258_v54 = vld [vmem:[%s2031_s25 + $0x350] sm:$0xff]  ;;  %v260_v55 = vld [vmem:[%s2031_s25 + $0x358] sm:$0xff]  ;;  %v262_v56 = vld [vmem:[%s2031_s25 + $0x380] sm:$0xff] }
  0x22   : > { %187 = vst [vmem:[%s2036_s26 + $0x90] sm:$0xff] %v186_v18  ;;  %v264_v57 = vld [vmem:[%s2031_s25 + $0x388] sm:$0xff]  ;;  %v266_v58 = vld [vmem:[%s2031_s25 + $0x390] sm:$0xff]  ;;  %v268_v59 = vld [vmem:[%s2031_s25 + $0x398] sm:$0xff] }
  0x23   : > { %189 = vst [vmem:[%s2036_s26 + $0x98] sm:$0xff] %v188_v19  ;;  %v270_v60 = vld [vmem:[%s2031_s25 + $0x3c0] sm:$0xff]  ;;  %v272_v61 = vld [vmem:[%s2031_s25 + $0x3c8] sm:$0xff]  ;;  %v274_v62 = vld [vmem:[%s2031_s25 + $0x3d0] sm:$0xff] }
  0x24   : > { %191 = vst [vmem:[%s2036_s26 + $0xa0] sm:$0xff] %v190_v20  ;;  %v276_v63 = vld [vmem:[%s2031_s25 + $0x3d8] sm:$0xff]  ;;  %v278_v0 = vld [vmem:[%s2031_s25 + $0x400] sm:$0xff]  ;;  %v280_v1 = vld [vmem:[%s2031_s25 + $0x408] sm:$0xff] }
  0x25   : > { %193 = vst [vmem:[%s2036_s26 + $0xa8] sm:$0xff] %v192_v21  ;;  %v282_v2 = vld [vmem:[%s2031_s25 + $0x410] sm:$0xff]  ;;  %v284_v3 = vld [vmem:[%s2031_s25 + $0x418] sm:$0xff]  ;;  %v286_v4 = vld [vmem:[%s2031_s25 + $0x440] sm:$0xff] }
  0x26   : > { %195 = vst [vmem:[%s2036_s26 + $0xb0] sm:$0xff] %v194_v22  ;;  %v288_v5 = vld [vmem:[%s2031_s25 + $0x448] sm:$0xff]  ;;  %v290_v6 = vld [vmem:[%s2031_s25 + $0x450] sm:$0xff]  ;;  %v292_v7 = vld [vmem:[%s2031_s25 + $0x458] sm:$0xff] }
  0x27   : > { %197 = vst [vmem:[%s2036_s26 + $0xb8] sm:$0xff] %v196_v23  ;;  %v294_v8 = vld [vmem:[%s2031_s25 + $0x480] sm:$0xff]  ;;  %v296_v9 = vld [vmem:[%s2031_s25 + $0x488] sm:$0xff]  ;;  %v298_v10 = vld [vmem:[%s2031_s25 + $0x490] sm:$0xff] }
  0x28   : > { %199 = vst [vmem:[%s2036_s26 + $0xc0] sm:$0xff] %v198_v24  ;;  %v300_v11 = vld [vmem:[%s2031_s25 + $0x498] sm:$0xff]  ;;  %v302_v12 = vld [vmem:[%s2031_s25 + $0x4c0] sm:$0xff]  ;;  %v304_v13 = vld [vmem:[%s2031_s25 + $0x4c8] sm:$0xff] }
  0x29   : > { %201 = vst [vmem:[%s2036_s26 + $0xc8] sm:$0xff] %v200_v25  ;;  %v306_v14 = vld [vmem:[%s2031_s25 + $0x4d0] sm:$0xff]  ;;  %v308_v15 = vld [vmem:[%s2031_s25 + $0x4d8] sm:$0xff]  ;;  %v310_v16 = vld [vmem:[%s2031_s25 + $0x500] sm:$0xff] }
  0x2a   : > { %203 = vst [vmem:[%s2036_s26 + $0xd0] sm:$0xff] %v202_v26  ;;  %v312_v17 = vld [vmem:[%s2031_s25 + $0x508] sm:$0xff]  ;;  %v314_v18 = vld [vmem:[%s2031_s25 + $0x510] sm:$0xff]  ;;  %v316_v19 = vld [vmem:[%s2031_s25 + $0x518] sm:$0xff] }
  0x2b   : > { %205 = vst [vmem:[%s2036_s26 + $0xd8] sm:$0xff] %v204_v27  ;;  %v318_v20 = vld [vmem:[%s2031_s25 + $0x540] sm:$0xff]  ;;  %v320_v21 = vld [vmem:[%s2031_s25 + $0x548] sm:$0xff]  ;;  %v322_v22 = vld [vmem:[%s2031_s25 + $0x550] sm:$0xff] }
  0x2c   : > { %207 = vst [vmem:[%s2036_s26 + $0xe0] sm:$0xff] %v206_v28  ;;  %v324_v23 = vld [vmem:[%s2031_s25 + $0x558] sm:$0xff]  ;;  %v326_v24 = vld [vmem:[%s2031_s25 + $0x580] sm:$0xff]  ;;  %v328_v25 = vld [vmem:[%s2031_s25 + $0x588] sm:$0xff] }
  0x2d   : > { %209 = vst [vmem:[%s2036_s26 + $0xe8] sm:$0xff] %v208_v29  ;;  %v330_v26 = vld [vmem:[%s2031_s25 + $0x590] sm:$0xff]  ;;  %v332_v27 = vld [vmem:[%s2031_s25 + $0x598] sm:$0xff]  ;;  %v334_v28 = vld [vmem:[%s2031_s25 + $0x5c0] sm:$0xff] }
  0x2e   : > { %211 = vst [vmem:[%s2036_s26 + $0xf0] sm:$0xff] %v210_v30  ;;  %v336_v29 = vld [vmem:[%s2031_s25 + $0x5c8] sm:$0xff]  ;;  %v338_v30 = vld [vmem:[%s2031_s25 + $0x5d0] sm:$0xff] }
  0x2f   : > { %213 = vst [vmem:[%s2036_s26 + $0xf8] sm:$0xff] %v212_v31  ;;  %v340_v31 = vld [vmem:[%s2031_s25 + $0x5d8] sm:$0xff] }
  0x30   : > { %215 = vst [vmem:[%s2036_s26 + $0x100] sm:$0xff] %v214_v32  ;;  %v342_v32 = vld [vmem:[%s2031_s25 + $0x600] sm:$0xff] }
  0x31   : > { %217 = vst [vmem:[%s2036_s26 + $0x108] sm:$0xff] %v216_v33  ;;  %v344_v33 = vld [vmem:[%s2031_s25 + $0x608] sm:$0xff] }
  0x32   : > { %219 = vst [vmem:[%s2036_s26 + $0x110] sm:$0xff] %v218_v34  ;;  %v346_v34 = vld [vmem:[%s2031_s25 + $0x610] sm:$0xff] }
  0x33   : > { %221 = vst [vmem:[%s2036_s26 + $0x118] sm:$0xff] %v220_v35  ;;  %v348_v35 = vld [vmem:[%s2031_s25 + $0x618] sm:$0xff] }
  0x34   : > { %223 = vst [vmem:[%s2036_s26 + $0x120] sm:$0xff] %v222_v36  ;;  %v350_v36 = vld [vmem:[%s2031_s25 + $0x640] sm:$0xff] }
  0x35   : > { %225 = vst [vmem:[%s2036_s26 + $0x128] sm:$0xff] %v224_v37  ;;  %v352_v37 = vld [vmem:[%s2031_s25 + $0x648] sm:$0xff] }
  0x36   : > { %227 = vst [vmem:[%s2036_s26 + $0x130] sm:$0xff] %v226_v38  ;;  %v354_v38 = vld [vmem:[%s2031_s25 + $0x650] sm:$0xff] }
  0x37   : > { %229 = vst [vmem:[%s2036_s26 + $0x138] sm:$0xff] %v228_v39  ;;  %v356_v39 = vld [vmem:[%s2031_s25 + $0x658] sm:$0xff] }
  0x38   : > { %231 = vst [vmem:[%s2036_s26 + $0x140] sm:$0xff] %v230_v40  ;;  %v358_v40 = vld [vmem:[%s2031_s25 + $0x680] sm:$0xff] }
  0x39   : > { %233 = vst [vmem:[%s2036_s26 + $0x148] sm:$0xff] %v232_v41  ;;  %v360_v41 = vld [vmem:[%s2031_s25 + $0x688] sm:$0xff] }
  0x3a   : > { %235 = vst [vmem:[%s2036_s26 + $0x150] sm:$0xff] %v234_v42  ;;  %v362_v42 = vld [vmem:[%s2031_s25 + $0x690] sm:$0xff] }
  0x3b   : > { %237 = vst [vmem:[%s2036_s26 + $0x158] sm:$0xff] %v236_v43  ;;  %v364_v43 = vld [vmem:[%s2031_s25 + $0x698] sm:$0xff] }
  0x3c   : > { %239 = vst [vmem:[%s2036_s26 + $0x160] sm:$0xff] %v238_v44 }
  0x3d   : > { %241 = vst [vmem:[%s2036_s26 + $0x168] sm:$0xff] %v240_v45 }
  0x3e   : > { %243 = vst [vmem:[%s2036_s26 + $0x170] sm:$0xff] %v242_v46 }
  0x3f   : > { %245 = vst [vmem:[%s2036_s26 + $0x178] sm:$0xff] %v244_v47 }
  0x40   : > { %247 = vst [vmem:[%s2036_s26 + $0x180] sm:$0xff] %v246_v48 }
  0x41   : > { %249 = vst [vmem:[%s2036_s26 + $0x188] sm:$0xff] %v248_v49 }
  0x42   : > { %251 = vst [vmem:[%s2036_s26 + $0x190] sm:$0xff] %v250_v50 }
  0x43   : > { %253 = vst [vmem:[%s2036_s26 + $0x198] sm:$0xff] %v252_v51 }
  0x44   : > { %255 = vst [vmem:[%s2036_s26 + $0x1a0] sm:$0xff] %v254_v52 }
  0x45   : > { %257 = vst [vmem:[%s2036_s26 + $0x1a8] sm:$0xff] %v256_v53 }
  0x46   : > { %259 = vst [vmem:[%s2036_s26 + $0x1b0] sm:$0xff] %v258_v54 }
  0x47   : > { %261 = vst [vmem:[%s2036_s26 + $0x1b8] sm:$0xff] %v260_v55 }
  0x48   : > { %263 = vst [vmem:[%s2036_s26 + $0x1c0] sm:$0xff] %v262_v56 }
  0x49   : > { %265 = vst [vmem:[%s2036_s26 + $0x1c8] sm:$0xff] %v264_v57 }
  0x4a   : > { %267 = vst [vmem:[%s2036_s26 + $0x1d0] sm:$0xff] %v266_v58 }
  0x4b   : > { %269 = vst [vmem:[%s2036_s26 + $0x1d8] sm:$0xff] %v268_v59 }
  0x4c   : > { %271 = vst [vmem:[%s2036_s26 + $0x1e0] sm:$0xff] %v270_v60 }
  0x4d   : > { %273 = vst [vmem:[%s2036_s26 + $0x1e8] sm:$0xff] %v272_v61 }
  0x4e   : > { %275 = vst [vmem:[%s2036_s26 + $0x1f0] sm:$0xff] %v274_v62 }
  0x4f   : > { %277 = vst [vmem:[%s2036_s26 + $0x1f8] sm:$0xff] %v276_v63 }
  0x50   : > { %279 = vst [vmem:[%s2036_s26 + $0x200] sm:$0xff] %v278_v0 }
  0x51   : > { %281 = vst [vmem:[%s2036_s26 + $0x208] sm:$0xff] %v280_v1 }
  0x52   : > { %283 = vst [vmem:[%s2036_s26 + $0x210] sm:$0xff] %v282_v2 }
  0x53   : > { %285 = vst [vmem:[%s2036_s26 + $0x218] sm:$0xff] %v284_v3 }
  0x54   : > { %287 = vst [vmem:[%s2036_s26 + $0x220] sm:$0xff] %v286_v4 }
  0x55   : > { %289 = vst [vmem:[%s2036_s26 + $0x228] sm:$0xff] %v288_v5 }
  0x56   : > { %291 = vst [vmem:[%s2036_s26 + $0x230] sm:$0xff] %v290_v6 }
  0x57   : > { %293 = vst [vmem:[%s2036_s26 + $0x238] sm:$0xff] %v292_v7 }
  0x58   : > { %295 = vst [vmem:[%s2036_s26 + $0x240] sm:$0xff] %v294_v8 }
  0x59   : > { %297 = vst [vmem:[%s2036_s26 + $0x248] sm:$0xff] %v296_v9 }
  0x5a   : > { %299 = vst [vmem:[%s2036_s26 + $0x250] sm:$0xff] %v298_v10 }
  0x5b   : > { %301 = vst [vmem:[%s2036_s26 + $0x258] sm:$0xff] %v300_v11 }
  0x5c   : > { %303 = vst [vmem:[%s2036_s26 + $0x260] sm:$0xff] %v302_v12 }
  0x5d   : > { %305 = vst [vmem:[%s2036_s26 + $0x268] sm:$0xff] %v304_v13 }
  0x5e   : > { %307 = vst [vmem:[%s2036_s26 + $0x270] sm:$0xff] %v306_v14 }
  0x5f   : > { %309 = vst [vmem:[%s2036_s26 + $0x278] sm:$0xff] %v308_v15 }
  0x60   : > { %311 = vst [vmem:[%s2036_s26 + $0x280] sm:$0xff] %v310_v16 }
  0x61   : > { %313 = vst [vmem:[%s2036_s26 + $0x288] sm:$0xff] %v312_v17 }
  0x62   : > { %315 = vst [vmem:[%s2036_s26 + $0x290] sm:$0xff] %v314_v18 }
  0x63   : > { %317 = vst [vmem:[%s2036_s26 + $0x298] sm:$0xff] %v316_v19 }
  0x64   : > { %319 = vst [vmem:[%s2036_s26 + $0x2a0] sm:$0xff] %v318_v20 }
  0x65   : > { %321 = vst [vmem:[%s2036_s26 + $0x2a8] sm:$0xff] %v320_v21 }
  0x66   : > { %323 = vst [vmem:[%s2036_s26 + $0x2b0] sm:$0xff] %v322_v22 }
  0x67   : > { %325 = vst [vmem:[%s2036_s26 + $0x2b8] sm:$0xff] %v324_v23 }
  0x68   : > { %327 = vst [vmem:[%s2036_s26 + $0x2c0] sm:$0xff] %v326_v24 }
  0x69   : > { %329 = vst [vmem:[%s2036_s26 + $0x2c8] sm:$0xff] %v328_v25 }
  0x6a   : > { %331 = vst [vmem:[%s2036_s26 + $0x2d0] sm:$0xff] %v330_v26 }
  0x6b   : > { %333 = vst [vmem:[%s2036_s26 + $0x2d8] sm:$0xff] %v332_v27 }
  0x6c   : > { %335 = vst [vmem:[%s2036_s26 + $0x2e0] sm:$0xff] %v334_v28 }
  0x6d   : > { %337 = vst [vmem:[%s2036_s26 + $0x2e8] sm:$0xff] %v336_v29 }
  0x6e   : > { %339 = vst [vmem:[%s2036_s26 + $0x2f0] sm:$0xff] %v338_v30 }
  0x6f   : > { %341 = vst [vmem:[%s2036_s26 + $0x2f8] sm:$0xff] %v340_v31 }
  0x70   : > { %343 = vst [vmem:[%s2036_s26 + $0x300] sm:$0xff] %v342_v32 }
  0x71   : > { %345 = vst [vmem:[%s2036_s26 + $0x308] sm:$0xff] %v344_v33 }
  0x72   : > { %347 = vst [vmem:[%s2036_s26 + $0x310] sm:$0xff] %v346_v34 }
  0x73   : > { %349 = vst [vmem:[%s2036_s26 + $0x318] sm:$0xff] %v348_v35 }
  0x74   : > { %351 = vst [vmem:[%s2036_s26 + $0x320] sm:$0xff] %v350_v36 }
  0x75   : > { %353 = vst [vmem:[%s2036_s26 + $0x328] sm:$0xff] %v352_v37 }
  0x76   : > { %355 = vst [vmem:[%s2036_s26 + $0x330] sm:$0xff] %v354_v38 }
  0x77   : > { %357 = vst [vmem:[%s2036_s26 + $0x338] sm:$0xff] %v356_v39 }
  0x78   : > { %359 = vst [vmem:[%s2036_s26 + $0x340] sm:$0xff] %v358_v40 }
  0x79   : > { %361 = vst [vmem:[%s2036_s26 + $0x348] sm:$0xff] %v360_v41 }
  0x7a   : > { %363 = vst [vmem:[%s2036_s26 + $0x350] sm:$0xff] %v362_v42 }
  0x7b   : > { %365 = vst [vmem:[%s2036_s26 + $0x358] sm:$0xff] %v364_v43 }
  0x7c PF: > { %p1390_p5 = scmp.ge.s32.totalorder %s1974_s14, 1  ;;  %p370_p6 = scmp.lt.s32.totalorder %s1974_s14, 3 }
  0x7e   : > { %p371_p7 = pnand %p1390_p5, %p370_p6 }
  0x7f   : > { %s377_s27 = sand.u32 (!%p371_p7), 1, %s1966_s12   ;;  %s1391_s7 = sshll.u32 (!%p371_p7), %s1384_s15, 3 }
  0x80   : > { %374 = sbr.rel (%p371_p7) target bundleno = 391 (0x187), region = 51  ;;  %p402_p8 = scmp.lt.s32.totalorder (!%p371_p7), %s1391_s7, 15 }
  0x81   : > { %s1925_s28 = smul.u32 (!%p371_p7), 864, %s377_s27 }
  0x83   : > { %s2254_s29 = scalar_lea.vmem (!%p371_p7), [#allocation2], %s1925_s28 }
  0x85   : > { %v1619_v44 = vld [vmem:[%s2254_s29 + $0x1c0] sm:$0xf]  ;;  %v1876_v46 = vld [vmem:[%s2254_s29 + $0x1c4] sm:$0xf]  ;;  %vm1073_vm0 = vcmask 1043456   ;;  %v514_v43 = vld [vmem:[%s2254_s29 + $0x348] sm:$0xff] }
  0x86   : > { %v1880_v45 = vld [vmem:[%s2254_s29 + $0x1dc] sm:$0xf0]  ;;  %v1621_v48 = vld [vmem:[%s2254_s29 + $0x1e0] sm:$0xf0]  ;;  %vm1069_vm1 = vcmask 719872   ;;  %s2547_s7 = smov (!%p402_p8, %s1391_s7), 15 }
  0x87   : > { %v1620_v47 = vor.u32 %v1880_v45, %v1619_v44  ;;  %v513_v49 = vld [vmem:[%s2254_s29 + $0x340] sm:$0xff]  ;;  %v1624_v51 = vor.u32 %v1876_v46, %v1621_v48  ;;  %v847_v44 = vunpack.c.l.b16 %v514_v43  ;;  %s1392_s8 = sshll.u32 %s2547_s7, 3 }
  0x88   : > { %v1587_v50 = vld [vmem:[%s2254_s29 + $0x180] sm:$0xf]  ;;  %v845_v52 = vunpack.c.l.b16 %v513_v49  ;;  %v846_v53 = vunpack.c.h.b16 %v513_v49  ;;  %v1868_v55 = vld [vmem:[%s2254_s29 + $0x184] sm:$0xf]  ;;  %s2519_s11 = scalar_lea.vmem %s2542_s3, %s1392_s8 }
  0x89   : > { %v1872_v54 = vld [vmem:[%s2254_s29 + $0x19c] sm:$0xf0]  ;;  %v1589_v56 = vld [vmem:[%s2254_s29 + $0x1a0] sm:$0xf0]  ;;  %1098 = vmatpush.bf16.msra.mxu0 %v1620_v47  ;;  %1124 = vmatpush.bf16.msra.mxu2 %v1624_v51 }
  0x8a   : > { %v1779_v57 = vld [vmem:[%s2254_s29 + $0x300] sm:$0xf]  ;;  %v957_v59 = vpack.c.b16 %v845_v52, %v845_v52  ;;  %v958_v60 = vpack.c.b16 %v846_v53, %v846_v53  ;;  %v1588_v61 = vor.u32 %v1872_v54, %v1587_v50  ;;  %v1592_v62 = vor.u32 %v1868_v55, %v1589_v56  ;;  %v1916_v63 = vld [vmem:[%s2254_s29 + $0x304] sm:$0xf] }
  0x8b   : > { %v1920_v58 = vld [vmem:[%s2254_s29 + $0x31c] sm:$0xf0]  ;;  %v1781_v0 = vld [vmem:[%s2254_s29 + $0x320] sm:$0xf0] }
  0x8c   : > { %v1555_v1 = vld [vmem:[%s2254_s29 + $0x140] sm:$0xf]  ;;  %v1860_v3 = vld [vmem:[%s2254_s29 + $0x144] sm:$0xf]  ;;  %v1075_v5 = vsel %vm1073_vm0, %v957_v59, 0  ;;  %v1078_v6 = vsel %vm1073_vm0, %v958_v60, 0  ;;  %v1780_v7 = vor.u32 %v1920_v58, %v1779_v57  ;;  %v1784_v8 = vor.u32 %v1916_v63, %v1781_v0 }
  0x8d   : > { %v1864_v2 = vld [vmem:[%s2254_s29 + $0x15c] sm:$0xf0]  ;;  %v1557_v4 = vld [vmem:[%s2254_s29 + $0x160] sm:$0xf0]  ;;  %1113 = vmatpush.bf16.msra.mxu1 %v1075_v5  ;;  %1139 = vmatpush.bf16.msra.mxu3 %v1078_v6  ;;  %v1627_v57 = vld [vmem:[%s2254_s29 + $0x1c8] sm:$0xf]  ;;  %v959_v59 = vpack.c.b16 %v847_v44, %v847_v44  ;;  %v848_v60 = vunpack.c.h.b16 %v514_v43 }
  0x8e   : > { %v1747_v9 = vld [vmem:[%s2254_s29 + $0x2c0] sm:$0xf]  ;;  %1099 = vmatpush.bf16.msra.mxu0 %v1588_v61  ;;  %1125 = vmatpush.bf16.msra.mxu2 %v1592_v62  ;;  %v1556_v11 = vor.u32 %v1864_v2, %v1555_v1  ;;  %v1560_v12 = vor.u32 %v1860_v3, %v1557_v4  ;;  %v1908_v13 = vld [vmem:[%s2254_s29 + $0x2c4] sm:$0xf]  ;;  %v1881_v58 = vld [vmem:[%s2254_s29 + $0x1e4] sm:$0xf0] }
  0x8f   : > { %v1912_v10 = vld [vmem:[%s2254_s29 + $0x2dc] sm:$0xf0]  ;;  %v1749_v14 = vld [vmem:[%s2254_s29 + $0x2e0] sm:$0xf0]  ;;  %v1628_v4 = vor.u32 %v1881_v58, %v1627_v57  ;;  %v1595_v6 = vld [vmem:[%s2254_s29 + $0x188] sm:$0xf] }
  0x90   : > { %v1523_v15 = vld [vmem:[%s2254_s29 + $0x100] sm:$0xf]  ;;  %v1852_v17 = vld [vmem:[%s2254_s29 + $0x104] sm:$0xf]  ;;  %v1748_v19 = vor.u32 %v1912_v10, %v1747_v9  ;;  %v1752_v20 = vor.u32 %v1908_v13, %v1749_v14  ;;  %v1787_v9 = vld [vmem:[%s2254_s29 + $0x308] sm:$0xf] }
  0x91   : > { %v1856_v16 = vld [vmem:[%s2254_s29 + $0x11c] sm:$0xf0]  ;;  %v1525_v18 = vld [vmem:[%s2254_s29 + $0x120] sm:$0xf0]  ;;  %1114 = vmatpush.bf16.msra.mxu1 %v1780_v7  ;;  %1140 = vmatpush.bf16.msra.mxu3 %v1784_v8  ;;  %v1873_v7 = vld [vmem:[%s2254_s29 + $0x1a4] sm:$0xf0] }
  0x92   : > { %v1715_v21 = vld [vmem:[%s2254_s29 + $0x280] sm:$0xf]  ;;  %1100 = vmatpush.bf16.msra.mxu0 %v1556_v11  ;;  %1126 = vmatpush.bf16.msra.mxu2 %v1560_v12  ;;  %v1524_v23 = vor.u32 %v1856_v16, %v1523_v15  ;;  %v1528_v24 = vor.u32 %v1852_v17, %v1525_v18  ;;  %v1900_v25 = vld [vmem:[%s2254_s29 + $0x284] sm:$0xf]  ;;  %v1081_v8 = vsel %vm1073_vm0, %v959_v59, 0  ;;  %v960_v11 = vpack.c.b16 %v848_v60, %v848_v60 }
  0x93   : > { %v1904_v22 = vld [vmem:[%s2254_s29 + $0x29c] sm:$0xf0]  ;;  %v1717_v26 = vld [vmem:[%s2254_s29 + $0x2a0] sm:$0xf0]  ;;  %v1921_v10 = vld [vmem:[%s2254_s29 + $0x324] sm:$0xf0]  ;;  %v1596_v17 = vor.u32 %v1873_v7, %v1595_v6 }
  0x94   : > { %v1491_v27 = vld [vmem:[%s2254_s29 + $0xc0] sm:$0xf]  ;;  %v1844_v29 = vld [vmem:[%s2254_s29 + $0xc4] sm:$0xf]  ;;  %v1716_v31 = vor.u32 %v1904_v22, %v1715_v21  ;;  %v1720_v32 = vor.u32 %v1900_v25, %v1717_v26  ;;  %v1877_v12 = vld [vmem:[%s2254_s29 + $0x1cc] sm:$0xf]  ;;  %v1788_v18 = vor.u32 %v1921_v10, %v1787_v9 }
  0x95   : > { %v1848_v28 = vld [vmem:[%s2254_s29 + $0xdc] sm:$0xf0]  ;;  %v1493_v30 = vld [vmem:[%s2254_s29 + $0xe0] sm:$0xf0]  ;;  %1115 = vmatpush.bf16.msra.mxu1 %v1748_v19  ;;  %1141 = vmatpush.bf16.msra.mxu3 %v1752_v20  ;;  %v1629_v13 = vld [vmem:[%s2254_s29 + $0x1e8] sm:$0xf0] }
  0x96   : > { %v1683_v33 = vld [vmem:[%s2254_s29 + $0x240] sm:$0xf]  ;;  %v1892_v35 = vld [vmem:[%s2254_s29 + $0x244] sm:$0xf]  ;;  %1101 = vmatpush.bf16.msra.mxu0 %v1524_v23  ;;  %1127 = vmatpush.bf16.msra.mxu2 %v1528_v24  ;;  %v1492_v36 = vor.u32 %v1848_v28, %v1491_v27  ;;  %v1496_v37 = vor.u32 %v1844_v29, %v1493_v30  ;;  %v1563_v16 = vld [vmem:[%s2254_s29 + $0x148] sm:$0xf]  ;;  %v1632_v22 = vor.u32 %v1877_v12, %v1629_v13 }
  0x97   : > { %v1896_v34 = vld [vmem:[%s2254_s29 + $0x25c] sm:$0xf0]  ;;  %v1685_v38 = vld [vmem:[%s2254_s29 + $0x260] sm:$0xf0]  ;;  %v1865_v19 = vld [vmem:[%s2254_s29 + $0x164] sm:$0xf0] }
  0x98   : > { %v1459_v39 = vld [vmem:[%s2254_s29 + $0x80] sm:$0xf]  ;;  %v1836_v41 = vld [vmem:[%s2254_s29 + $0x84] sm:$0xf]  ;;  %v1684_v45 = vor.u32 %v1896_v34, %v1683_v33  ;;  %v1688_v46 = vor.u32 %v1892_v35, %v1685_v38  ;;  %v1755_v20 = vld [vmem:[%s2254_s29 + $0x2c8] sm:$0xf]  ;;  %v1564_v33 = vor.u32 %v1865_v19, %v1563_v16 }
  0x99   : > { %v1840_v40 = vld [vmem:[%s2254_s29 + $0x9c] sm:$0xf0]  ;;  %v1461_v42 = vld [vmem:[%s2254_s29 + $0xa0] sm:$0xf0]  ;;  %1116 = vmatpush.bf16.msra.mxu1 %v1716_v31  ;;  %1142 = vmatpush.bf16.msra.mxu3 %v1720_v32  ;;  %v1084_v23 = vsel %vm1073_vm0, %v960_v11, 0  ;;  %v2370_v7 = vld [vmem:[%s2254_s29 + $0x350] sm:$0xff] }
  0x9a   : > { %v1651_v47 = vld [vmem:[%s2254_s29 + $0x200] sm:$0xf]  ;;  %1102 = vmatpush.bf16.msra.mxu0 %v1492_v36  ;;  %1128 = vmatpush.bf16.msra.mxu2 %v1496_v37  ;;  %v1460_v49 = vor.u32 %v1840_v40, %v1459_v39  ;;  %v1464_v50 = vor.u32 %v1836_v41, %v1461_v42  ;;  %v1884_v51 = vld [vmem:[%s2254_s29 + $0x204] sm:$0xf]  ;;  %v1913_v24 = vld [vmem:[%s2254_s29 + $0x2e4] sm:$0xf0] }
  0x9b   : > { %v1888_v48 = vld [vmem:[%s2254_s29 + $0x21c] sm:$0xf0]  ;;  %v1653_v52 = vld [vmem:[%s2254_s29 + $0x220] sm:$0xf0]  ;;  %v1869_v25 = vld [vmem:[%s2254_s29 + $0x18c] sm:$0xf]  ;;  %v1756_v34 = vor.u32 %v1913_v24, %v1755_v20 }
  0x9c   : > { %v1427_v53 = vld [vmem:[%s2254_s29 + $0x40] sm:$0xf]  ;;  %v1828_v55 = vld [vmem:[%s2254_s29 + $0x44] sm:$0xf]  ;;  %v1652_v61 = vor.u32 %v1888_v48, %v1651_v47  ;;  %v1656_v62 = vor.u32 %v1884_v51, %v1653_v52  ;;  %v1597_v28 = vld [vmem:[%s2254_s29 + $0x1a8] sm:$0xf0] }
  0x9d   : > { %v1832_v54 = vld [vmem:[%s2254_s29 + $0x5c] sm:$0xf0]  ;;  %v1429_v56 = vld [vmem:[%s2254_s29 + $0x60] sm:$0xf0]  ;;  %1117 = vmatpush.bf16.msra.mxu1 %v1684_v45  ;;  %1143 = vmatpush.bf16.msra.mxu3 %v1688_v46  ;;  %v1917_v29 = vld [vmem:[%s2254_s29 + $0x30c] sm:$0xf]  ;;  %v1600_v37 = vor.u32 %v1869_v25, %v1597_v28 }
  0x9e   : > { %1103 = vmatpush.bf16.msra.mxu0 %v1460_v49  ;;  %1129 = vmatpush.bf16.msra.mxu2 %v1464_v50  ;;  %v1428_v63 = vor.u32 %v1832_v54, %v1427_v53  ;;  %v1432_v0 = vor.u32 %v1828_v55, %v1429_v56  ;;  %v1395_v1 = vld [vmem:[%s2254_s29] sm:$0xf]  ;;  %v1820_v3 = vld [vmem:[%s2254_s29 + $0x4] sm:$0xf]  ;;  %v1789_v30 = vld [vmem:[%s2254_s29 + $0x328] sm:$0xf0] }
  0x9f   : > { %v1824_v2 = vld [vmem:[%s2254_s29 + $0x1c] sm:$0xf0]  ;;  %v1397_v5 = vld [vmem:[%s2254_s29 + $0x20] sm:$0xf0]  ;;  %v1531_v35 = vld [vmem:[%s2254_s29 + $0x108] sm:$0xf]  ;;  %v1792_v38 = vor.u32 %v1917_v29, %v1789_v30 }
  0xa0   : > { %v1396_v14 = vor.u32 %v1824_v2, %v1395_v1  ;;  %v1400_v15 = vor.u32 %v1820_v3, %v1397_v5  ;;  %v408_v21 = vld [vmem:[%s2540_s1] sm:$0xff]  ;;  %v1857_v36 = vld [vmem:[%s2254_s29 + $0x124] sm:$0xf0]  ;;  %v1861_v41 = vld [vmem:[%s2254_s29 + $0x14c] sm:$0xf] }
  0xa1   : > { %1118 = vmatpush.bf16.msra.mxu1 %v1652_v61  ;;  %1144 = vmatpush.bf16.msra.mxu3 %v1656_v62  ;;  %v524_v26 = vunpack.c.l.b16 %v408_v21  ;;  %v525_v27 = vunpack.c.h.b16 %v408_v21  ;;  %v1723_v39 = vld [vmem:[%s2254_s29 + $0x288] sm:$0xf]  ;;  %v1565_v42 = vld [vmem:[%s2254_s29 + $0x168] sm:$0xf0]  ;;  %v1532_v45 = vor.u32 %v1857_v36, %v1531_v35  ;;  %v1635_v5 = vld [vmem:[%s2254_s29 + $0x1d0] sm:$0xf]  ;;  %v849_v21 = vunpack.c.l.b16 %v2370_v7 }
  0xa2   : > { %1104 = vmatpush.bf16.msra.mxu0 %v1428_v63  ;;  %1130 = vmatpush.bf16.msra.mxu2 %v1432_v0  ;;  %v1905_v40 = vld [vmem:[%s2254_s29 + $0x2a4] sm:$0xf0]  ;;  %v1909_v43 = vld [vmem:[%s2254_s29 + $0x2cc] sm:$0xf]  ;;  %v1568_v49 = vor.u32 %v1861_v41, %v1565_v42  ;;  %v1882_v6 = vld [vmem:[%s2254_s29 + $0x1ec] sm:$0xf0] }
  0xa3   : > { %v2333_v31 = vpack.c.b16 %v524_v26, %v524_v26  ;;  %v2335_v32 = vpack.c.b16 %v525_v27, %v525_v27  ;;  %v1757_v44 = vld [vmem:[%s2254_s29 + $0x2e8] sm:$0xf0]  ;;  %v1724_v46 = vor.u32 %v1905_v40, %v1723_v39  ;;  %v1499_v47 = vld [vmem:[%s2254_s29 + $0xc8] sm:$0xf]  ;;  %v517_v16 = vld [vmem:[%s2541_s2] sm:$0xff] }
  0xa4   : > { %v1849_v48 = vld [vmem:[%s2254_s29 + $0xe4] sm:$0xf0]  ;;  %v1760_v50 = vor.u32 %v1909_v43, %v1757_v44  ;;  %v1853_v53 = vld [vmem:[%s2254_s29 + $0x10c] sm:$0xf]  ;;  %v1603_v20 = vld [vmem:[%s2254_s29 + $0x190] sm:$0xf]  ;;  %v850_v43 = vunpack.c.h.b16 %v2370_v7 }
  0xa5   : > { %1150 = vmatpush.bf16.msrb.mxu1 %v1628_v4  ;;  %1165 = vmatpush.bf16.msrb.mxu3 %v1081_v8  ;;  %v1691_v51 = vld [vmem:[%s2254_s29 + $0x248] sm:$0xf]  ;;  %v1533_v54 = vld [vmem:[%s2254_s29 + $0x128] sm:$0xf0]  ;;  %v1500_v57 = vor.u32 %v1849_v48, %v1499_v47  ;;  %v1878_v24 = vld [vmem:[%s2254_s29 + $0x1d4] sm:$0xf] }
  0xa6   : > { %1105 = vmatpush.bf16.msra.mxu0 %v1396_v14  ;;  %1131 = vmatpush.bf16.msra.mxu2 %v1400_v15  ;;  %v1897_v52 = vld [vmem:[%s2254_s29 + $0x264] sm:$0xf0]  ;;  %v1901_v55 = vld [vmem:[%s2254_s29 + $0x28c] sm:$0xf]  ;;  %v1536_v61 = vor.u32 %v1853_v53, %v1533_v54  ;;  %v1637_v25 = vld [vmem:[%s2254_s29 + $0x1f0] sm:$0xf0] }
  0xa7   : > { %1810 = vmatmul.msk.bf16.vlgmr.msra.gmra.mxu3 %vm1069_vm1, %v2335_v32  ;;  %1809 = vmatmul.msk.bf16.vlgmr.msra.gmra.mxu1 %vm1069_vm1, %v2335_v32  ;;  %v1725_v56 = vld [vmem:[%s2254_s29 + $0x2a8] sm:$0xf0]  ;;  %v1692_v58 = vor.u32 %v1897_v52, %v1691_v51  ;;  %v1467_v59 = vld [vmem:[%s2254_s29 + $0x88] sm:$0xf]  ;;  %v1866_v39 = vld [vmem:[%s2254_s29 + $0x16c] sm:$0xf0] }
  0xa8   : > { %v1841_v60 = vld [vmem:[%s2254_s29 + $0xa4] sm:$0xf0]  ;;  %v1728_v62 = vor.u32 %v1901_v55, %v1725_v56  ;;  %v1845_v1 = vld [vmem:[%s2254_s29 + $0xcc] sm:$0xf]  ;;  %v1870_v40 = vld [vmem:[%s2254_s29 + $0x194] sm:$0xf]  ;;  %v962_v56 = vpack.c.b16 %v850_v43, %v850_v43 }
  0xa9   : > { %1151 = vmatpush.bf16.msrb.mxu1 %v1596_v17  ;;  %1166 = vmatpush.bf16.msrb.mxu3 %v1788_v18  ;;  %v1659_v63 = vld [vmem:[%s2254_s29 + $0x208] sm:$0xf]  ;;  %v1501_v2 = vld [vmem:[%s2254_s29 + $0xe8] sm:$0xf0]  ;;  %v1468_v8 = vor.u32 %v1841_v60, %v1467_v59  ;;  %v1636_v17 = vor.u32 %v1882_v6, %v1635_v5  ;;  %v1605_v41 = vld [vmem:[%s2254_s29 + $0x1b0] sm:$0xf0] }
  0xaa   : > { %1176 = vmatpush.bf16.msrb.mxu0 %v1632_v22  ;;  %1191 = vmatpush.bf16.msrb.mxu2 %v1084_v23  ;;  %v1889_v0 = vld [vmem:[%s2254_s29 + $0x224] sm:$0xf0]  ;;  %v1893_v3 = vld [vmem:[%s2254_s29 + $0x24c] sm:$0xf]  ;;  %v1504_v12 = vor.u32 %v1845_v1, %v1501_v2  ;;  %v1976_v22 = vmov 0  }
  0xab   : > { %1132 = vmatmul.bf16.vlgmr.msra.gmra.mxu2 %v2333_v31  ;;  %1106 = vmatmul.bf16.vlgmr.msra.gmra.mxu0 %v2333_v31  ;;  %v1693_v4 = vld [vmem:[%s2254_s29 + $0x268] sm:$0xf0]  ;;  %v1660_v9 = vor.u32 %v1889_v0, %v1659_v63  ;;  %v1435_v10 = vld [vmem:[%s2254_s29 + $0x48] sm:$0xf]  ;;  %v1874_v23 = vld [vmem:[%s2254_s29 + $0x1ac] sm:$0xf0] }
  0xac   : > { %v1833_v11 = vld [vmem:[%s2254_s29 + $0x64] sm:$0xf0]  ;;  %v1696_v13 = vor.u32 %v1893_v3, %v1693_v4  ;;  %v1837_v14 = vld [vmem:[%s2254_s29 + $0x8c] sm:$0xf]  ;;  %1951 = vset.pattern.permute.xlu0 %v1976_v22  ;;  %v1539_v47 = vld [vmem:[%s2254_s29 + $0x110] sm:$0xf] }
  0xad   : > { %1152 = vmatpush.bf16.msrb.mxu1 %v1564_v33  ;;  %1167 = vmatpush.bf16.msrb.mxu3 %v1756_v34  ;;  %v1469_v15 = vld [vmem:[%s2254_s29 + $0xa8] sm:$0xf0]  ;;  %v1436_v26 = vor.u32 %v1833_v11, %v1435_v10  ;;  %v1403_v29 = vld [vmem:[%s2254_s29 + $0x8] sm:$0xf]  ;;  %v1604_v33 = vor.u32 %v1874_v23, %v1603_v20  ;;  %v1640_v34 = vor.u32 %v1878_v24, %v1637_v25  ;;  %v1795_v51 = vld [vmem:[%s2254_s29 + $0x310] sm:$0xf] }
  0xae   : > { %1177 = vmatpush.bf16.msrb.mxu0 %v1600_v37  ;;  %1192 = vmatpush.bf16.msrb.mxu2 %v1792_v38  ;;  %v1885_v18 = vld [vmem:[%s2254_s29 + $0x20c] sm:$0xf]  ;;  %v1472_v27 = vor.u32 %v1837_v14, %v1469_v15  ;;  %v1825_v30 = vld [vmem:[%s2254_s29 + $0x24] sm:$0xf0]  ;;  %v1571_v37 = vld [vmem:[%s2254_s29 + $0x150] sm:$0xf]  ;;  %v961_v38 = vpack.c.b16 %v849_v21, %v849_v21 }
  0xaf   : > { %v1661_v19 = vld [vmem:[%s2254_s29 + $0x228] sm:$0xf0]  ;;  %520 = vperm.xlu0 %1951, %v517_v16   ;;  %v1404_v42 = vor.u32 %v1825_v30, %v1403_v29  ;;  %v1572_v48 = vor.u32 %v1866_v39, %v1571_v37  ;;  %v1922_v52 = vld [vmem:[%s2254_s29 + $0x32c] sm:$0xf0]  ;;  %v1862_v54 = vld [vmem:[%s2254_s29 + $0x154] sm:$0xf] }
  0xb0   : > { %v1664_v28 = vor.u32 %v1885_v18, %v1661_v19  ;;  %v1829_v35 = vld [vmem:[%s2254_s29 + $0x4c] sm:$0xf]  ;;  %v1858_v53 = vld [vmem:[%s2254_s29 + $0x12c] sm:$0xf0]  ;;  %v1573_v55 = vld [vmem:[%s2254_s29 + $0x170] sm:$0xf0] }
  0xb1   : > { %1153 = vmatpush.bf16.msrb.mxu1 %v1532_v45  ;;  %1168 = vmatpush.bf16.msrb.mxu3 %v1724_v46  ;;  %v1437_v36 = vld [vmem:[%s2254_s29 + $0x68] sm:$0xf0]  ;;  %v1540_v59 = vor.u32 %v1858_v53, %v1539_v47  ;;  %v1576_v60 = vor.u32 %v1862_v54, %v1573_v55  ;;  %v1914_v63 = vld [vmem:[%s2254_s29 + $0x2ec] sm:$0xf0]  ;;  %v1854_v1 = vld [vmem:[%s2254_s29 + $0x114] sm:$0xf] }
  0xb2   : > { %1178 = vmatpush.bf16.msrb.mxu0 %v1568_v49  ;;  %1193 = vmatpush.bf16.msrb.mxu2 %v1760_v50  ;;  %v1440_v44 = vor.u32 %v1829_v35, %v1437_v36  ;;  %v1821_v45 = vld [vmem:[%s2254_s29 + $0xc] sm:$0xf]  ;;  %v1087_v49 = vsel %vm1073_vm0, %v961_v38, 0  ;;  %v1608_v50 = vor.u32 %v1870_v40, %v1605_v41  ;;  %v1850_v0 = vld [vmem:[%s2254_s29 + $0xec] sm:$0xf0]  ;;  %v1090_v3 = vsel %vm1073_vm0, %v962_v56, 0 }
  0xb3   : > { %v1405_v46 = vld [vmem:[%s2254_s29 + $0x28] sm:$0xf0]  ;;  %v1541_v2 = vld [vmem:[%s2254_s29 + $0x130] sm:$0xf0]  ;;  %v1731_v10 = vld [vmem:[%s2254_s29 + $0x290] sm:$0xf] }
  0xb4   : > { %v1918_v4 = vld [vmem:[%s2254_s29 + $0x314] sm:$0xf]  ;;  %v1906_v11 = vld [vmem:[%s2254_s29 + $0x2ac] sm:$0xf0]  ;;  %v516_v24 = vld [vmem:[%s2254_s29 + $0x358] sm:$0xff] }
  0xb5   : > { %1154 = vmatpush.bf16.msrb.mxu1 %v1500_v57  ;;  %1169 = vmatpush.bf16.msrb.mxu3 %v1692_v58  ;;  %v1408_v57 = vor.u32 %v1821_v45, %v1405_v46  ;;  %v1796_v58 = vor.u32 %v1922_v52, %v1795_v51  ;;  %v1797_v5 = vld [vmem:[%s2254_s29 + $0x330] sm:$0xf0]  ;;  %v1732_v18 = vor.u32 %v1906_v11, %v1731_v10  ;;  %v1443_v19 = vld [vmem:[%s2254_s29 + $0x50] sm:$0xf]  ;;  %v851_v35 = vunpack.c.l.b16 %v516_v24  ;;  %v1643_v46 = vld [vmem:[%s2254_s29 + $0x1d8] sm:$0xf] }
  0xb6   : > { %1179 = vmatpush.bf16.msrb.mxu0 %v1536_v61  ;;  %1194 = vmatpush.bf16.msrb.mxu2 %v1728_v62  ;;  %v1507_v61 = vld [vmem:[%s2254_s29 + $0xd0] sm:$0xf]  ;;  %v1846_v14 = vld [vmem:[%s2254_s29 + $0xd4] sm:$0xf]  ;;  %v1883_v47 = vld [vmem:[%s2254_s29 + $0x1f4] sm:$0xf0]  ;;  %v852_v54 = vunpack.c.h.b16 %v516_v24 }
  0xb7   : > { %v1763_v62 = vld [vmem:[%s2254_s29 + $0x2d0] sm:$0xf]  ;;  %v1508_v7 = vor.u32 %v1850_v0, %v1507_v61  ;;  %v1509_v15 = vld [vmem:[%s2254_s29 + $0xf0] sm:$0xf0]  ;;  %v1644_v56 = vor.u32 %v1883_v47, %v1643_v46  ;;  %v1803_v61 = vld [vmem:[%s2254_s29 + $0x318] sm:$0xf] }
  0xb8   : > { %v1764_v6 = vor.u32 %v1914_v63, %v1763_v62  ;;  %v1910_v16 = vld [vmem:[%s2254_s29 + $0x2d4] sm:$0xf]  ;;  %v1512_v21 = vor.u32 %v1846_v14, %v1509_v15  ;;  %v1699_v22 = vld [vmem:[%s2254_s29 + $0x250] sm:$0xf]  ;;  %v1923_v62 = vld [vmem:[%s2254_s29 + $0x334] sm:$0xf0] }
  0xb9   : > { %1155 = vmatpush.bf16.msrb.mxu1 %v1468_v8  ;;  %1170 = vmatpush.bf16.msrb.mxu3 %v1660_v9  ;;  %v1544_v8 = vor.u32 %v1854_v1, %v1541_v2  ;;  %v1475_v9 = vld [vmem:[%s2254_s29 + $0x90] sm:$0xf]  ;;  %v1902_v29 = vld [vmem:[%s2254_s29 + $0x294] sm:$0xf]  ;;  %v1879_v0 = vld [vmem:[%s2254_s29 + $0x1dc] sm:$0xf] }
  0xba   : > { %1180 = vmatpush.bf16.msrb.mxu0 %v1504_v12  ;;  %1195 = vmatpush.bf16.msrb.mxu2 %v1696_v13  ;;  %v1800_v12 = vor.u32 %v1918_v4, %v1797_v5  ;;  %v1842_v13 = vld [vmem:[%s2254_s29 + $0xac] sm:$0xf0]  ;;  %v1733_v30 = vld [vmem:[%s2254_s29 + $0x2b0] sm:$0xf0]  ;;  %v1645_v1 = vld [vmem:[%s2254_s29 + $0x1f8] sm:$0xf0] }
  0xbb   : > { %v1476_v20 = vor.u32 %v1842_v13, %v1475_v9  ;;  %v1898_v23 = vld [vmem:[%s2254_s29 + $0x26c] sm:$0xf0]  ;;  %v1736_v41 = vor.u32 %v1902_v29, %v1733_v30  ;;  %v1445_v43 = vld [vmem:[%s2254_s29 + $0x70] sm:$0xf0]  ;;  %v1867_v9 = vld [vmem:[%s2254_s29 + $0x174] sm:$0xf0] }
  0xbc   : > { %1811 = vmatmul.msk.bf16.vlgmr.msrb.gmra.mxu3 %vm1069_vm1, %v2335_v32  ;;  %v1826_v38 = vld [vmem:[%s2254_s29 + $0x2c] sm:$0xf0]  ;;  %v1701_v45 = vld [vmem:[%s2254_s29 + $0x270] sm:$0xf0]  ;;  %v1771_v10 = vld [vmem:[%s2254_s29 + $0x2d8] sm:$0xf] }
  0xbd   : > { %1202 = vmatpush.bf16.msra.mxu3 %v1636_v17  ;;  %1156 = vmatpush.bf16.msrb.mxu1 %v1436_v26  ;;  %v1765_v17 = vld [vmem:[%s2254_s29 + $0x2f0] sm:$0xf0]  ;;  %v1834_v26 = vld [vmem:[%s2254_s29 + $0x6c] sm:$0xf0]  ;;  %v1915_v11 = vld [vmem:[%s2254_s29 + $0x2f4] sm:$0xf0] }
  0xbe   : > { %1181 = vmatpush.bf16.msrb.mxu0 %v1472_v27  ;;  %1196 = vmatpush.bf16.msrb.mxu2 %v1664_v28  ;;  %v1768_v25 = vor.u32 %v1910_v16, %v1765_v17  ;;  %v1838_v27 = vld [vmem:[%s2254_s29 + $0x94] sm:$0xf]  ;;  %v1444_v36 = vor.u32 %v1834_v26, %v1443_v19  ;;  %v1667_v39 = vld [vmem:[%s2254_s29 + $0x210] sm:$0xf]  ;;  %v1613_v13 = vld [vmem:[%s2254_s29 + $0x1b8] sm:$0xf0] }
  0xbf   : > { %v1477_v28 = vld [vmem:[%s2254_s29 + $0xb0] sm:$0xf0]  ;;  %v1890_v40 = vld [vmem:[%s2254_s29 + $0x22c] sm:$0xf0]  ;;  %v1919_v15 = vld [vmem:[%s2254_s29 + $0x31c] sm:$0xf] }
  0xc0   : > { %v1480_v37 = vor.u32 %v1838_v27, %v1477_v28  ;;  %v1822_v52 = vld [vmem:[%s2254_s29 + $0x14] sm:$0xf]  ;;  %v1805_v16 = vld [vmem:[%s2254_s29 + $0x338] sm:$0xf0]  ;;  %v1907_v24 = vld [vmem:[%s2254_s29 + $0x2b4] sm:$0xf0] }
  0xc1   : > { %1203 = vmatpush.bf16.msra.mxu3 %v1604_v33  ;;  %1157 = vmatpush.bf16.msrb.mxu1 %v1404_v42  ;;  %v1700_v33 = vor.u32 %v1898_v23, %v1699_v22  ;;  %v1830_v42 = vld [vmem:[%s2254_s29 + $0x54] sm:$0xf]  ;;  %v1739_v22 = vld [vmem:[%s2254_s29 + $0x298] sm:$0xf]  ;;  %v1808_v23 = vor.u32 %v1919_v15, %v1805_v16  ;;  %v1581_v26 = vld [vmem:[%s2254_s29 + $0x178] sm:$0xf0] }
  0xc2   : > { %1228 = vmatpush.bf16.msra.mxu2 %v1640_v34  ;;  %1182 = vmatpush.bf16.msrb.mxu0 %v1440_v44  ;;  %v1411_v34 = vld [vmem:[%s2254_s29 + $0x10] sm:$0xf]  ;;  %v1894_v44 = vld [vmem:[%s2254_s29 + $0x254] sm:$0xf]  ;;  %v1448_v51 = vor.u32 %v1830_v42, %v1445_v43  ;;  %v1911_v27 = vld [vmem:[%s2254_s29 + $0x2dc] sm:$0xf]  ;;  %v1740_v30 = vor.u32 %v1907_v24, %v1739_v22 }
  0xc3   : > { %1812 = vmatmul.msk.bf16.vlgmr.msrb.gmra.mxu2 %vm1069_vm1, %v2335_v32  ;;  %v1413_v53 = vld [vmem:[%s2254_s29 + $0x30] sm:$0xf0]  ;;  %v1704_v55 = vor.u32 %v1894_v44, %v1701_v45  ;;  %v1773_v28 = vld [vmem:[%s2254_s29 + $0x2f8] sm:$0xf0]  ;;  %v1483_v46 = vld [vmem:[%s2254_s29 + $0x98] sm:$0xf] }
  0xc4   : > { %1158 = vmatmul.bf16.vlgmr.msrb.gmra.mxu1 %v2333_v31  ;;  %v1416_v2 = vor.u32 %v1822_v52, %v1413_v53  ;;  %v1741_v42 = vld [vmem:[%s2254_s29 + $0x2b8] sm:$0xf0]  ;;  %v1843_v47 = vld [vmem:[%s2254_s29 + $0xb4] sm:$0xf0] }
  0xc5   : > { %1217 = vmatpush.bf16.msra.mxu1 %v1087_v49  ;;  %1204 = vmatpush.bf16.msra.mxu3 %v1572_v48  ;;  %v1668_v48 = vor.u32 %v1890_v40, %v1667_v39  ;;  %v963_v49 = vpack.c.b16 %v851_v35, %v851_v35  ;;  %v1851_v35 = vld [vmem:[%s2254_s29 + $0xf4] sm:$0xf0]  ;;  %v1855_v39 = vld [vmem:[%s2254_s29 + $0x11c] sm:$0xf] }
  0xc6   : > { %1229 = vmatpush.bf16.msra.mxu2 %v1608_v50  ;;  %1183 = vmatpush.bf16.msrb.mxu0 %v1408_v57  ;;  %v1412_v50 = vor.u32 %v1826_v38, %v1411_v34  ;;  %v1886_v57 = vld [vmem:[%s2254_s29 + $0x214] sm:$0xf]  ;;  %v1515_v34 = vld [vmem:[%s2254_s29 + $0xd8] sm:$0xf]  ;;  %v1549_v40 = vld [vmem:[%s2254_s29 + $0x138] sm:$0xf0] }
  0xc7   : > { %v1093_v63 = vsel %vm1073_vm0, %v963_v49, 0  ;;  %v1899_v38 = vld [vmem:[%s2254_s29 + $0x274] sm:$0xf0]  ;;  %v1516_v43 = vor.u32 %v1851_v35, %v1515_v34  ;;  %v1552_v45 = vor.u32 %v1855_v39, %v1549_v40  ;;  %v1517_v52 = vld [vmem:[%s2254_s29 + $0xf8] sm:$0xf0] }
  0xc8   : > { %v1895_v53 = vld [vmem:[%s2254_s29 + $0x25c] sm:$0xf] }
  0xc9   : > { %1218 = vmatpush.bf16.msra.mxu1 %v1796_v58  ;;  %1205 = vmatpush.bf16.msra.mxu3 %v1540_v59  ;;  %v1669_v58 = vld [vmem:[%s2254_s29 + $0x230] sm:$0xf0]  ;;  %v1611_v59 = vld [vmem:[%s2254_s29 + $0x198] sm:$0xf] }
  0xca   : > { %1230 = vmatpush.bf16.msra.mxu2 %v1576_v60  ;;  %1243 = vmatpush.bf16.msra.mxu0 %v1090_v3  ;;  %v1875_v60 = vld [vmem:[%s2254_s29 + $0x1b4] sm:$0xf0]  ;;  %v964_v3 = vpack.c.b16 %v852_v54, %v852_v54  ;;  %v1672_v4 = vor.u32 %v1886_v57, %v1669_v58  ;;  %v1709_v54 = vld [vmem:[%s2254_s29 + $0x278] sm:$0xf0] }
  0xcb   : > { %1184 = vmatmul.bf16.vlgmr.msrb.gmra.mxu0 %v2333_v31  ;;  %v1612_v5 = vor.u32 %v1875_v60, %v1611_v59  ;;  %v1451_v58 = vld [vmem:[%s2254_s29 + $0x58] sm:$0xf]  ;;  %v1712_v60 = vor.u32 %v1895_v53, %v1709_v54 }
  0xcc   : > { %v1096_v14 = vsel %vm1073_vm0, %v964_v3, 0  ;;  %v1835_v59 = vld [vmem:[%s2254_s29 + $0x74] sm:$0xf0] }
  0xcd   : > { %1219 = vmatpush.bf16.msra.mxu1 %v1764_v6  ;;  %1206 = vmatpush.bf16.msra.mxu3 %v1508_v7  ;;  %v1804_v6 = vor.u32 %v1923_v62, %v1803_v61  ;;  %v1648_v7 = vor.u32 %v1879_v0, %v1645_v1  ;;  %v1839_v61 = vld [vmem:[%s2254_s29 + $0x9c] sm:$0xf]  ;;  %v1452_v1 = vor.u32 %v1835_v59, %v1451_v58  ;;  %v1419_v3 = vld [vmem:[%s2254_s29 + $0x18] sm:$0xf] }
  0xce   : > { %1231 = vmatpush.bf16.msra.mxu2 %v1544_v8  ;;  %1244 = vmatpush.bf16.msra.mxu0 %v1800_v12  ;;  %v1579_v8 = vld [vmem:[%s2254_s29 + $0x158] sm:$0xf]  ;;  %v1871_v12 = vld [vmem:[%s2254_s29 + $0x19c] sm:$0xf] }
  0xcf   : > { %v1580_v17 = vor.u32 %v1867_v9, %v1579_v8  ;;  %v1616_v19 = vor.u32 %v1871_v12, %v1613_v13  ;;  %v1485_v62 = vld [vmem:[%s2254_s29 + $0xb8] sm:$0xf0] }
  0xd0   : > { %v1677_v0 = vld [vmem:[%s2254_s29 + $0x238] sm:$0xf0] }
  0xd1   : > { %1220 = vmatpush.bf16.msra.mxu1 %v1732_v18  ;;  %1207 = vmatpush.bf16.msra.mxu3 %v1476_v20  ;;  %v1772_v18 = vor.u32 %v1915_v11, %v1771_v10  ;;  %v1547_v20 = vld [vmem:[%s2254_s29 + $0x118] sm:$0xf]  ;;  %v1823_v10 = vld [vmem:[%s2254_s29 + $0x1c] sm:$0xf] }
  0xd2   : > { %1232 = vmatpush.bf16.msra.mxu2 %v1512_v21  ;;  %1245 = vmatpush.bf16.msra.mxu0 %v1768_v25  ;;  %v1859_v21 = vld [vmem:[%s2254_s29 + $0x134] sm:$0xf0]  ;;  %v1863_v25 = vld [vmem:[%s2254_s29 + $0x15c] sm:$0xf] }
  0xd3   : > { %v1548_v29 = vor.u32 %v1859_v21, %v1547_v20  ;;  %v1421_v11 = vld [vmem:[%s2254_s29 + $0x38] sm:$0xf0] }
  0xd4   : > { %v1424_v12 = vor.u32 %v1823_v10, %v1421_v11 }
  0xd5   : > { %1221 = vmatpush.bf16.msra.mxu1 %v1700_v33  ;;  %1208 = vmatpush.bf16.msra.mxu3 %v1444_v36  ;;  %v1584_v33 = vor.u32 %v1863_v25, %v1581_v26  ;;  %v1707_v36 = vld [vmem:[%s2254_s29 + $0x258] sm:$0xf] }
  0xd6   : > { %1233 = vmatpush.bf16.msra.mxu2 %v1480_v37  ;;  %1246 = vmatpush.bf16.msra.mxu0 %v1736_v41  ;;  %v1776_v37 = vor.u32 %v1911_v27, %v1773_v28  ;;  %v1903_v41 = vld [vmem:[%s2254_s29 + $0x29c] sm:$0xf]  ;;  %v1708_v44 = vor.u32 %v1899_v38, %v1707_v36 }
  0xd7   : > { %v1744_v49 = vor.u32 %v1903_v41, %v1741_v42 }
  0xd9   : > { %1222 = vmatpush.bf16.msra.mxu1 %v1668_v48  ;;  %1209 = vmatpush.bf16.msra.mxu3 %v1412_v50  ;;  %v1675_v48 = vld [vmem:[%s2254_s29 + $0x218] sm:$0xf] }
  0xda   : > { %1234 = vmatpush.bf16.msra.mxu2 %v1448_v51  ;;  %1247 = vmatpush.bf16.msra.mxu0 %v1704_v55  ;;  %v1891_v50 = vld [vmem:[%s2254_s29 + $0x234] sm:$0xf0]  ;;  %v1847_v51 = vld [vmem:[%s2254_s29 + $0xdc] sm:$0xf]  ;;  %v1484_v55 = vor.u32 %v1843_v47, %v1483_v46 }
  0xdb   : > { %v1520_v57 = vor.u32 %v1847_v51, %v1517_v52 }
  0xdc   : > { %1813 = vmatmul.msk.bf16.vlgmr.msra.gmra.mxu1 %vm1069_vm1, %v2335_v32  ;;  %1210 = vmatmul.bf16.vlgmr.msra.gmra.mxu3 %v2333_v31 }
  0xdd   : > { %1254 = vmatpush.bf16.msrb.mxu1 %v1644_v56  ;;  %1269 = vmatpush.bf16.msrb.mxu3 %v1093_v63  ;;  %v1676_v56 = vor.u32 %v1891_v50, %v1675_v48  ;;  %v1887_v63 = vld [vmem:[%s2254_s29 + $0x21c] sm:$0xf] }
  0xde   : > { %1235 = vmatpush.bf16.msra.mxu2 %v1416_v2  ;;  %1248 = vmatpush.bf16.msra.mxu0 %v1672_v4  ;;  %v1488_v2 = vor.u32 %v1839_v61, %v1485_v62  ;;  %v1827_v4 = vld [vmem:[%s2254_s29 + $0x34] sm:$0xf0] }
  0xdf   : > { %v1420_v8 = vor.u32 %v1827_v4, %v1419_v3 }
  0xe1   : > { %1255 = vmatpush.bf16.msrb.mxu1 %v1612_v5  ;;  %1270 = vmatpush.bf16.msrb.mxu3 %v1804_v6  ;;  %v1680_v5 = vor.u32 %v1887_v63, %v1677_v0  ;;  %v1831_v6 = vld [vmem:[%s2254_s29 + $0x5c] sm:$0xf] }
  0xe2   : > { %1280 = vmatpush.bf16.msrb.mxu0 %v1648_v7  ;;  %1295 = vmatpush.bf16.msrb.mxu2 %v1096_v14  ;;  %v1453_v7 = vld [vmem:[%s2254_s29 + $0x78] sm:$0xf0] }
  0xe3   : > { %1236 = vmatmul.bf16.vlgmr.msra.gmra.mxu2 %v2333_v31  ;;  %1814 = vmatmul.msk.bf16.vlgmr.msra.gmra.mxu0 %vm1069_vm1, %v2335_v32  ;;  %v1456_v9 = vor.u32 %v1831_v6, %v1453_v7 }
  0xe5   : > { %1256 = vmatpush.bf16.msrb.mxu1 %v1580_v17  ;;  %1271 = vmatpush.bf16.msrb.mxu3 %v1772_v18 }
  0xe6   : > { %1281 = vmatpush.bf16.msrb.mxu0 %v1616_v19  ;;  %1296 = vmatpush.bf16.msrb.mxu2 %v1808_v23 }
  0xe9   : > { %1257 = vmatpush.bf16.msrb.mxu1 %v1548_v29  ;;  %1272 = vmatpush.bf16.msrb.mxu3 %v1740_v30 }
  0xea   : > { %1282 = vmatpush.bf16.msrb.mxu0 %v1584_v33  ;;  %1297 = vmatpush.bf16.msrb.mxu2 %v1776_v37 }
  0xed   : > { %1258 = vmatpush.bf16.msrb.mxu1 %v1516_v43  ;;  %1273 = vmatpush.bf16.msrb.mxu3 %v1708_v44 }
  0xee   : > { %1283 = vmatpush.bf16.msrb.mxu0 %v1552_v45  ;;  %1298 = vmatpush.bf16.msrb.mxu2 %v1744_v49 }
  0xf1   : > { %1259 = vmatpush.bf16.msrb.mxu1 %v1484_v55  ;;  %1274 = vmatpush.bf16.msrb.mxu3 %v1676_v56 }
  0xf2   : > { %1284 = vmatpush.bf16.msrb.mxu0 %v1520_v57  ;;  %1299 = vmatpush.bf16.msrb.mxu2 %v1712_v60 }
  0xf4   : > { %1815 = vmatmul.msk.bf16.vlgmr.msrb.gmra.mxu3 %vm1069_vm1, %v2335_v32 }
  0xf5   : > { %1260 = vmatpush.bf16.msrb.mxu1 %v1452_v1 }
  0xf6   : > { %1285 = vmatpush.bf16.msrb.mxu0 %v1488_v2  ;;  %1300 = vmatpush.bf16.msrb.mxu2 %v1680_v5 }
  0xf9   : > { %1261 = vmatpush.bf16.msrb.mxu1 %v1420_v8  ;;  %1816 = vmatmul.msk.bf16.vlgmr.msrb.gmra.mxu2 %vm1069_vm1, %v2335_v32 }
  0xfa   : > { %1286 = vmatpush.bf16.msrb.mxu0 %v1456_v9 }
  0xfc   : > { %1262 = vmatmul.bf16.vlgmr.msrb.gmra.mxu1 %v2333_v31 }
  0xfe   : > { %1287 = vmatpush.bf16.msrb.mxu0 %v1424_v12 }
 0x101   : > { %1288 = vmatmul.bf16.vlgmr.msrb.gmra.mxu0 %v2333_v31 }
 0x121   : > { %v521_v15 = vpop.permute.xlu0 %520 }
 0x124   : > { %v1120_v14 = vpop.f32.mrf.mxu1 }
 0x128   : > { %v1107_v13 = vpop.f32.mrf.mxu0 }
 0x129   : > { %v1108_v16 = vadd.f32 %v1107_v13, %v521_v15 }
 0x12a   : > { %v1146_v19 = vpop.f32.mrf.mxu3 }
 0x12b   : > { %v1121_v17 = vadd.f32 %v1120_v14, %v1108_v16 }
 0x12c   : > { %v1122_v22 = vpop.f32.mrf.mxu1 }
 0x12d   : > { %v1306_v32 = vmax.f32 %v1121_v17, 0.0 }
 0x12e   : > { %v1133_v18 = vpop.f32.mrf.mxu2 }
 0x12f   : > { %v1134_v31 = vadd.f32 %v1133_v18, %v521_v15  ;;  %1314 = vst [vmem:[%s2519_s11] sm:$0xff] %v1306_v32 }
 0x130   : > { %v1109_v21 = vpop.f32.mrf.mxu0 }
 0x131   : > { %v1147_v20 = vadd.f32 %v1146_v19, %v1134_v31 }
 0x132   : > { %v1148_v25 = vpop.f32.mrf.mxu3 }
 0x133   : > { %v1307_v23 = vmax.f32 %v1147_v20, 0.0 }
 0x135   : > { %1315 = vst [vmem:[%s2519_s11 + $0x8] sm:$0xff] %v1307_v23 }
 0x136   : > { %v1135_v24 = vpop.f32.mrf.mxu2 }
 0x13f   : > { %v1172_v26 = vpop.f32.mrf.mxu3 }
 0x141   : > { %v1159_v27 = vpop.f32.mrf.mxu1 }
 0x142   : > { %v1160_v28 = vadd.f32 %v1159_v27, %v521_v15 }
 0x144   : > { %v1173_v29 = vadd.f32 %v1172_v26, %v1160_v28 }
 0x146   : > { %v1198_v30 = vpop.f32.mrf.mxu2  ;;  %v1308_v33 = vmax.f32 %v1173_v29, 0.0 }
 0x147   : > { %v1174_v36 = vpop.f32.mrf.mxu3 }
 0x148   : > { %v1185_v34 = vpop.f32.mrf.mxu0  ;;  %1316 = vst [vmem:[%s2519_s11 + $0x10] sm:$0xff] %v1308_v33 }
 0x149   : > { %v1186_v35 = vadd.f32 %v1185_v34, %v521_v15  ;;  %v1161_v38 = vpop.f32.mrf.mxu1 }
 0x14b   : > { %v1199_v37 = vadd.f32 %v1198_v30, %v1186_v35 }
 0x14d   : > { %v1309_v39 = vmax.f32 %v1199_v37, 0.0 }
 0x14e   : > { %v1200_v40 = vpop.f32.mrf.mxu2 }
 0x14f   : > { %1317 = vst [vmem:[%s2519_s11 + $0x18] sm:$0xff] %v1309_v39 }
 0x150   : > { %v1187_v41 = vpop.f32.mrf.mxu0 }
 0x159   : > { %v1224_v42 = vpop.f32.mrf.mxu1 }
 0x15f   : > { %v1211_v44 = vpop.f32.mrf.mxu3 }
 0x160   : > { %v1250_v43 = vpop.f32.mrf.mxu0  ;;  %v1212_v45 = vadd.f32 %v1211_v44, %v521_v15 }
 0x161   : > { %v1226_v46 = vpop.f32.mrf.mxu1 }
 0x162   : > { %v1225_v47 = vadd.f32 %v1224_v42, %v1212_v45 }
 0x164   : > { %v1310_v48 = vmax.f32 %v1225_v47, 0.0 }
 0x166   : > { %v1237_v49 = vpop.f32.mrf.mxu2  ;;  %1318 = vst [vmem:[%s2519_s11 + $0x20] sm:$0xff] %v1310_v48 }
 0x167   : > { %v1238_v50 = vadd.f32 %v1237_v49, %v521_v15  ;;  %v1213_v53 = vpop.f32.mrf.mxu3 }
 0x168   : > { %v1252_v51 = vpop.f32.mrf.mxu0 }
 0x169   : > { %v1251_v52 = vadd.f32 %v1250_v43, %v1238_v50 }
 0x16b   : > { %v1311_v54 = vmax.f32 %v1251_v52, 0.0 }
 0x16d   : > { %1319 = vst [vmem:[%s2519_s11 + $0x28] sm:$0xff] %v1311_v54 }
 0x16e   : > { %v1239_v55 = vpop.f32.mrf.mxu2 }
 0x177   : > { %v1276_v56 = vpop.f32.mrf.mxu3 }
 0x179   : > { %v1263_v57 = vpop.f32.mrf.mxu1 }
 0x17a   : > { %v1264_v58 = vadd.f32 %v1263_v57, %v521_v15 }
 0x17c   : > { %v1277_v59 = vadd.f32 %v1276_v56, %v1264_v58  ;;  %v1302_v60 = vpop.f32.mrf.mxu2 }
 0x17e   : > { %v1312_v61 = vmax.f32 %v1277_v59, 0.0  ;;  %v1289_v62 = vpop.f32.mrf.mxu0 }
 0x17f   : > { %v1290_v63 = vadd.f32 %v1289_v62, %v521_v15  ;;  %v1278_v0 = vpop.f32.mrf.mxu3 }
 0x180   : > { %1320 = vst [vmem:[%s2519_s11 + $0x30] sm:$0xff] %v1312_v61 }
 0x181   : > { %v1303_v1 = vadd.f32 %v1302_v60, %v1290_v63  ;;  %v1265_v2 = vpop.f32.mrf.mxu1 }
 0x183   : > { %v1313_v3 = vmax.f32 %v1303_v1, 0.0 }
 0x184   : > { %v1304_v4 = vpop.f32.mrf.mxu2 }
 0x185   : > { %1321 = vst [vmem:[%s2519_s11 + $0x38] sm:$0xff] %v1313_v3 }
 0x186   : > { %v1291_v5 = vpop.f32.mrf.mxu0 }
 0x187 PF: > { %p10_p9 = scmp.ge.s32.totalorder %s2014_s16, 4   ;;  %s2543_s12 = smov %s1970_s13 }
 0x188   : > { %s2544_s13 = smov %s2023_s19  ;;  %s2545_s14 = smov %s2014_s16 }
 0x189   :  { %12 = sbr.rel (!%p10_p9) target bundleno = 2 (0x2), region = 90 }

</bundles_post_ra>
